<compile_context>
chip_gen: v6e
topology: v6e:2x2x1
jax: 0.10.0
libtpu: 0.0.40
codegen_flags: <defaults>
</compile_context>

<pallas_src>
import jax
import jax.numpy as jnp
from jax.experimental import pallas as pl
from jax.experimental.pallas import tpu as pltpu

N_IN = 784          # 1*28*28
N_HID = 800         # hidden width (also the padded input width)
N_OUT = 10          # classes
N_OUT_PAD = 128     # lane-dense padded output width
MAX_BATCH_TILE = 256                     # fills the 256-wide MXU on v6e/v7x
RESIDENT_WH_BYTES_MAX = 16 * 1024 * 1024  # resident-weight plan stays well under v7x's 64 MiB


def _round_up(x, m):
    return (x + m - 1) // m * m


# ---------------------------------------------------------------------------
# Resident-weight kernel: one grid step per batch tile, all layers unrolled.
# ---------------------------------------------------------------------------
def _resident_mlp_kernel(x_ref, wh_ref, bh_ref, wo_ref, bo_ref, o_ref, act_ref):
    """x_ref (bt,800) f32 | wh_ref (L,800,800) bf16 resident | bh_ref (L,1,800) f32
    wo_ref (800,128) bf16 | bo_ref (1,128) f32 | o_ref (bt,128) f32 | act_ref (bt,800) f32."""
    n_hidden = wh_ref.shape[0]

    # Layer 0 consumes the input tile directly (no extra VMEM copy of x).
    h = jnp.dot(x_ref[...].astype(jnp.bfloat16), wh_ref[0],
                preferred_element_type=jnp.float32)
    act_ref[...] = jnp.maximum(h + bh_ref[0], 0.0)

    # Remaining hidden layers: static unroll (n_hidden is a trace-time constant);
    # the act_ref store between layers bounds each layer's live range in VMEM.
    for l in range(1, n_hidden):
        h = jnp.dot(act_ref[...].astype(jnp.bfloat16), wh_ref[l],
                    preferred_element_type=jnp.float32)
        act_ref[...] = jnp.maximum(h + bh_ref[l], 0.0)

    y = jnp.dot(act_ref[...].astype(jnp.bfloat16), wo_ref[...],
                preferred_element_type=jnp.float32)
    o_ref[...] = (y + bo_ref[...]).astype(o_ref.dtype)


# ---------------------------------------------------------------------------
# Streaming fallback kernel for very deep nets: one grid step = one hidden
# layer for one batch tile; weights are double-buffered by the BlockSpec
# pipeline so layer-(l+1) weight DMA overlaps layer-l compute.
# ---------------------------------------------------------------------------
def _streaming_mlp_kernel(x_ref, wh_ref, bh_ref, wo_ref, bo_ref, o_ref, act_ref):
    l = pl.program_id(1)

    @pl.when(l == 0)
    def _():
        act_ref[...] = x_ref[...]

    h = jnp.dot(act_ref[...].astype(jnp.bfloat16), wh_ref[...],
                preferred_element_type=jnp.float32)
    act_ref[...] = jnp.maximum(h + bh_ref[...], 0.0)

    @pl.when(l == pl.num_programs(1) - 1)
    def _():
        y = jnp.dot(act_ref[...].astype(jnp.bfloat16), wo_ref[...],
                    preferred_element_type=jnp.float32)
        o_ref[...] = (y + bo_ref[...]).astype(o_ref.dtype)


def _fused_mlp(x_pad, wh, bh, wo, bo, bt):
    B, K = x_pad.shape
    n_hidden = wh.shape[0]
    n_out_pad = wo.shape[1]
    assert n_hidden >= 1, "fused kernel expects at least one hidden layer"
    assert B % bt == 0
    n_tiles = B // bt

    wh_bytes = wh.size * wh.dtype.itemsize
    if wh_bytes <= RESIDENT_WH_BYTES_MAX:
        # All hidden weights VMEM-resident; single grid axis over batch tiles.
        return pl.pallas_call(
            _resident_mlp_kernel,
            out_shape=jax.ShapeDtypeStruct((B, n_out_pad), jnp.float32),
            grid_spec=pltpu.PrefetchScalarGridSpec(
                num_scalar_prefetch=0,
                grid=(n_tiles,),
                in_specs=[
                    pl.BlockSpec((bt, K), lambda b: (b, 0)),
                    pl.BlockSpec((n_hidden, K, K), lambda b: (0, 0, 0)),   # resident
                    pl.BlockSpec((n_hidden, 1, K), lambda b: (0, 0, 0)),   # resident
                    pl.BlockSpec((K, n_out_pad), lambda b: (0, 0)),        # resident
                    pl.BlockSpec((1, n_out_pad), lambda b: (0, 0)),        # resident
                ],
                out_specs=pl.BlockSpec((bt, n_out_pad), lambda b: (b, 0)),
                scratch_shapes=[pltpu.VMEM((bt, K), jnp.float32)],
            ),
            compiler_params=pltpu.CompilerParams(
                dimension_semantics=("parallel",),
                vmem_limit_bytes=48 * 1024 * 1024,
            ),
        )(x_pad, wh, bh, wo, bo)

    # Fallback for nets too deep for resident weights: stream one layer per step.
    return pl.pallas_call(
        _streaming_mlp_kernel,
        out_shape=jax.ShapeDtypeStruct((B, n_out_pad), jnp.float32),
        grid_spec=pltpu.PrefetchScalarGridSpec(
            num_scalar_prefetch=0,
            grid=(n_tiles, n_hidden),
            in_specs=[
                pl.BlockSpec((bt, K), lambda b, l: (b, 0)),
                pl.BlockSpec((pl.Squeezed(), K, K), lambda b, l: (l, 0, 0)),
                pl.BlockSpec((pl.Squeezed(), 1, K), lambda b, l: (l, 0, 0)),
                pl.BlockSpec((K, n_out_pad), lambda b, l: (0, 0)),
                pl.BlockSpec((1, n_out_pad), lambda b, l: (0, 0)),
            ],
            out_specs=pl.BlockSpec((bt, n_out_pad), lambda b, l: (b, 0)),
            scratch_shapes=[pltpu.VMEM((bt, K), jnp.float32)],
        ),
        compiler_params=pltpu.CompilerParams(
            dimension_semantics=("parallel", "arbitrary"),
            vmem_limit_bytes=32 * 1024 * 1024,
        ),
    )(x_pad, wh, bh, wo, bo)


def init_params(key, n_hidden: int):
    """PyTorch-layout (out, in) params, nn.Linear-style U(-1/sqrt(fan_in), 1/sqrt(fan_in))."""
    params = []
    last_in = N_IN
    for _ in range(n_hidden):
        key, kw, kb = jax.random.split(key, 3)
        bound = 1.0 / jnp.sqrt(jnp.float32(last_in))
        W = jax.random.uniform(kw, (N_HID, last_in), jnp.float32, -bound, bound)
        b = jax.random.uniform(kb, (N_HID,), jnp.float32, -bound, bound)
        params.append((W, b))
        last_in = N_HID
    key, kw, kb = jax.random.split(key, 3)
    bound = 1.0 / jnp.sqrt(jnp.float32(N_HID))
    W_out = jax.random.uniform(kw, (N_OUT, N_HID), jnp.float32, -bound, bound)
    b_out = jax.random.uniform(kb, (N_OUT,), jnp.float32, -bound, bound)
    return params, (W_out, b_out)


def pack_params(hidden_params, out_params):
    """One-time repack (outside the jitted hot path): transpose to (in, out) layout,
    zero-pad the first layer's in-dim 784->800, stack hidden layers, pad the output
    layer to a lane-dense width of 128, and store weights in bf16 (biases stay f32)."""
    wh = jnp.stack([
        jnp.pad(W.T, ((0, N_HID - W.shape[1]), (0, 0))) for (W, _) in hidden_params
    ]).astype(jnp.bfloat16)                                               # (L, 800, 800) bf16
    bh = jnp.stack([b.reshape(1, N_HID) for (_, b) in hidden_params])     # (L, 1, 800) f32
    W_out, b_out = out_params
    wo = jnp.pad(W_out.T, ((0, 0), (0, N_OUT_PAD - N_OUT))).astype(jnp.bfloat16)  # (800, 128)
    bo = jnp.pad(b_out.reshape(1, N_OUT), ((0, 0), (0, N_OUT_PAD - N_OUT)))       # (1, 128)
    return wh, bh, wo, bo.astype(jnp.float32)


@jax.jit
def network_forward(x_nchw, wh, bh, wo, bo):
    B = x_nchw.shape[0]
    x = x_nchw.reshape(B, -1)                                 # torch.flatten(x, 1), NCHW row-major
    x = jnp.pad(x, ((0, 0), (0, N_HID - x.shape[1])))         # zero feature pad 784 -> 800
    B8 = _round_up(B, 8)                                      # sublane alignment
    bt = min(B8, MAX_BATCH_TILE)                              # batch tile (MXU M rows per step)
    B_pad = _round_up(B8, bt)                                 # pad batch to a tile multiple
    if B_pad != B:
        x = jnp.pad(x, ((0, B_pad - B), (0, 0)))
    out_pad = _fused_mlp(x, wh, bh, wo, bo, bt)               # (B_pad, 128)
    return out_pad[:B, :N_OUT]                                # (B, 10)


if __name__ == "__main__":
    key = jax.random.PRNGKey(0)
    k_x, k_p = jax.random.split(key)

    batch_size = 8
    n_hidden = 2

    # MNIST-like input, NCHW like PyTorch.
    x = jax.random.normal(k_x, (batch_size, 1, 28, 28), jnp.float32)
    hidden_params, out_params = init_params(k_p, n_hidden)

    # Pack / transpose / pad / cast weights once, outside the jitted forward.
    wh, bh, wo, bo = pack_params(hidden_params, out_params)

    out = network_forward(x, wh, bh, wo, bo)
    out = jax.block_until_ready(out)

    # Reference check in plain JAX with f32 PyTorch-layout weights.
    # Tolerance loosened because kernel weights are bf16 (accumulation stays f32).
    ref = x.reshape(batch_size, -1)
    for (W, b) in hidden_params:
        ref = jnp.maximum(ref @ W.T + b, 0.0)
    W_out, b_out = out_params
    ref = ref @ W_out.T + b_out

    assert out.shape == (batch_size, 10)
    assert jnp.allclose(out, ref, atol=3e-2, rtol=3e-2)
    print("KERNEL_OK")
</pallas_src>

<mosaic_0001>
module attributes {stable_mosaic.version = 11 : i64} {
  func.func @_resident_mlp_kernel(%arg0: i32, %arg1: memref<8x800xf32, #tpu.memory_space<vmem>>, %arg2: memref<2x800x800xbf16, #tpu.memory_space<vmem>>, %arg3: memref<2x1x800xf32, #tpu.memory_space<vmem>>, %arg4: memref<800x128xbf16, #tpu.memory_space<vmem>>, %arg5: memref<1x128xf32, #tpu.memory_space<vmem>>, %arg6: memref<8x128xf32, #tpu.memory_space<vmem>>, %arg7: memref<8x800xf32, #tpu.memory_space<vmem>>) attributes {dimension_semantics = [#tpu.dimension_semantics<parallel>], iteration_bounds = array<i64: 1>, scalar_prefetch = 0 : i64, scratch_operands = 1 : i64, tpu.core_type = #tpu.core_type<tc>, window_params = [{transform_indices = @transform_0, window_bounds = array<i64: 8, 800>}, {pipeline_mode = #tpu.pipeline_mode<synchronous>, transform_indices = @transform_1, window_bounds = array<i64: 2, 800, 800>}, {pipeline_mode = #tpu.pipeline_mode<synchronous>, transform_indices = @transform_2, window_bounds = array<i64: 2, 1, 800>}, {pipeline_mode = #tpu.pipeline_mode<synchronous>, transform_indices = @transform_3, window_bounds = array<i64: 800, 128>}, {pipeline_mode = #tpu.pipeline_mode<synchronous>, transform_indices = @transform_4, window_bounds = array<i64: 1, 128>}, {transform_indices = @transform_5, window_bounds = array<i64: 8, 128>}]} {
    %c0 = arith.constant 0 : index
    %c0_0 = arith.constant 0 : index
    %0 = vector.load %arg1[%c0, %c0_0] : memref<8x800xf32, #tpu.memory_space<vmem>>, vector<8x800xf32>
    %1 = arith.truncf %0 : vector<8x800xf32> to vector<8x800xbf16>
    %c0_1 = arith.constant 0 : index
    %c0_2 = arith.constant 0 : index
    %c0_3 = arith.constant 0 : index
    %2 = vector.load %arg2[%c0_1, %c0_2, %c0_3] : memref<2x800x800xbf16, #tpu.memory_space<vmem>>, vector<1x800x800xbf16>
    %3 = vector.shape_cast %2 : vector<1x800x800xbf16> to vector<800x800xbf16>
    %cst = arith.constant dense<0.000000e+00> : vector<8x800xf32>
    %4 = tpu.matmul %1, %3, %cst {dimension_numbers = #tpu.dot_dimension_numbers<[1], [0], [0], [1], [0, 0, 1, 1], [], []>} : vector<8x800xbf16>, vector<800x800xbf16>, vector<8x800xf32> -> vector<8x800xf32>
    %c0_4 = arith.constant 0 : index
    %c0_5 = arith.constant 0 : index
    %c0_6 = arith.constant 0 : index
    %5 = vector.load %arg3[%c0_4, %c0_5, %c0_6] : memref<2x1x800xf32, #tpu.memory_space<vmem>>, vector<1x1x800xf32>
    %6 = vector.shape_cast %5 : vector<1x1x800xf32> to vector<1x800xf32>
    %7 = vector.broadcast %6 : vector<1x800xf32> to vector<8x800xf32>
    %8 = arith.addf %4, %7 : vector<8x800xf32>
    %cst_7 = arith.constant 0.000000e+00 : f32
    %9 = vector.broadcast %cst_7 : f32 to vector<8x800xf32>
    %10 = arith.maximumf %8, %9 : vector<8x800xf32>
    %c0_8 = arith.constant 0 : index
    %c0_9 = arith.constant 0 : index
    %11 = vector.load %arg7[%c0_8, %c0_9] : memref<8x800xf32, #tpu.memory_space<vmem>>, vector<8x800xf32>
    tpu.vector_store %arg7[%c0_8, %c0_9], %10 {strides = array<i32>} : memref<8x800xf32, #tpu.memory_space<vmem>>, vector<8x800xf32>,
    %c0_10 = arith.constant 0 : index
    %c0_11 = arith.constant 0 : index
    %12 = vector.load %arg7[%c0_10, %c0_11] : memref<8x800xf32, #tpu.memory_space<vmem>>, vector<8x800xf32>
    %13 = arith.truncf %12 : vector<8x800xf32> to vector<8x800xbf16>
    %c1 = arith.constant 1 : index
    %c0_12 = arith.constant 0 : index
    %c0_13 = arith.constant 0 : index
    %14 = vector.load %arg2[%c1, %c0_12, %c0_13] : memref<2x800x800xbf16, #tpu.memory_space<vmem>>, vector<1x800x800xbf16>
    %15 = vector.shape_cast %14 : vector<1x800x800xbf16> to vector<800x800xbf16>
    %cst_14 = arith.constant dense<0.000000e+00> : vector<8x800xf32>
    %16 = tpu.matmul %13, %15, %cst_14 {dimension_numbers = #tpu.dot_dimension_numbers<[1], [0], [0], [1], [0, 0, 1, 1], [], []>} : vector<8x800xbf16>, vector<800x800xbf16>, vector<8x800xf32> -> vector<8x800xf32>
    %c1_15 = arith.constant 1 : index
    %c0_16 = arith.constant 0 : index
    %c0_17 = arith.constant 0 : index
    %17 = vector.load %arg3[%c1_15, %c0_16, %c0_17] : memref<2x1x800xf32, #tpu.memory_space<vmem>>, vector<1x1x800xf32>
    %18 = vector.shape_cast %17 : vector<1x1x800xf32> to vector<1x800xf32>
    %19 = vector.broadcast %18 : vector<1x800xf32> to vector<8x800xf32>
    %20 = arith.addf %16, %19 : vector<8x800xf32>
    %cst_18 = arith.constant 0.000000e+00 : f32
    %21 = vector.broadcast %cst_18 : f32 to vector<8x800xf32>
    %22 = arith.maximumf %20, %21 : vector<8x800xf32>
    %c0_19 = arith.constant 0 : index
    %c0_20 = arith.constant 0 : index
    %23 = vector.load %arg7[%c0_19, %c0_20] : memref<8x800xf32, #tpu.memory_space<vmem>>, vector<8x800xf32>
    tpu.vector_store %arg7[%c0_19, %c0_20], %22 {strides = array<i32>} : memref<8x800xf32, #tpu.memory_space<vmem>>, vector<8x800xf32>,
    %c0_21 = arith.constant 0 : index
    %c0_22 = arith.constant 0 : index
    %24 = vector.load %arg7[%c0_21, %c0_22] : memref<8x800xf32, #tpu.memory_space<vmem>>, vector<8x800xf32>
    %25 = arith.truncf %24 : vector<8x800xf32> to vector<8x800xbf16>
    %c0_23 = arith.constant 0 : index
    %c0_24 = arith.constant 0 : index
    %26 = vector.load %arg4[%c0_23, %c0_24] : memref<800x128xbf16, #tpu.memory_space<vmem>>, vector<800x128xbf16>
    %cst_25 = arith.constant dense<0.000000e+00> : vector<8x128xf32>
    %27 = tpu.matmul %25, %26, %cst_25 {dimension_numbers = #tpu.dot_dimension_numbers<[1], [0], [0], [1], [0, 0, 1, 1], [], []>} : vector<8x800xbf16>, vector<800x128xbf16>, vector<8x128xf32> -> vector<8x128xf32>
    %c0_26 = arith.constant 0 : index
    %c0_27 = arith.constant 0 : index
    %28 = vector.load %arg5[%c0_26, %c0_27] : memref<1x128xf32, #tpu.memory_space<vmem>>, vector<1x128xf32>
    %29 = vector.broadcast %28 : vector<1x128xf32> to vector<8x128xf32>
    %30 = arith.addf %27, %29 : vector<8x128xf32>
    %c0_28 = arith.constant 0 : index
    %c0_29 = arith.constant 0 : index
    %31 = vector.load %arg6[%c0_28, %c0_29] : memref<8x128xf32, #tpu.memory_space<vmem>>, vector<8x128xf32>
    tpu.vector_store %arg6[%c0_28, %c0_29], %30 {strides = array<i32>} : memref<8x128xf32, #tpu.memory_space<vmem>>, vector<8x128xf32>,
    return
  }
  func.func @transform_0(%arg0: i32) -> (i32, i32) {
    %c0_i32 = arith.constant 0 : i32
    %c0_i32_0 = arith.constant 0 : i32
    return %arg0, %c0_i32 : i32, i32
  }
  func.func @transform_1(%arg0: i32) -> (i32, i32, i32) {
    %c0_i32 = arith.constant 0 : i32
    %c0_i32_0 = arith.constant 0 : i32
    %c0_i32_1 = arith.constant 0 : i32
    %c0_i32_2 = arith.constant 0 : i32
    return %c0_i32, %c0_i32_0, %c0_i32_1 : i32, i32, i32
  }
  func.func @transform_2(%arg0: i32) -> (i32, i32, i32) {
    %c0_i32 = arith.constant 0 : i32
    %c0_i32_0 = arith.constant 0 : i32
    %c0_i32_1 = arith.constant 0 : i32
    %c0_i32_2 = arith.constant 0 : i32
    return %c0_i32, %c0_i32_0, %c0_i32_1 : i32, i32, i32
  }
  func.func @transform_3(%arg0: i32) -> (i32, i32) {
    %c0_i32 = arith.constant 0 : i32
    %c0_i32_0 = arith.constant 0 : i32
    %c0_i32_1 = arith.constant 0 : i32
    return %c0_i32, %c0_i32_0 : i32, i32
  }
  func.func @transform_4(%arg0: i32) -> (i32, i32) {
    %c0_i32 = arith.constant 0 : i32
    %c0_i32_0 = arith.constant 0 : i32
    %c0_i32_1 = arith.constant 0 : i32
    return %c0_i32, %c0_i32_0 : i32, i32
  }
  func.func @transform_5(%arg0: i32) -> (i32, i32) {
    %c0_i32 = arith.constant 0 : i32
    %c0_i32_0 = arith.constant 0 : i32
    return %arg0, %c0_i32 : i32, i32
  }
}

</mosaic_0001>

<bundles_post_ra>
// kernel: network_forward.1
= control target key start
LH: loop header
LB: loop body
LE: loop exit
PB: predicated region body
PF: predicated region fallthrough
CT: control target
= control target key end

     0   :  { %10 = vsyncpa [#allocation4], 0  ;;  %s8998_s0 = inlined_call_operand.vmem [shape: f32[8,800], index: 0, kind: input, shape index: {}]   ;;  %s8999_s1 = inlined_call_operand.hbm [shape: bf16[2,800,800], index: 1, kind: input, shape index: {}]   ;;  %s9000_s2 = inlined_call_operand.hbm [shape: f32[2,1,800], index: 2, kind: input, shape index: {}]   ;;  %s9001_s3 = inlined_call_operand.hbm [shape: bf16[800,128], index: 3, kind: input, shape index: {}]   ;;  %s9002_s4 = inlined_call_operand.hbm [shape: f32[1,128], index: 4, kind: input, shape index: {}]   ;;  %s9003_s5 = inlined_call_operand.hbm [shape: f32[8,128], index: 5, kind: output, shape index: {}]  }
   0x1   :  { %11 = vsyncpa [#allocation7], 0 }
   0x2   :  { %12 = vsyncpa [#allocation10], 0 }
   0x3   :  { %13 = vsyncpa [#allocation5], 0  ;;  %s8685_s18 = smov [#allocation6]  }
   0x4   :  { %s33_s19 = sshll.u32 %s8685_s18, 4  ;;  %s34_s19 = int_to_ptr.vmem [resolvable:$true] %s33_s19 }
   0x5   :  { %s8585_s20 = scalar_lea.vmem %s34_s19, 224  ;;  %p8590_p1 = scmp.lt.s32.totalorder %s34_s19, %s34_s19 }
   0x6   :  { %p8586_p0 = scmp.ne.s32.totalorder %s34_s19, %s8585_s20  ;;  %p8591_p2 = scmp.lt.s32.totalorder %s8585_s20, %s8585_s20 }
   0x8   :  { %p8592_p3 = por %p8591_p2, %p8590_p1 }
   0xa   :  { %p8593_p4 = pnand %p8592_p3, %p8586_p0 }
   0xc   :  { %8596 = shalt.err (!%p8593_p4)
}
   0xd   :  { %s8686_s21 = smov 112   ;;  %s8687_s22 = smov 7  }
   0xe   :  { %39 = dma.hbm_to_vmem [thread:$0]  %s9000_s2, 224, %s34_s19, [#allocation7], %s8686_s21, %s8686_s21, %s8687_s22  }
   0xf   :  { %s8688_s25 = smov [#allocation3]  }
  0x10   :  { %s21_s26 = sshll.u32 %s8688_s25, 4  ;;  %s22_s26 = int_to_ptr.vmem [resolvable:$true] %s21_s26 }
  0x11   :  { %s8605_s27 = scalar_lea.vmem %s22_s26, 89600  ;;  %p8610_p6 = scmp.lt.s32.totalorder %s22_s26, %s22_s26 }
  0x12   :  { %p8606_p5 = scmp.ne.s32.totalorder %s22_s26, %s8605_s27  ;;  %p8611_p7 = scmp.lt.s32.totalorder %s8605_s27, %s8605_s27 }
  0x14   :  { %p8612_p8 = por %p8611_p7, %p8610_p6 }
  0x16   :  { %p8613_p9 = pnand %p8612_p8, %p8606_p5 }
  0x18   :  { %8616 = shalt.err (!%p8613_p9)
}
  0x19   :  { %s8689_s28 = smov 448   ;;  %s8690_s29 = smov 28  }
  0x1a   :  { %27 = dma.hbm_to_vmem [thread:$0]  %s8999_s1, 89600, %s22_s26, [#allocation4], %s8689_s28, %s8689_s28, %s8690_s29  }
  0x1b   :  { %s8691_s7 = smov [#allocation8]  }
  0x1c   :  { %s45_s8 = sshll.u32 %s8691_s7, 4  ;;  %s46_s8 = int_to_ptr.vmem [resolvable:$true] %s45_s8 }
  0x1d   :  { %s8625_s2 = scalar_lea.vmem %s46_s8, 6400  ;;  %p8630_p11 = scmp.lt.s32.totalorder %s46_s8, %s46_s8 }
  0x1e   :  { %p8626_p10 = scmp.ne.s32.totalorder %s46_s8, %s8625_s2  ;;  %p8631_p12 = scmp.lt.s32.totalorder %s8625_s2, %s8625_s2 }
  0x20   :  { %p8632_p13 = por %p8631_p12, %p8630_p11 }
  0x22   :  { %p8633_p0 = pnand %p8632_p13, %p8626_p10 }
  0x24   :  { %8636 = shalt.err (!%p8633_p0)
}
  0x25   :  { %s8692_s9 = smov 64   ;;  %s8693_s10 = smov 4  }
  0x26   :  { %51 = dma.hbm_to_vmem [thread:$0]  %s9001_s3, 6400, %s46_s8, [#allocation7], %s8692_s9, %s8692_s9, %s8693_s10  }
  0x27   :  { %s8694_s13 = smov [#allocation9]  }
  0x28   :  { %s58_s14 = sshll.u32 %s8694_s13, 4  ;;  %s59_s14 = int_to_ptr.vmem [resolvable:$true] %s58_s14 }
  0x29   :  { %s8645_s1 = scalar_lea.vmem %s59_s14, 16  ;;  %s8649_s15 = scalar_lea.vmem %s59_s14, 32 }
  0x2a   :  { %p8646_p1 = scmp.ne.s32.totalorder %s59_s14, %s8645_s1  ;;  %p8650_p2 = scmp.lt.s32.totalorder %s59_s14, %s59_s14 }
  0x2b   :  { %p8651_p3 = scmp.lt.s32.totalorder %s8649_s15, %s8645_s1 }
  0x2d   :  { %p8652_p4 = por %p8651_p3, %p8650_p2 }
  0x2f   :  { %p8653_p5 = pnand %p8652_p4, %p8646_p1 }
  0x31   :  { %8656 = shalt.err (!%p8653_p5)
}
  0x32   :  { %61 = dma.hbm_to_vmem [thread:$0]  %s9002_s4, 16, %s59_s14, [#allocation10]  }
  0x33   :  { %8677 = dma.done.wait [#allocation4], 89600  }
  0x34   :  { %8678 = vsyncadd [#allocation4], 4294877696 }
  0x35   :  { %8679 = dma.done.wait [#allocation7], 6624  }
  0x36   :  { %8680 = vsyncadd [#allocation7], 4294960672 }
  0x37   :  { %8681 = dma.done.wait [#allocation10], 16  }
  0x38   :  { %8682 = vsyncadd [#allocation10], 4294967280  ;;  %v7525_v0 = vld [vmem:[#allocation3 + $0x18c] ss:$28 sps:$4 sm:$0xff]   ;;  %v7531_v4 = vld [vmem:[#allocation3 + $0x154] ss:$28 sps:$4 sm:$0xff]  }
  0x39   :  { %v7527_v1 = vld [vmem:[#allocation3 + $0x50c] ss:$28 sps:$4 sm:$0xff]   ;;  %2330 = vmatprep.subr.bf16.mxu0 %v7525_v0  ;;  %v7533_v5 = vld [vmem:[#allocation3 + $0x4d4] ss:$28 sps:$4 sm:$0xff]   ;;  %v7537_v8 = vld [vmem:[#allocation3 + $0x11c] ss:$28 sps:$4 sm:$0xff]  }
  0x3a   :  { %v7529_v2 = vld [vmem:[#allocation3 + $0x188] ss:$28 sps:$4 sm:$0xff]   ;;  %2371 = vmatprep.subr.bf16.mxu1 %v7527_v1  ;;  %v7535_v6 = vld [vmem:[#allocation3 + $0x150] ss:$28 sps:$4 sm:$0xff]   ;;  %v7539_v9 = vld [vmem:[#allocation3 + $0x49c] ss:$28 sps:$4 sm:$0xff]  }
  0x3b   :  { %v7530_v3 = vld [vmem:[#allocation3 + $0x508] ss:$28 sps:$4 sm:$0xff]   ;;  %2331 = vmatpush1.bf16.msra.mxu0 %v7529_v2  ;;  %v7536_v7 = vld [vmem:[#allocation3 + $0x4d0] ss:$28 sps:$4 sm:$0xff]   ;;  %v7541_v10 = vld [vmem:[#allocation3 + $0x118] ss:$28 sps:$4 sm:$0xff]  }
  0x3c   :  { %2372 = vmatpush1.bf16.msra.mxu1 %v7530_v3  ;;  %2332 = vmatprep.subr.bf16.mxu0 %v7531_v4  ;;  %v7542_v11 = vld [vmem:[#allocation3 + $0x498] ss:$28 sps:$4 sm:$0xff]   ;;  %v7543_v12 = vld [vmem:[#allocation3 + $0xe4] ss:$28 sps:$4 sm:$0xff]   ;;  %v7549_v16 = vld [vmem:[#allocation3 + $0xac] ss:$28 sps:$4 sm:$0xff]  }
  0x3d   :  { %2373 = vmatprep.subr.bf16.mxu1 %v7533_v5  ;;  %v7545_v13 = vld [vmem:[#allocation3 + $0x464] ss:$28 sps:$4 sm:$0xff]   ;;  %v7551_v17 = vld [vmem:[#allocation3 + $0x42c] ss:$28 sps:$4 sm:$0xff]   ;;  %v7555_v20 = vld [vmem:[#allocation3 + $0x74] ss:$28 sps:$4 sm:$0xff]  }
  0x3e   :  { %v7547_v14 = vld [vmem:[#allocation3 + $0xe0] ss:$28 sps:$4 sm:$0xff]   ;;  %v7553_v18 = vld [vmem:[#allocation3 + $0xa8] ss:$28 sps:$4 sm:$0xff]   ;;  %v7557_v21 = vld [vmem:[#allocation3 + $0x3f4] ss:$28 sps:$4 sm:$0xff]  }
  0x3f   :  { %2333 = vmatpush1.bf16.msra.mxu0 %v7535_v6  ;;  %v7548_v15 = vld [vmem:[#allocation3 + $0x460] ss:$28 sps:$4 sm:$0xff]   ;;  %v7554_v19 = vld [vmem:[#allocation3 + $0x428] ss:$28 sps:$4 sm:$0xff]   ;;  %v7559_v22 = vld [vmem:[#allocation3 + $0x70] ss:$28 sps:$4 sm:$0xff]  }
  0x40   :  { %2374 = vmatpush1.bf16.msra.mxu1 %v7536_v7  ;;  %2334 = vmatprep.subr.bf16.mxu0 %v7537_v8  ;;  %v7560_v23 = vld [vmem:[#allocation3 + $0x3f0] ss:$28 sps:$4 sm:$0xff]   ;;  %v7561_v24 = vld [vmem:[#allocation3 + $0x3c] ss:$28 sps:$4 sm:$0xff]   ;;  %v7567_v28 = vld [vmem:[#allocation3 + $0x4] ss:$28 sps:$4 sm:$0xff]  }
  0x41   :  { %2375 = vmatprep.subr.bf16.mxu1 %v7539_v9  ;;  %v7563_v25 = vld [vmem:[#allocation3 + $0x3bc] ss:$28 sps:$4 sm:$0xff]   ;;  %v7569_v29 = vld [vmem:[#allocation3 + $0x384] ss:$28 sps:$4 sm:$0xff]   ;;  %v7573_v32 = vld [vmem:[#allocation3 + $0x34c] ss:$28 sps:$4 sm:$0xff]  }
  0x42   :  { %v7565_v26 = vld [vmem:[#allocation3 + $0x38] ss:$28 sps:$4 sm:$0xff]   ;;  %v7571_v30 = vld [vmem:[#allocation3] ss:$28 sps:$4 sm:$0xff]   ;;  %v7575_v33 = vld [vmem:[#allocation3 + $0x6cc] ss:$28 sps:$4 sm:$0xff]  }
  0x43   :  { %2335 = vmatpush1.bf16.msra.mxu0 %v7541_v10  ;;  %v7566_v27 = vld [vmem:[#allocation3 + $0x3b8] ss:$28 sps:$4 sm:$0xff]   ;;  %v7572_v31 = vld [vmem:[#allocation3 + $0x380] ss:$28 sps:$4 sm:$0xff]   ;;  %v7577_v34 = vld [vmem:[#allocation3 + $0x348] ss:$28 sps:$4 sm:$0xff]  }
  0x44   :  { %2376 = vmatpush1.bf16.msra.mxu1 %v7542_v11  ;;  %2336 = vmatprep.subr.bf16.mxu0 %v7543_v12  ;;  %v7578_v35 = vld [vmem:[#allocation3 + $0x6c8] ss:$28 sps:$4 sm:$0xff]   ;;  %v7579_v36 = vld [vmem:[#allocation3 + $0x314] ss:$28 sps:$4 sm:$0xff]   ;;  %v7585_v40 = vld [vmem:[#allocation3 + $0x2dc] ss:$28 sps:$4 sm:$0xff]  }
  0x45   :  { %2377 = vmatprep.subr.bf16.mxu1 %v7545_v13  ;;  %v7581_v37 = vld [vmem:[#allocation3 + $0x694] ss:$28 sps:$4 sm:$0xff]   ;;  %v7587_v41 = vld [vmem:[#allocation3 + $0x65c] ss:$28 sps:$4 sm:$0xff]   ;;  %v7591_v44 = vld [vmem:[#allocation3 + $0x2a4] ss:$28 sps:$4 sm:$0xff]  }
  0x46   :  { %v7583_v38 = vld [vmem:[#allocation3 + $0x310] ss:$28 sps:$4 sm:$0xff]   ;;  %v7589_v42 = vld [vmem:[#allocation3 + $0x2d8] ss:$28 sps:$4 sm:$0xff]   ;;  %v7593_v45 = vld [vmem:[#allocation3 + $0x624] ss:$28 sps:$4 sm:$0xff]  }
  0x47   :  { %2337 = vmatpush1.bf16.msra.mxu0 %v7547_v14  ;;  %v7584_v39 = vld [vmem:[#allocation3 + $0x690] ss:$28 sps:$4 sm:$0xff]   ;;  %v7590_v43 = vld [vmem:[#allocation3 + $0x658] ss:$28 sps:$4 sm:$0xff]   ;;  %v7595_v47 = vld [vmem:[#allocation3 + $0x2a0] ss:$28 sps:$4 sm:$0xff]  }
  0x48   :  { %2378 = vmatpush1.bf16.msra.mxu1 %v7548_v15  ;;  %2338 = vmatprep.subr.bf16.mxu0 %v7549_v16  ;;  %v76_v46 = vld [vmem:[%s8998_s0 + $0x8] sm:$0xff]  ;;  %v78_v49 = vld [vmem:[%s8998_s0 + $0x18] sm:$0xff]  ;;  %v7597_v51 = vld [vmem:[#allocation3 + $0x26c] ss:$28 sps:$4 sm:$0xff]   ;;  %vm2326_vm0 = vcmask 261120   ;;  %vm8697_vm1 = vmmov 0  }
  0x49   :  { %2379 = vmatprep.subr.bf16.mxu1 %v7551_v17  ;;  %v8744_v48 = vpack.c.bf16 %v76_v46, %v76_v46  ;;  %v7596_v50 = vld [vmem:[#allocation3 + $0x620] ss:$28 sps:$4 sm:$0xff]   ;;  %v8749_v52 = vpack.c.bf16 %v78_v49, %v78_v49  ;;  %v7599_v53 = vld [vmem:[#allocation3 + $0x5ec] ss:$28 sps:$4 sm:$0xff]   ;;  %v7603_v56 = vld [vmem:[#allocation3 + $0x234] ss:$28 sps:$4 sm:$0xff]  }
  0x4a   :  { %v7601_v54 = vld [vmem:[#allocation3 + $0x268] ss:$28 sps:$4 sm:$0xff]   ;;  %v7605_v57 = vld [vmem:[#allocation3 + $0x5b4] ss:$28 sps:$4 sm:$0xff]   ;;  %v7609_v60 = vld [vmem:[#allocation3 + $0x1fc] ss:$28 sps:$4 sm:$0xff]  }
  0x4b   :  { %2339 = vmatpush1.bf16.msra.mxu0 %v7553_v18  ;;  %2362 = vmatprep.mubr.bf16.mxu0 %v8744_v48  ;;  %v7602_v55 = vld [vmem:[#allocation3 + $0x5e8] ss:$28 sps:$4 sm:$0xff]   ;;  %v7607_v58 = vld [vmem:[#allocation3 + $0x230] ss:$28 sps:$4 sm:$0xff]   ;;  %v7611_v61 = vld [vmem:[#allocation3 + $0x57c] ss:$28 sps:$4 sm:$0xff]  }
  0x4c   :  { %2380 = vmatpush1.bf16.msra.mxu1 %v7554_v19  ;;  %2340 = vmatprep.subr.bf16.mxu0 %v7555_v20  ;;  %v7608_v59 = vld [vmem:[#allocation3 + $0x5b0] ss:$28 sps:$4 sm:$0xff]   ;;  %v7613_v62 = vld [vmem:[#allocation3 + $0x1f8] ss:$28 sps:$4 sm:$0xff]   ;;  %v7615_v0 = vld [vmem:[#allocation3 + $0x1c4] ss:$28 sps:$4 sm:$0xff]  }
  0x4d   :  { %2381 = vmatprep.subr.bf16.mxu1 %v7557_v21  ;;  %2403 = vmatprep.mubr.bf16.mxu1 %v8749_v52  ;;  %v7614_v63 = vld [vmem:[#allocation3 + $0x578] ss:$28 sps:$4 sm:$0xff]   ;;  %v7617_v1 = vld [vmem:[#allocation3 + $0x544] ss:$28 sps:$4 sm:$0xff]   ;;  %v75_v4 = vld [vmem:[%s8998_s0] sm:$0xff]  ;;  %v8695_v19 = vmov 0  }
  0x4e   :  { %v7619_v2 = vld [vmem:[#allocation3 + $0x1c0] ss:$28 sps:$4 sm:$0xff]   ;;  %v7623_v6 = vld [vmem:[#allocation3 + $0x88c] ss:$28 sps:$4 sm:$0xff]   ;;  %v8759_v8 = vpack.c.bf16 %v75_v4, %v75_v4  ;;  %v7624_v11 = vld [vmem:[#allocation3 + $0xab8] ss:$28 sps:$4 sm:$0xff]  }
  0x4f   :  { %2341 = vmatpush1.bf16.msra.mxu0 %v7559_v22  ;;  %v7620_v3 = vld [vmem:[#allocation3 + $0x540] ss:$28 sps:$4 sm:$0xff]   ;;  %v7621_v9 = vld [vmem:[#allocation3 + $0x888] ss:$28 sps:$4 sm:$0xff]   ;;  %v7629_v12 = vld [vmem:[#allocation3 + $0x854] ss:$28 sps:$4 sm:$0xff]  }
  0x50   :  { %2382 = vmatpush1.bf16.msra.mxu1 %v7560_v23  ;;  %2342 = vmatprep.subr.bf16.mxu0 %v7561_v24  ;;  %v77_v5 = vld [vmem:[%s8998_s0 + $0x10] sm:$0xff]  ;;  %v7632_v13 = vld [vmem:[#allocation3 + $0xa84] ss:$28 sps:$4 sm:$0xff]   ;;  %v7627_v14 = vld [vmem:[#allocation3 + $0x850] ss:$28 sps:$4 sm:$0xff]  }
  0x51   :  { %2383 = vmatprep.subr.bf16.mxu1 %v7563_v25  ;;  %v7626_v7 = vld [vmem:[#allocation3 + $0xabc] ss:$28 sps:$4 sm:$0xff]   ;;  %v8761_v10 = vpack.c.bf16 %v77_v5, %v77_v5  ;;  %v7638_v18 = vld [vmem:[#allocation3 + $0x194] ss:$28 sps:$4 sm:$0xff]   ;;  %v7641_v23 = vld [vmem:[#allocation3 + $0x7e4] ss:$28 sps:$4 sm:$0xff]  }
  0x52   :  { %v7630_v15 = vld [vmem:[#allocation3 + $0xa80] ss:$28 sps:$4 sm:$0xff]   ;;  %v7633_v20 = vld [vmem:[#allocation3 + $0x818] ss:$28 sps:$4 sm:$0xff]   ;;  %v7636_v22 = vld [vmem:[#allocation3 + $0x190] ss:$28 sps:$4 sm:$0xff]  }
  0x53   :  { %2343 = vmatpush1.bf16.msra.mxu0 %v7565_v26  ;;  %v81_v16 = vld [vmem:[%s8998_s0 + $0x30] sm:$0xff]  ;;  %v7674_v46 = vld [vmem:[#allocation3 + $0x44] ss:$28 sps:$4 sm:$0xff]   ;;  %v7704_v4 = vld [vmem:[#allocation3 + $0x2ac] ss:$28 sps:$4 sm:$0xff]  }
  0x54   :  { %2384 = vmatpush1.bf16.msra.mxu1 %v7566_v27  ;;  %2344 = vmatprep.subr.bf16.mxu0 %v7567_v28  ;;  %v7635_v17 = vld [vmem:[#allocation3 + $0x81c] ss:$28 sps:$4 sm:$0xff]   ;;  %v8769_v21 = vpack.c.bf16 %v81_v16, %v81_v16  ;;  %v7647_v27 = vld [vmem:[#allocation3 + $0x7ac] ss:$28 sps:$4 sm:$0xff]   ;;  %v7650_v28 = vld [vmem:[#allocation3 + $0x124] ss:$28 sps:$4 sm:$0xff]  }
  0x55   :  { %2385 = vmatprep.subr.bf16.mxu1 %v7569_v29  ;;  %v7644_v24 = vld [vmem:[#allocation3 + $0x15c] ss:$28 sps:$4 sm:$0xff]   ;;  %v7645_v29 = vld [vmem:[#allocation3 + $0x7a8] ss:$28 sps:$4 sm:$0xff]   ;;  %v7699_v5 = vld [vmem:[#allocation3 + $0x930] ss:$28 sps:$4 sm:$0xff]  }
  0x56   :  { %v7639_v25 = vld [vmem:[#allocation3 + $0x7e0] ss:$28 sps:$4 sm:$0xff]   ;;  %v7642_v26 = vld [vmem:[#allocation3 + $0x158] ss:$28 sps:$4 sm:$0xff]  }
  0x57   :  { %2345 = vmatpush1.bf16.msra.mxu0 %v7571_v30  ;;  %v7648_v30 = vld [vmem:[#allocation3 + $0x120] ss:$28 sps:$4 sm:$0xff]   ;;  %v7714_v16 = vld [vmem:[#allocation3 + $0x238] ss:$28 sps:$4 sm:$0xff]  }
  0x58   :  { %2386 = vmatpush1.bf16.msra.mxu1 %v7572_v31  ;;  %2346 = vmatprep.subr.bf16.mxu0 %v7573_v32  ;;  %v7653_v31 = vld [vmem:[#allocation3 + $0x774] ss:$28 sps:$4 sm:$0xff]   ;;  %v7656_v32 = vld [vmem:[#allocation3 + $0xec] ss:$28 sps:$4 sm:$0xff]   ;;  %v7672_v49 = vld [vmem:[#allocation3 + $0x40] ss:$28 sps:$4 sm:$0xff]  }
  0x59   :  { %2387 = vmatprep.subr.bf16.mxu1 %v7575_v33  ;;  %v7651_v33 = vld [vmem:[#allocation3 + $0x770] ss:$28 sps:$4 sm:$0xff]  }
  0x5b   :  { %2347 = vmatpush2.bf16.msra.mxu0 %v7577_v34  ;;  %v7654_v34 = vld [vmem:[#allocation3 + $0xe8] ss:$28 sps:$4 sm:$0xff]  }
  0x5c   :  { %2388 = vmatpush2.bf16.msra.mxu1 %v7578_v35  ;;  %2348 = vmatprep.subr.bf16.mxu0 %v7579_v36  ;;  %v7659_v35 = vld [vmem:[#allocation3 + $0x73c] ss:$28 sps:$4 sm:$0xff]   ;;  %v7662_v36 = vld [vmem:[#allocation3 + $0xb4] ss:$28 sps:$4 sm:$0xff]  }
  0x5d   :  { %2389 = vmatprep.subr.bf16.mxu1 %v7581_v37  ;;  %v7657_v37 = vld [vmem:[#allocation3 + $0x738] ss:$28 sps:$4 sm:$0xff]  }
  0x5f   :  { %2349 = vmatpush2.bf16.msra.mxu0 %v7583_v38  ;;  %v80_v38 = vld [vmem:[%s8998_s0 + $0x28] sm:$0xff] }
  0x60   :  { %2390 = vmatpush2.bf16.msra.mxu1 %v7584_v39  ;;  %2350 = vmatprep.subr.bf16.mxu0 %v7585_v40  ;;  %v7660_v39 = vld [vmem:[#allocation3 + $0xb0] ss:$28 sps:$4 sm:$0xff]   ;;  %v7665_v40 = vld [vmem:[#allocation3 + $0x704] ss:$28 sps:$4 sm:$0xff]  }
  0x61   :  { %2391 = vmatprep.subr.bf16.mxu1 %v7587_v41  ;;  %v8777_v41 = vpack.c.bf16 %v80_v38, %v80_v38  ;;  %v7746_v38 = vld [vmem:[#allocation3 + $0x824] ss:$28 sps:$4 sm:$0xff]  }
  0x63   :  { %2351 = vmatpush2.bf16.msra.mxu0 %v7589_v42  ;;  %v7668_v42 = vld [vmem:[#allocation3 + $0x7c] ss:$28 sps:$4 sm:$0xff]  }
  0x64   :  { %2392 = vmatpush2.bf16.msra.mxu1 %v7590_v43  ;;  %2352 = vmatprep.subr.bf16.mxu0 %v7591_v44  ;;  %v7663_v43 = vld [vmem:[#allocation3 + $0x700] ss:$28 sps:$4 sm:$0xff]   ;;  %v7666_v44 = vld [vmem:[#allocation3 + $0x78] ss:$28 sps:$4 sm:$0xff]  }
  0x65   :  { %2393 = vmatprep.subr.bf16.mxu1 %v7593_v45  ;;  %v7671_v45 = vld [vmem:[#allocation3 + $0xa4c] ss:$28 sps:$4 sm:$0xff]  }
  0x67   :  { %2353 = vmatpush2.bf16.msra.mxu0 %v7595_v47  ;;  %v7669_v47 = vld [vmem:[#allocation3 + $0xa48] ss:$28 sps:$4 sm:$0xff]  }
  0x68   :  { %2394 = vmatpush2.bf16.msra.mxu1 %v7596_v50  ;;  %2354 = vmatprep.subr.bf16.mxu0 %v7597_v51  ;;  %v7677_v50 = vld [vmem:[#allocation3 + $0xa14] ss:$28 sps:$4 sm:$0xff]   ;;  %v7680_v51 = vld [vmem:[#allocation3 + $0xc] ss:$28 sps:$4 sm:$0xff]  }
  0x69   :  { %2395 = vmatprep.subr.bf16.mxu1 %v7599_v53  ;;  %v7675_v53 = vld [vmem:[#allocation3 + $0xa10] ss:$28 sps:$4 sm:$0xff]  }
  0x6b   :  { %2355 = vmatpush2.bf16.msra.mxu0 %v7601_v54  ;;  %v7678_v54 = vld [vmem:[#allocation3 + $0x8] ss:$28 sps:$4 sm:$0xff]  }
  0x6c   :  { %2396 = vmatpush2.bf16.msra.mxu1 %v7602_v55  ;;  %2356 = vmatprep.subr.bf16.mxu0 %v7603_v56  ;;  %v7683_v55 = vld [vmem:[#allocation3 + $0x9dc] ss:$28 sps:$4 sm:$0xff]   ;;  %v7686_v56 = vld [vmem:[#allocation3 + $0x354] ss:$28 sps:$4 sm:$0xff]  }
  0x6d   :  { %2397 = vmatprep.subr.bf16.mxu1 %v7605_v57  ;;  %v7681_v57 = vld [vmem:[#allocation3 + $0x9d8] ss:$28 sps:$4 sm:$0xff]  }
  0x6f   :  { %2357 = vmatpush2.bf16.msra.mxu0 %v7607_v58  ;;  %v7684_v58 = vld [vmem:[#allocation3 + $0x350] ss:$28 sps:$4 sm:$0xff]  }
  0x70   :  { %2398 = vmatpush2.bf16.msra.mxu1 %v7608_v59  ;;  %2358 = vmatprep.subr.bf16.mxu0 %v7609_v60  ;;  %v7689_v59 = vld [vmem:[#allocation3 + $0x9a4] ss:$28 sps:$4 sm:$0xff]   ;;  %v7692_v60 = vld [vmem:[#allocation3 + $0x31c] ss:$28 sps:$4 sm:$0xff]  }
  0x71   :  { %2399 = vmatprep.subr.bf16.mxu1 %v7611_v61  ;;  %v7687_v61 = vld [vmem:[#allocation3 + $0x9a0] ss:$28 sps:$4 sm:$0xff]  }
  0x73   :  { %2359 = vmatpush2.bf16.msra.mxu0 %v7613_v62  ;;  %v7690_v62 = vld [vmem:[#allocation3 + $0x318] ss:$28 sps:$4 sm:$0xff]  }
  0x74   :  { %2400 = vmatpush2.bf16.msra.mxu1 %v7614_v63  ;;  %2360 = vmatprep.subr.bf16.mxu0 %v7615_v0  ;;  %v7695_v63 = vld [vmem:[#allocation3 + $0x96c] ss:$28 sps:$4 sm:$0xff]   ;;  %v7698_v0 = vld [vmem:[#allocation3 + $0x2e4] ss:$28 sps:$4 sm:$0xff]  }
  0x75   :  { %2401 = vmatprep.subr.bf16.mxu1 %v7617_v1  ;;  %v7693_v1 = vld [vmem:[#allocation3 + $0x968] ss:$28 sps:$4 sm:$0xff]  }
  0x77   :  { %2361 = vmatpush2.bf16.msra.mxu0 %v7619_v2  ;;  %v7696_v2 = vld [vmem:[#allocation3 + $0x2e0] ss:$28 sps:$4 sm:$0xff]  }
  0x78   :  { %2402 = vmatpush2.bf16.msra.mxu1 %v7620_v3  ;;  %2412 = vmatprep.subr.bf16.mxu0 %v7623_v6  ;;  %v7701_v3 = vld [vmem:[#allocation3 + $0x934] ss:$28 sps:$4 sm:$0xff]   ;;  %v7702_v6 = vld [vmem:[#allocation3 + $0x2a8] ss:$28 sps:$4 sm:$0xff]  }
  0x79   :  { %2465 = vmatprep.subr.bf16.mxu1 %v7626_v7  ;;  %v7707_v7 = vld [vmem:[#allocation3 + $0x8fc] ss:$28 sps:$4 sm:$0xff]  }
  0x7a   :  { %2363 = vmatmul.mubr.bf16.vlgmr.msra.gmra.mxu0 %v8759_v8 }
  0x7b   :  { %2404 = vmatmul.mubr.bf16.vlgmr.msra.gmra.mxu1 %v8761_v10  ;;  %2413 = vmatpush1.bf16.msra.mxu0 %v7621_v9  ;;  %v7710_v9 = vld [vmem:[#allocation3 + $0x274] ss:$28 sps:$4 sm:$0xff]  }
  0x7c   :  { %2466 = vmatpush1.bf16.msra.mxu1 %v7624_v11  ;;  %2414 = vmatprep.subr.bf16.mxu0 %v7629_v12  ;;  %v7705_v11 = vld [vmem:[#allocation3 + $0x8f8] ss:$28 sps:$4 sm:$0xff]   ;;  %v7708_v12 = vld [vmem:[#allocation3 + $0x270] ss:$28 sps:$4 sm:$0xff]  }
  0x7d   :  { %2467 = vmatprep.subr.bf16.mxu1 %v7632_v13  ;;  %2485 = vmatprep.mubr.bf16.mxu1 %v8695_v19  ;;  %v7713_v13 = vld [vmem:[#allocation3 + $0x8c4] ss:$28 sps:$4 sm:$0xff]  }
  0x7e   :  { %2444 = vmatprep.mubr.bf16.mxu0 %v8777_v41 }
  0x7f   :  { %2415 = vmatpush1.bf16.msra.mxu0 %v7627_v14  ;;  %v7716_v14 = vld [vmem:[#allocation3 + $0x23c] ss:$28 sps:$4 sm:$0xff]  }
  0x80   :  { %2468 = vmatpush1.bf16.msra.mxu1 %v7630_v15  ;;  %2416 = vmatprep.subr.bf16.mxu0 %v7635_v17  ;;  %v7711_v15 = vld [vmem:[#allocation3 + $0x8c0] ss:$28 sps:$4 sm:$0xff]   ;;  %v79_v17 = vld [vmem:[%s8998_s0 + $0x20] sm:$0xff]  ;;  %s8698_s0 = smov [#allocation11]  }
  0x81   :  { %2494 = vmatprep.subr.bf16.mxu1 %v7638_v18  ;;  %v7719_v18 = vld [vmem:[#allocation3 + $0x204] ss:$28 sps:$4 sm:$0xff]   ;;  %s6509_s30 = sshll.u32 %s8698_s0, 4  ;;  %s6510_s30 = int_to_ptr.vmem [resolvable:$true] %s6509_s30 }
  0x82   :  { %s8657_s6 = scalar_lea.vmem %s6510_s30, 128  ;;  %p8662_p7 = scmp.lt.s32.totalorder %s6510_s30, %s6510_s30 }
  0x83   :  { %6870 = vmatmul.mubr.msk.bf16.vlgmr.msra.gmra.mxu1 %vm2326_vm0, %v8769_v21  ;;  %2417 = vmatpush1.bf16.msra.mxu0 %v7633_v20  ;;  %v7722_v20 = vld [vmem:[#allocation3 + $0x514] ss:$28 sps:$4 sm:$0xff]   ;;  %p8658_p6 = scmp.ne.s32.totalorder %s6510_s30, %s8657_s6  ;;  %p8663_p8 = scmp.lt.s32.totalorder %s8657_s6, %s8657_s6 }
  0x84   :  { %2495 = vmatpush1.bf16.msra.mxu1 %v7636_v22  ;;  %2418 = vmatprep.subr.bf16.mxu0 %v7641_v23  ;;  %v8783_v22 = vpack.c.bf16 %v79_v17, %v79_v17  ;;  %v7717_v23 = vld [vmem:[#allocation3 + $0x200] ss:$28 sps:$4 sm:$0xff]   ;;  %v7798_v17 = vld [vmem:[#allocation3 + $0x9a8] ss:$28 sps:$4 sm:$0xff]  }
  0x85   :  { %2496 = vmatprep.subr.bf16.mxu1 %v7644_v24  ;;  %2526 = vmatprep.mubr.bf16.mxu1 %v8744_v48  ;;  %v7720_v24 = vld [vmem:[#allocation3 + $0x510] ss:$28 sps:$4 sm:$0xff]   ;;  %p8664_p9 = por %p8663_p8, %p8662_p7 }
  0x87   :  { %2419 = vmatpush1.bf16.msra.mxu0 %v7639_v25  ;;  %v7725_v25 = vld [vmem:[#allocation3 + $0x1cc] ss:$28 sps:$4 sm:$0xff]   ;;  %p8665_p10 = pnand %p8664_p9, %p8658_p6 }
  0x88   :  { %2497 = vmatpush1.bf16.msra.mxu1 %v7642_v26  ;;  %2420 = vmatprep.subr.bf16.mxu0 %v7647_v27  ;;  %v7728_v26 = vld [vmem:[#allocation3 + $0x4dc] ss:$28 sps:$4 sm:$0xff]   ;;  %v7723_v27 = vld [vmem:[#allocation3 + $0x1c8] ss:$28 sps:$4 sm:$0xff]  }
  0x89   :  { %2498 = vmatprep.subr.bf16.mxu1 %v7650_v28  ;;  %v7726_v28 = vld [vmem:[#allocation3 + $0x4d8] ss:$28 sps:$4 sm:$0xff]  }
  0x8b   :  { %2421 = vmatpush1.bf16.msra.mxu0 %v7645_v29  ;;  %v7731_v29 = vld [vmem:[#allocation3 + $0x4a4] ss:$28 sps:$4 sm:$0xff]  }
  0x8c   :  { %2499 = vmatpush1.bf16.msra.mxu1 %v7648_v30  ;;  %2422 = vmatprep.subr.bf16.mxu0 %v7653_v31  ;;  %v7734_v30 = vld [vmem:[#allocation3 + $0x894] ss:$28 sps:$4 sm:$0xff]   ;;  %v7729_v31 = vld [vmem:[#allocation3 + $0x4a0] ss:$28 sps:$4 sm:$0xff]  }
  0x8d   :  { %2500 = vmatprep.subr.bf16.mxu1 %v7656_v32  ;;  %v7732_v32 = vld [vmem:[#allocation3 + $0x890] ss:$28 sps:$4 sm:$0xff]  }
  0x8f   :  { %2423 = vmatpush1.bf16.msra.mxu0 %v7651_v33  ;;  %v7737_v33 = vld [vmem:[#allocation3 + $0x46c] ss:$28 sps:$4 sm:$0xff]  }
  0x90   :  { %2501 = vmatpush1.bf16.msra.mxu1 %v7654_v34  ;;  %2424 = vmatprep.subr.bf16.mxu0 %v7659_v35  ;;  %v7740_v34 = vld [vmem:[#allocation3 + $0x85c] ss:$28 sps:$4 sm:$0xff]   ;;  %v7735_v35 = vld [vmem:[#allocation3 + $0x468] ss:$28 sps:$4 sm:$0xff]  }
  0x91   :  { %2502 = vmatprep.subr.bf16.mxu1 %v7662_v36  ;;  %v7738_v36 = vld [vmem:[#allocation3 + $0x858] ss:$28 sps:$4 sm:$0xff]  }
  0x93   :  { %2425 = vmatpush1.bf16.msra.mxu0 %v7657_v37  ;;  %v7743_v37 = vld [vmem:[#allocation3 + $0x434] ss:$28 sps:$4 sm:$0xff]  }
  0x94   :  { %2503 = vmatpush1.bf16.msra.mxu1 %v7660_v39  ;;  %2426 = vmatprep.subr.bf16.mxu0 %v7665_v40  ;;  %v7741_v39 = vld [vmem:[#allocation3 + $0x430] ss:$28 sps:$4 sm:$0xff]   ;;  %v7744_v40 = vld [vmem:[#allocation3 + $0x820] ss:$28 sps:$4 sm:$0xff]  }
  0x95   :  { %2504 = vmatprep.subr.bf16.mxu1 %v7668_v42  ;;  %v7749_v42 = vld [vmem:[#allocation3 + $0x3fc] ss:$28 sps:$4 sm:$0xff]  }
  0x97   :  { %2427 = vmatpush1.bf16.msra.mxu0 %v7663_v43  ;;  %v7752_v43 = vld [vmem:[#allocation3 + $0x7ec] ss:$28 sps:$4 sm:$0xff]  }
  0x98   :  { %2505 = vmatpush1.bf16.msra.mxu1 %v7666_v44  ;;  %2428 = vmatprep.subr.bf16.mxu0 %v7671_v45  ;;  %v7747_v44 = vld [vmem:[#allocation3 + $0x3f8] ss:$28 sps:$4 sm:$0xff]   ;;  %v7750_v45 = vld [vmem:[#allocation3 + $0x7e8] ss:$28 sps:$4 sm:$0xff]  }
  0x99   :  { %2506 = vmatprep.subr.bf16.mxu1 %v7674_v46  ;;  %v7755_v46 = vld [vmem:[#allocation3 + $0x3c4] ss:$28 sps:$4 sm:$0xff]  }
  0x9b   :  { %2429 = vmatpush2.bf16.msra.mxu0 %v7669_v47  ;;  %v7758_v47 = vld [vmem:[#allocation3 + $0x7b4] ss:$28 sps:$4 sm:$0xff]  }
  0x9c   :  { %2507 = vmatpush1.bf16.msra.mxu1 %v7672_v49  ;;  %2430 = vmatprep.subr.bf16.mxu0 %v7677_v50  ;;  %v7753_v49 = vld [vmem:[#allocation3 + $0x3c0] ss:$28 sps:$4 sm:$0xff]   ;;  %v7756_v50 = vld [vmem:[#allocation3 + $0x7b0] ss:$28 sps:$4 sm:$0xff]  }
  0x9d   :  { %2508 = vmatprep.subr.bf16.mxu1 %v7680_v51  ;;  %v7761_v51 = vld [vmem:[#allocation3 + $0x38c] ss:$28 sps:$4 sm:$0xff]  }
  0x9f   :  { %2431 = vmatpush2.bf16.msra.mxu0 %v7675_v53  ;;  %v7764_v53 = vld [vmem:[#allocation3 + $0x77c] ss:$28 sps:$4 sm:$0xff]  }
  0xa0   :  { %2509 = vmatpush1.bf16.msra.mxu1 %v7678_v54  ;;  %2432 = vmatprep.subr.bf16.mxu0 %v7683_v55  ;;  %v7759_v54 = vld [vmem:[#allocation3 + $0x388] ss:$28 sps:$4 sm:$0xff]   ;;  %v7762_v55 = vld [vmem:[#allocation3 + $0x778] ss:$28 sps:$4 sm:$0xff]  }
  0xa1   :  { %2510 = vmatprep.subr.bf16.mxu1 %v7686_v56  ;;  %v7767_v56 = vld [vmem:[#allocation3 + $0x6d4] ss:$28 sps:$4 sm:$0xff]  }
  0xa3   :  { %2433 = vmatpush2.bf16.msra.mxu0 %v7681_v57  ;;  %v7770_v57 = vld [vmem:[#allocation3 + $0x744] ss:$28 sps:$4 sm:$0xff]  }
  0xa4   :  { %2511 = vmatpush2.bf16.msra.mxu1 %v7684_v58  ;;  %2434 = vmatprep.subr.bf16.mxu0 %v7689_v59  ;;  %v7765_v58 = vld [vmem:[#allocation3 + $0x6d0] ss:$28 sps:$4 sm:$0xff]   ;;  %v7768_v59 = vld [vmem:[#allocation3 + $0x740] ss:$28 sps:$4 sm:$0xff]  }
  0xa5   :  { %2512 = vmatprep.subr.bf16.mxu1 %v7692_v60  ;;  %v7773_v60 = vld [vmem:[#allocation3 + $0x69c] ss:$28 sps:$4 sm:$0xff]  }
  0xa7   :  { %2435 = vmatpush2.bf16.msra.mxu0 %v7687_v61  ;;  %v7776_v61 = vld [vmem:[#allocation3 + $0x70c] ss:$28 sps:$4 sm:$0xff]  }
  0xa8   :  { %2513 = vmatpush2.bf16.msra.mxu1 %v7690_v62  ;;  %2436 = vmatprep.subr.bf16.mxu0 %v7695_v63  ;;  %v7771_v62 = vld [vmem:[#allocation3 + $0x698] ss:$28 sps:$4 sm:$0xff]   ;;  %v7774_v63 = vld [vmem:[#allocation3 + $0x708] ss:$28 sps:$4 sm:$0xff]  }
  0xa9   :  { %2514 = vmatprep.subr.bf16.mxu1 %v7698_v0  ;;  %v7779_v0 = vld [vmem:[#allocation3 + $0x664] ss:$28 sps:$4 sm:$0xff]  }
  0xab   :  { %2437 = vmatpush2.bf16.msra.mxu0 %v7693_v1  ;;  %v7782_v1 = vld [vmem:[#allocation3 + $0xa54] ss:$28 sps:$4 sm:$0xff]  }
  0xac   :  { %2515 = vmatpush2.bf16.msra.mxu1 %v7696_v2  ;;  %2438 = vmatprep.subr.bf16.mxu0 %v7701_v3  ;;  %v7777_v2 = vld [vmem:[#allocation3 + $0x660] ss:$28 sps:$4 sm:$0xff]   ;;  %v7780_v3 = vld [vmem:[#allocation3 + $0xa50] ss:$28 sps:$4 sm:$0xff]  }
  0xad   :  { %2516 = vmatprep.subr.bf16.mxu1 %v7704_v4  ;;  %v7785_v4 = vld [vmem:[#allocation3 + $0x62c] ss:$28 sps:$4 sm:$0xff]  }
  0xaf   :  { %2439 = vmatpush2.bf16.msra.mxu0 %v7699_v5  ;;  %v7788_v5 = vld [vmem:[#allocation3 + $0xa1c] ss:$28 sps:$4 sm:$0xff]  }
  0xb0   :  { %2517 = vmatpush2.bf16.msra.mxu1 %v7702_v6  ;;  %2440 = vmatprep.subr.bf16.mxu0 %v7707_v7  ;;  %v7783_v6 = vld [vmem:[#allocation3 + $0x628] ss:$28 sps:$4 sm:$0xff]   ;;  %v7786_v7 = vld [vmem:[#allocation3 + $0xa18] ss:$28 sps:$4 sm:$0xff]  }
  0xb1   :  { %2518 = vmatprep.subr.bf16.mxu1 %v7710_v9  ;;  %v7791_v9 = vld [vmem:[#allocation3 + $0x5f4] ss:$28 sps:$4 sm:$0xff]  }
  0xb3   :  { %2441 = vmatpush2.bf16.msra.mxu0 %v7705_v11  ;;  %v7794_v11 = vld [vmem:[#allocation3 + $0x9e4] ss:$28 sps:$4 sm:$0xff]  }
  0xb4   :  { %2519 = vmatpush2.bf16.msra.mxu1 %v7708_v12  ;;  %2442 = vmatprep.subr.bf16.mxu0 %v7713_v13  ;;  %v7789_v12 = vld [vmem:[#allocation3 + $0x5f0] ss:$28 sps:$4 sm:$0xff]   ;;  %v7792_v13 = vld [vmem:[#allocation3 + $0x9e0] ss:$28 sps:$4 sm:$0xff]  }
  0xb5   :  { %2520 = vmatprep.subr.bf16.mxu1 %v7716_v14  ;;  %v7797_v14 = vld [vmem:[#allocation3 + $0x5bc] ss:$28 sps:$4 sm:$0xff]  }
  0xb7   :  { %2443 = vmatpush2.bf16.msra.mxu0 %v7711_v15  ;;  %v7800_v15 = vld [vmem:[#allocation3 + $0x9ac] ss:$28 sps:$4 sm:$0xff]  }
  0xb8   :  { %2521 = vmatpush2.bf16.msra.mxu1 %v7714_v16  ;;  %2535 = vmatprep.subr.bf16.mxu0 %v7722_v20  ;;  %v7795_v16 = vld [vmem:[#allocation3 + $0x5b8] ss:$28 sps:$4 sm:$0xff]  }
  0xb9   :  { %2522 = vmatprep.subr.bf16.mxu1 %v7719_v18  ;;  %v7803_v18 = vld [vmem:[#allocation3 + $0x584] ss:$28 sps:$4 sm:$0xff]   ;;  %v7806_v20 = vld [vmem:[#allocation3 + $0x974] ss:$28 sps:$4 sm:$0xff]  }
  0xba   :  { %2445 = vmatmul.mubr.bf16.vlgmr.msra.gmra.mxu0 %v8783_v22 }
  0xbb   :  { %2536 = vmatpush1.bf16.msra.mxu0 %v7720_v24  ;;  %2567 = vmatprep.mubr.bf16.mxu0 %v8749_v52  ;;  %v7804_v24 = vld [vmem:[#allocation3 + $0x970] ss:$28 sps:$4 sm:$0xff]  }
  0xbc   :  { %2523 = vmatpush2.bf16.msra.mxu1 %v7717_v23  ;;  %2537 = vmatprep.subr.bf16.mxu0 %v7728_v26  ;;  %v7801_v23 = vld [vmem:[#allocation3 + $0x580] ss:$28 sps:$4 sm:$0xff]  }
  0xbd   :  { %2524 = vmatprep.subr.bf16.mxu1 %v7725_v25  ;;  %v7809_v25 = vld [vmem:[#allocation3 + $0x54c] ss:$28 sps:$4 sm:$0xff]   ;;  %v7812_v26 = vld [vmem:[#allocation3 + $0x93c] ss:$28 sps:$4 sm:$0xff]  }
  0xbf   :  { %2538 = vmatpush1.bf16.msra.mxu0 %v7726_v28  ;;  %v7810_v28 = vld [vmem:[#allocation3 + $0x938] ss:$28 sps:$4 sm:$0xff]  }
  0xc0   :  { %2525 = vmatpush2.bf16.msra.mxu1 %v7723_v27  ;;  %2539 = vmatprep.subr.bf16.mxu0 %v7731_v29  ;;  %v7807_v27 = vld [vmem:[#allocation3 + $0x548] ss:$28 sps:$4 sm:$0xff]  }
  0xc1   :  { %2576 = vmatprep.subr.bf16.mxu1 %v7734_v30  ;;  %v7815_v29 = vld [vmem:[#allocation3 + $0x904] ss:$28 sps:$4 sm:$0xff]   ;;  %v7818_v30 = vld [vmem:[#allocation3 + $0x19c] ss:$28 sps:$4 sm:$0xff]  }
  0xc3   :  { %2527 = vmatmul.mubr.bf16.vlgmr.msra.gmra.mxu1 %v8759_v8  ;;  %2540 = vmatpush1.bf16.msra.mxu0 %v7729_v31  ;;  %v7813_v31 = vld [vmem:[#allocation3 + $0x900] ss:$28 sps:$4 sm:$0xff]  }
  0xc4   :  { %2577 = vmatpush1.bf16.msra.mxu1 %v7732_v32  ;;  %2541 = vmatprep.subr.bf16.mxu0 %v7737_v33  ;;  %v7816_v32 = vld [vmem:[#allocation3 + $0x198] ss:$28 sps:$4 sm:$0xff]   ;;  %v7821_v33 = vld [vmem:[#allocation3 + $0x8cc] ss:$28 sps:$4 sm:$0xff]  }
  0xc5   :  { %2578 = vmatprep.subr.bf16.mxu1 %v7740_v34  ;;  %2608 = vmatprep.mubr.bf16.mxu1 %v8777_v41  ;;  %v7824_v34 = vld [vmem:[#allocation3 + $0x164] ss:$28 sps:$4 sm:$0xff]  }
  0xc7   :  { %2542 = vmatpush1.bf16.msra.mxu0 %v7735_v35  ;;  %v7819_v35 = vld [vmem:[#allocation3 + $0x8c8] ss:$28 sps:$4 sm:$0xff]  }
  0xc8   :  { %2579 = vmatpush1.bf16.msra.mxu1 %v7738_v36  ;;  %2543 = vmatprep.subr.bf16.mxu0 %v7743_v37  ;;  %v7822_v36 = vld [vmem:[#allocation3 + $0x160] ss:$28 sps:$4 sm:$0xff]  }
  0xc9   :  { %2580 = vmatprep.subr.bf16.mxu1 %v7746_v38  ;;  %v7827_v37 = vld [vmem:[#allocation3 + $0xac4] ss:$28 sps:$4 sm:$0xff]   ;;  %v7830_v38 = vld [vmem:[#allocation3 + $0x12c] ss:$28 sps:$4 sm:$0xff]  }
  0xcb   :  { %2544 = vmatpush1.bf16.msra.mxu0 %v7741_v39  ;;  %v7825_v39 = vld [vmem:[#allocation3 + $0xac0] ss:$28 sps:$4 sm:$0xff]  }
  0xcc   :  { %2581 = vmatpush1.bf16.msra.mxu1 %v7744_v40  ;;  %2545 = vmatprep.subr.bf16.mxu0 %v7749_v42  ;;  %v7828_v40 = vld [vmem:[#allocation3 + $0x128] ss:$28 sps:$4 sm:$0xff]  }
  0xcd   :  { %2582 = vmatprep.subr.bf16.mxu1 %v7752_v43  ;;  %v7833_v42 = vld [vmem:[#allocation3 + $0xa8c] ss:$28 sps:$4 sm:$0xff]   ;;  %v7836_v43 = vld [vmem:[#allocation3 + $0xf4] ss:$28 sps:$4 sm:$0xff]  }
  0xcf   :  { %2546 = vmatpush1.bf16.msra.mxu0 %v7747_v44  ;;  %v7831_v44 = vld [vmem:[#allocation3 + $0xa88] ss:$28 sps:$4 sm:$0xff]  }
  0xd0   :  { %2583 = vmatpush1.bf16.msra.mxu1 %v7750_v45  ;;  %2547 = vmatprep.subr.bf16.mxu0 %v7755_v46  ;;  %v7834_v45 = vld [vmem:[#allocation3 + $0xf0] ss:$28 sps:$4 sm:$0xff]   ;;  %v7839_v46 = vld [vmem:[#allocation3 + $0xbc] ss:$28 sps:$4 sm:$0xff]  }
  0xd1   :  { %2584 = vmatprep.subr.bf16.mxu1 %v7758_v47  ;;  %v7842_v47 = vld [vmem:[#allocation3 + $0x51c] ss:$28 sps:$4 sm:$0xff]  }
  0xd3   :  { %2548 = vmatpush1.bf16.msra.mxu0 %v7753_v49  ;;  %v7837_v49 = vld [vmem:[#allocation3 + $0xb8] ss:$28 sps:$4 sm:$0xff]  }
  0xd4   :  { %2585 = vmatpush1.bf16.msra.mxu1 %v7756_v50  ;;  %2549 = vmatprep.subr.bf16.mxu0 %v7761_v51  ;;  %v7840_v50 = vld [vmem:[#allocation3 + $0x518] ss:$28 sps:$4 sm:$0xff]   ;;  %v7845_v51 = vld [vmem:[#allocation3 + $0x84] ss:$28 sps:$4 sm:$0xff]  }
  0xd5   :  { %2586 = vmatprep.subr.bf16.mxu1 %v7764_v53  ;;  %v7848_v53 = vld [vmem:[#allocation3 + $0x4e4] ss:$28 sps:$4 sm:$0xff]  }
  0xd7   :  { %2550 = vmatpush1.bf16.msra.mxu0 %v7759_v54  ;;  %v7843_v54 = vld [vmem:[#allocation3 + $0x80] ss:$28 sps:$4 sm:$0xff]  }
  0xd8   :  { %2587 = vmatpush1.bf16.msra.mxu1 %v7762_v55  ;;  %2551 = vmatprep.subr.bf16.mxu0 %v7767_v56  ;;  %v7846_v55 = vld [vmem:[#allocation3 + $0x4e0] ss:$28 sps:$4 sm:$0xff]   ;;  %v7851_v56 = vld [vmem:[#allocation3 + $0x4c] ss:$28 sps:$4 sm:$0xff]  }
  0xd9   :  { %2588 = vmatprep.subr.bf16.mxu1 %v7770_v57  ;;  %v7854_v57 = vld [vmem:[#allocation3 + $0x4ac] ss:$28 sps:$4 sm:$0xff]  }
  0xdb   :  { %2552 = vmatpush2.bf16.msra.mxu0 %v7765_v58  ;;  %v7849_v58 = vld [vmem:[#allocation3 + $0x48] ss:$28 sps:$4 sm:$0xff]  }
  0xdc   :  { %2589 = vmatpush1.bf16.msra.mxu1 %v7768_v59  ;;  %2553 = vmatprep.subr.bf16.mxu0 %v7773_v60  ;;  %v7852_v59 = vld [vmem:[#allocation3 + $0x4a8] ss:$28 sps:$4 sm:$0xff]   ;;  %v491_v60 = vlaneseq }
  0xdd   :  { %2590 = vmatprep.subr.bf16.mxu1 %v7776_v61  ;;  %v7857_v61 = vld [vmem:[#allocation3 + $0x14] ss:$28 sps:$4 sm:$0xff]  }
  0xdf   :  { %2554 = vmatpush2.bf16.msra.mxu0 %v7771_v62  ;;  %v7860_v62 = vld [vmem:[#allocation3 + $0x474] ss:$28 sps:$4 sm:$0xff]  }
  0xe0   :  { %2591 = vmatpush1.bf16.msra.mxu1 %v7774_v63  ;;  %2555 = vmatprep.subr.bf16.mxu0 %v7779_v0  ;;  %v7855_v63 = vld [vmem:[#allocation3 + $0x10] ss:$28 sps:$4 sm:$0xff]   ;;  %v8796_v0 = vshrl.u32 %v491_v60, 7 }
  0xe1   :  { %2592 = vmatprep.subr.bf16.mxu1 %v7782_v1  ;;  %v7858_v1 = vld [vmem:[#allocation3 + $0x470] ss:$28 sps:$4 sm:$0xff]  }
  0xe2   :  { %v7923_v60 = vld [vmem:[#allocation3 + $0x58c] ss:$28 sps:$4 sm:$0xff]  }
  0xe3   :  { %2556 = vmatpush2.bf16.msra.mxu0 %v7777_v2  ;;  %v7863_v2 = vld [vmem:[#allocation3 + $0x35c] ss:$28 sps:$4 sm:$0xff]  }
  0xe4   :  { %2593 = vmatpush2.bf16.msra.mxu1 %v7780_v3  ;;  %2557 = vmatprep.subr.bf16.mxu0 %v7785_v4  ;;  %v7866_v3 = vld [vmem:[#allocation3 + $0x43c] ss:$28 sps:$4 sm:$0xff]  }
  0xe5   :  { %2594 = vmatprep.subr.bf16.mxu1 %v7788_v5  ;;  %v7861_v4 = vld [vmem:[#allocation3 + $0x358] ss:$28 sps:$4 sm:$0xff]  }
  0xe6   :  { %v7864_v5 = vld [vmem:[#allocation3 + $0x438] ss:$28 sps:$4 sm:$0xff]  }
  0xe7   :  { %2558 = vmatpush2.bf16.msra.mxu0 %v7783_v6  ;;  %v7869_v6 = vld [vmem:[#allocation3 + $0x324] ss:$28 sps:$4 sm:$0xff]  }
  0xe8   :  { %2595 = vmatpush2.bf16.msra.mxu1 %v7786_v7  ;;  %2559 = vmatprep.subr.bf16.mxu0 %v7791_v9  ;;  %v7872_v7 = vld [vmem:[#allocation3 + $0x404] ss:$28 sps:$4 sm:$0xff]  }
  0xe9   :  { %2596 = vmatprep.subr.bf16.mxu1 %v7794_v11  ;;  %v7867_v9 = vld [vmem:[#allocation3 + $0x320] ss:$28 sps:$4 sm:$0xff]  }
  0xea   :  { %v7870_v11 = vld [vmem:[#allocation3 + $0x400] ss:$28 sps:$4 sm:$0xff]  }
  0xeb   :  { %2560 = vmatpush2.bf16.msra.mxu0 %v7789_v12  ;;  %v7875_v12 = vld [vmem:[#allocation3 + $0x2ec] ss:$28 sps:$4 sm:$0xff]  }
  0xec   :  { %2597 = vmatpush2.bf16.msra.mxu1 %v7792_v13  ;;  %2561 = vmatprep.subr.bf16.mxu0 %v7797_v14  ;;  %v7878_v13 = vld [vmem:[#allocation3 + $0x3cc] ss:$28 sps:$4 sm:$0xff]  }
  0xed   :  { %2598 = vmatprep.subr.bf16.mxu1 %v7800_v15  ;;  %v7873_v14 = vld [vmem:[#allocation3 + $0x2e8] ss:$28 sps:$4 sm:$0xff]  }
  0xee   :  { %v7876_v15 = vld [vmem:[#allocation3 + $0x3c8] ss:$28 sps:$4 sm:$0xff]  }
  0xef   :  { %2562 = vmatpush2.bf16.msra.mxu0 %v7795_v16  ;;  %v7881_v16 = vld [vmem:[#allocation3 + $0x2b4] ss:$28 sps:$4 sm:$0xff]  }
  0xf0   :  { %2599 = vmatpush2.bf16.msra.mxu1 %v7798_v17  ;;  %2563 = vmatprep.subr.bf16.mxu0 %v7803_v18  ;;  %v7884_v17 = vld [vmem:[#allocation3 + $0x394] ss:$28 sps:$4 sm:$0xff]  }
  0xf1   :  { %2600 = vmatprep.subr.bf16.mxu1 %v7806_v20  ;;  %v7879_v18 = vld [vmem:[#allocation3 + $0x2b0] ss:$28 sps:$4 sm:$0xff]  }
  0xf2   :  { %v7882_v20 = vld [vmem:[#allocation3 + $0x390] ss:$28 sps:$4 sm:$0xff]  }
  0xf3   :  { %2564 = vmatpush2.bf16.msra.mxu0 %v7801_v23  ;;  %v7887_v23 = vld [vmem:[#allocation3 + $0x27c] ss:$28 sps:$4 sm:$0xff]  }
  0xf4   :  { %2601 = vmatpush2.bf16.msra.mxu1 %v7804_v24  ;;  %2565 = vmatprep.subr.bf16.mxu0 %v7809_v25  ;;  %v7890_v24 = vld [vmem:[#allocation3 + $0x6dc] ss:$28 sps:$4 sm:$0xff]  }
  0xf5   :  { %2602 = vmatprep.subr.bf16.mxu1 %v7812_v26  ;;  %v7885_v25 = vld [vmem:[#allocation3 + $0x278] ss:$28 sps:$4 sm:$0xff]  }
  0xf6   :  { %v7888_v26 = vld [vmem:[#allocation3 + $0x6d8] ss:$28 sps:$4 sm:$0xff]  }
  0xf7   :  { %2566 = vmatpush2.bf16.msra.mxu0 %v7807_v27  ;;  %v7893_v27 = vld [vmem:[#allocation3 + $0x244] ss:$28 sps:$4 sm:$0xff]  }
  0xf8   :  { %2603 = vmatpush2.bf16.msra.mxu1 %v7810_v28  ;;  %2658 = vmatprep.subr.bf16.mxu0 %v7818_v30  ;;  %v7896_v28 = vld [vmem:[#allocation3 + $0x6a4] ss:$28 sps:$4 sm:$0xff]  }
  0xf9   :  { %2604 = vmatprep.subr.bf16.mxu1 %v7815_v29  ;;  %v7891_v29 = vld [vmem:[#allocation3 + $0x240] ss:$28 sps:$4 sm:$0xff]  }
  0xfa   :  { %2568 = vmatmul.mubr.bf16.vlgmr.msra.gmra.mxu0 %v8761_v10  ;;  %v7894_v30 = vld [vmem:[#allocation3 + $0x6a0] ss:$28 sps:$4 sm:$0xff]  }
  0xfb   :  { %2659 = vmatpush1.bf16.msra.mxu0 %v7816_v32  ;;  %2690 = vmatprep.mubr.bf16.mxu0 %v8744_v48  ;;  %v7902_v32 = vld [vmem:[#allocation3 + $0x66c] ss:$28 sps:$4 sm:$0xff]  }
  0xfc   :  { %2605 = vmatpush2.bf16.msra.mxu1 %v7813_v31  ;;  %2660 = vmatprep.subr.bf16.mxu0 %v7824_v34  ;;  %v7899_v31 = vld [vmem:[#allocation3 + $0x20c] ss:$28 sps:$4 sm:$0xff]  }
  0xfd   :  { %2606 = vmatprep.subr.bf16.mxu1 %v7821_v33  ;;  %v7897_v33 = vld [vmem:[#allocation3 + $0x208] ss:$28 sps:$4 sm:$0xff]  }
  0xfe   :  { %v7900_v34 = vld [vmem:[#allocation3 + $0x668] ss:$28 sps:$4 sm:$0xff]  }
  0xff   :  { %2661 = vmatpush1.bf16.msra.mxu0 %v7822_v36  ;;  %v7908_v36 = vld [vmem:[#allocation3 + $0x634] ss:$28 sps:$4 sm:$0xff]  }
 0x100   :  { %2607 = vmatpush2.bf16.msra.mxu1 %v7819_v35  ;;  %2662 = vmatprep.subr.bf16.mxu0 %v7830_v38  ;;  %v7905_v35 = vld [vmem:[#allocation3 + $0x1d4] ss:$28 sps:$4 sm:$0xff]  }
 0x101   :  { %2629 = vmatprep.subr.bf16.mxu1 %v7827_v37  ;;  %v7903_v37 = vld [vmem:[#allocation3 + $0x1d0] ss:$28 sps:$4 sm:$0xff]  }
 0x102   :  { %v7906_v38 = vld [vmem:[#allocation3 + $0x630] ss:$28 sps:$4 sm:$0xff]  }
 0x103   :  { %2609 = vmatmul.mubr.bf16.vlgmr.msra.gmra.mxu1 %v8783_v22  ;;  %2663 = vmatpush1.bf16.msra.mxu0 %v7828_v40  ;;  %v493_v40 = vsub.s32 0, %v8796_v0 }
 0x104   :  { %2630 = vmatpush1.bf16.msra.mxu1 %v7825_v39  ;;  %2664 = vmatprep.subr.bf16.mxu0 %v7836_v43  ;;  %v489_v39 = vld [vmem:[#allocation6] sm:$0x7f]  ;;  %v7914_v43 = vld [vmem:[#allocation3 + $0x89c] ss:$28 sps:$4 sm:$0xff]  }
 0x105   :  { %2631 = vmatprep.subr.bf16.mxu1 %v7833_v42  ;;  %2649 = vmatprep.mubr.bf16.mxu1 %v8695_v19  ;;  %v7911_v42 = vld [vmem:[#allocation3 + $0x5fc] ss:$28 sps:$4 sm:$0xff]  }
 0x107   :  { %2665 = vmatpush1.bf16.msra.mxu0 %v7834_v45  ;;  %v494_v45 = vrot.slane %v489_v39, %v493_v40 }
 0x108   :  { %2632 = vmatpush1.bf16.msra.mxu1 %v7831_v44  ;;  %2666 = vmatprep.subr.bf16.mxu0 %v7839_v46  ;;  %v497_v44 = vsub.s32 1, %v8796_v0  ;;  %v7909_v46 = vld [vmem:[#allocation3 + $0x5f8] ss:$28 sps:$4 sm:$0xff]  }
 0x109   :  { %2699 = vmatprep.subr.bf16.mxu1 %v7842_v47  ;;  %v7912_v47 = vld [vmem:[#allocation3 + $0x898] ss:$28 sps:$4 sm:$0xff]  }
 0x10b   :  { %6871 = vmatmul.mubr.msk.bf16.vlgmr.msra.gmra.mxu1 %vm2326_vm0, %v8769_v21  ;;  %2667 = vmatpush1.bf16.msra.mxu0 %v7837_v49  ;;  %v7917_v49 = vld [vmem:[#allocation3 + $0x5c4] ss:$28 sps:$4 sm:$0xff]  }
 0x10c   :  { %2700 = vmatpush1.bf16.msra.mxu1 %v7840_v50  ;;  %2668 = vmatprep.subr.bf16.mxu0 %v7845_v51  ;;  %v7920_v50 = vld [vmem:[#allocation3 + $0x864] ss:$28 sps:$4 sm:$0xff]   ;;  %v498_v51 = vrot.slane %v489_v39, %v497_v44  ;;  %v7955_v39 = vld [vmem:[#allocation3 + $0xa58] ss:$28 sps:$4 sm:$0xff]  }
 0x10d   :  { %2701 = vmatprep.subr.bf16.mxu1 %v7848_v53  ;;  %2731 = vmatprep.mubr.bf16.mxu1 %v8749_v52 }
 0x10f   :  { %2669 = vmatpush1.bf16.msra.mxu0 %v7843_v54 }
 0x110   :  { %2702 = vmatpush1.bf16.msra.mxu1 %v7846_v55  ;;  %2670 = vmatprep.subr.bf16.mxu0 %v7851_v56  ;;  %v7915_v56 = vld [vmem:[#allocation3 + $0x5c0] ss:$28 sps:$4 sm:$0xff]  }
 0x111   :  { %2703 = vmatprep.subr.bf16.mxu1 %v7854_v57  ;;  %v7918_v57 = vld [vmem:[#allocation3 + $0x860] ss:$28 sps:$4 sm:$0xff]  }
 0x113   :  { %2671 = vmatpush1.bf16.msra.mxu0 %v7849_v58 }
 0x114   :  { %2704 = vmatpush1.bf16.msra.mxu1 %v7852_v59  ;;  %2672 = vmatprep.subr.bf16.mxu0 %v7857_v61  ;;  %v7926_v61 = vld [vmem:[#allocation3 + $0x82c] ss:$28 sps:$4 sm:$0xff]  }
 0x115   :  { %2705 = vmatprep.subr.bf16.mxu1 %v7860_v62 }
 0x117   :  { %2673 = vmatpush1.bf16.msra.mxu0 %v7855_v63 }
 0x118   :  { %2706 = vmatpush1.bf16.msra.mxu1 %v7858_v1  ;;  %2674 = vmatprep.subr.bf16.mxu0 %v7863_v2 }
 0x119   :  { %2707 = vmatprep.subr.bf16.mxu1 %v7866_v3 }
 0x11b   :  { %2675 = vmatpush2.bf16.msra.mxu0 %v7861_v4  ;;  %v7921_v4 = vld [vmem:[#allocation3 + $0x588] ss:$28 sps:$4 sm:$0xff]  }
 0x11c   :  { %2708 = vmatpush1.bf16.msra.mxu1 %v7864_v5  ;;  %2676 = vmatprep.subr.bf16.mxu0 %v7869_v6  ;;  %v7924_v5 = vld [vmem:[#allocation3 + $0x828] ss:$28 sps:$4 sm:$0xff]  }
 0x11d   :  { %2709 = vmatprep.subr.bf16.mxu1 %v7872_v7 }
 0x11f   :  { %2677 = vmatpush2.bf16.msra.mxu0 %v7867_v9  ;;  %v7929_v9 = vld [vmem:[#allocation3 + $0x554] ss:$28 sps:$4 sm:$0xff]  }
 0x120   :  { %2710 = vmatpush1.bf16.msra.mxu1 %v7870_v11  ;;  %2678 = vmatprep.subr.bf16.mxu0 %v7875_v12  ;;  %v7932_v11 = vld [vmem:[#allocation3 + $0x7f4] ss:$28 sps:$4 sm:$0xff]  }
 0x121   :  { %2711 = vmatprep.subr.bf16.mxu1 %v7878_v13  ;;  %v7927_v13 = vld [vmem:[#allocation3 + $0x550] ss:$28 sps:$4 sm:$0xff]  }
 0x123   :  { %2679 = vmatpush2.bf16.msra.mxu0 %v7873_v14  ;;  %v7930_v14 = vld [vmem:[#allocation3 + $0x7f0] ss:$28 sps:$4 sm:$0xff]  }
 0x124   :  { %2712 = vmatpush1.bf16.msra.mxu1 %v7876_v15  ;;  %2680 = vmatprep.subr.bf16.mxu0 %v7881_v16  ;;  %v7935_v16 = vld [vmem:[#allocation3 + $0x7bc] ss:$28 sps:$4 sm:$0xff]  }
 0x125   :  { %2713 = vmatprep.subr.bf16.mxu1 %v7884_v17  ;;  %v7938_v17 = vld [vmem:[#allocation3 + $0xacc] ss:$28 sps:$4 sm:$0xff]  }
 0x127   :  { %2681 = vmatpush2.bf16.msra.mxu0 %v7879_v18 }
 0x128   :  { %2714 = vmatpush1.bf16.msra.mxu1 %v7882_v20  ;;  %2682 = vmatprep.subr.bf16.mxu0 %v7887_v23  ;;  %v7933_v20 = vld [vmem:[#allocation3 + $0x7b8] ss:$28 sps:$4 sm:$0xff]   ;;  %v7936_v23 = vld [vmem:[#allocation3 + $0xac8] ss:$28 sps:$4 sm:$0xff]  }
 0x129   :  { %2715 = vmatprep.subr.bf16.mxu1 %v7890_v24 }
 0x12b   :  { %2683 = vmatpush2.bf16.msra.mxu0 %v7885_v25  ;;  %v7941_v25 = vld [vmem:[#allocation3 + $0x784] ss:$28 sps:$4 sm:$0xff]  }
 0x12c   :  { %2716 = vmatpush2.bf16.msra.mxu1 %v7888_v26  ;;  %2684 = vmatprep.subr.bf16.mxu0 %v7893_v27  ;;  %v7944_v26 = vld [vmem:[#allocation3 + $0xa94] ss:$28 sps:$4 sm:$0xff]   ;;  %v7939_v27 = vld [vmem:[#allocation3 + $0x780] ss:$28 sps:$4 sm:$0xff]  }
 0x12d   :  { %2717 = vmatprep.subr.bf16.mxu1 %v7896_v28  ;;  %v7942_v28 = vld [vmem:[#allocation3 + $0xa90] ss:$28 sps:$4 sm:$0xff]  }
 0x12f   :  { %2685 = vmatpush2.bf16.msra.mxu0 %v7891_v29  ;;  %v7947_v29 = vld [vmem:[#allocation3 + $0x74c] ss:$28 sps:$4 sm:$0xff]  }
 0x130   :  { %2718 = vmatpush2.bf16.msra.mxu1 %v7894_v30  ;;  %2686 = vmatprep.subr.bf16.mxu0 %v7899_v31  ;;  %v7948_v30 = vld [vmem:[#allocation3 + $0x360] ss:$28 sps:$4 sm:$0xff]   ;;  %v7945_v31 = vld [vmem:[#allocation3 + $0x748] ss:$28 sps:$4 sm:$0xff]  }
 0x131   :  { %2719 = vmatprep.subr.bf16.mxu1 %v7902_v32  ;;  %v7949_v32 = vld [vmem:[#allocation3 + $0x1a0] ss:$28 sps:$4 sm:$0xff]  }
 0x133   :  { %2687 = vmatpush2.bf16.msra.mxu0 %v7897_v33  ;;  %v7952_v33 = vld [vmem:[#allocation3 + $0x714] ss:$28 sps:$4 sm:$0xff]  }
 0x134   :  { %2720 = vmatpush2.bf16.msra.mxu1 %v7900_v34  ;;  %2688 = vmatprep.subr.bf16.mxu0 %v7905_v35  ;;  %v7953_v34 = vld [vmem:[#allocation3 + $0x328] ss:$28 sps:$4 sm:$0xff]   ;;  %v7950_v35 = vld [vmem:[#allocation3 + $0x710] ss:$28 sps:$4 sm:$0xff]  }
 0x135   :  { %2721 = vmatprep.subr.bf16.mxu1 %v7908_v36  ;;  %v7954_v36 = vld [vmem:[#allocation3 + $0x168] ss:$28 sps:$4 sm:$0xff]  }
 0x137   :  { %2689 = vmatpush2.bf16.msra.mxu0 %v7903_v37  ;;  %v7957_v37 = vld [vmem:[#allocation3 + $0xa5c] ss:$28 sps:$4 sm:$0xff]  }
 0x138   :  { %2722 = vmatpush2.bf16.msra.mxu1 %v7906_v38  ;;  %2740 = vmatprep.subr.bf16.mxu0 %v7914_v43  ;;  %v7958_v38 = vld [vmem:[#allocation3 + $0x2f0] ss:$28 sps:$4 sm:$0xff]   ;;  %v7962_v43 = vld [vmem:[#allocation3 + $0xa24] ss:$28 sps:$4 sm:$0xff]  }
 0x139   :  { %2723 = vmatprep.subr.bf16.mxu1 %v7911_v42  ;;  %v7959_v42 = vld [vmem:[#allocation3 + $0x130] ss:$28 sps:$4 sm:$0xff]  }
 0x13a   :  { %v2364_v53 = vpop.f32.mrf.mxu0  ;;  %2691 = vmatmul.mubr.bf16.vlgmr.msra.gmra.mxu0 %v8759_v8 }
 0x13b   :  { %v2405_v54 = vpop.f32.mrf.mxu1  ;;  %v2365_v55 = vadd.f32 %v2364_v53, %v494_v45  ;;  %2741 = vmatpush1.bf16.msra.mxu0 %v7912_v47  ;;  %2772 = vmatprep.mubr.bf16.mxu0 %v8777_v41  ;;  %v7963_v45 = vld [vmem:[#allocation3 + $0x2b8] ss:$28 sps:$4 sm:$0xff]   ;;  %v7969_v53 = vld [vmem:[#allocation3 + $0xc0] ss:$28 sps:$4 sm:$0xff]  }
 0x13c   :  { %2724 = vmatpush2.bf16.msra.mxu1 %v7909_v46  ;;  %v2366_v58 = vpop.f32.mrf.mxu0  ;;  %2742 = vmatprep.subr.bf16.mxu0 %v7920_v50  ;;  %v7960_v46 = vld [vmem:[#allocation3 + $0xa20] ss:$28 sps:$4 sm:$0xff]   ;;  %v7964_v47 = vld [vmem:[#allocation3 + $0xf8] ss:$28 sps:$4 sm:$0xff]  }
 0x13d   :  { %v2407_v59 = vpop.f32.mrf.mxu1  ;;  %2725 = vmatprep.subr.bf16.mxu1 %v7917_v49  ;;  %v8805_v62 = vadd.f32 %v2405_v54, %v2365_v55  ;;  %v2367_v63 = vadd.f32 %v2366_v58, %v498_v51  ;;  %v7967_v49 = vld [vmem:[#allocation3 + $0x9ec] ss:$28 sps:$4 sm:$0xff]   ;;  %v7968_v50 = vld [vmem:[#allocation3 + $0x280] ss:$28 sps:$4 sm:$0xff]   ;;  %v7972_v54 = vld [vmem:[#allocation3 + $0x9b4] ss:$28 sps:$4 sm:$0xff]  }
 0x13e   :  { %v2368_v1 = vpop.f32.mrf.mxu0  ;;  %v7965_v51 = vld [vmem:[#allocation3 + $0x9e8] ss:$28 sps:$4 sm:$0xff]   ;;  %v7970_v55 = vld [vmem:[#allocation3 + $0x9b0] ss:$28 sps:$4 sm:$0xff]  }
 0x13f   :  { %v2409_v2 = vpop.f32.mrf.mxu1  ;;  %v8808_v3 = vadd.f32 %v2407_v59, %v2367_v63  ;;  %2743 = vmatpush1.bf16.msra.mxu0 %v7918_v57  ;;  %v7977_v57 = vld [vmem:[#allocation3 + $0x97c] ss:$28 sps:$4 sm:$0xff]   ;;  %v7978_v58 = vld [vmem:[#allocation3 + $0x210] ss:$28 sps:$4 sm:$0xff]  }
 0x140   :  { %2726 = vmatpush2.bf16.msra.mxu1 %v7915_v56  ;;  %v2369_v6 = vpop.f32.mrf.mxu0  ;;  %2744 = vmatprep.subr.bf16.mxu0 %v7926_v61  ;;  %v7974_v56 = vld [vmem:[#allocation3 + $0x88] ss:$28 sps:$4 sm:$0xff]   ;;  %v7975_v59 = vld [vmem:[#allocation3 + $0x978] ss:$28 sps:$4 sm:$0xff]   ;;  %v7980_v1 = vld [vmem:[#allocation3 + $0x940] ss:$28 sps:$4 sm:$0xff]  }
 0x141   :  { %v2410_v7 = vpop.f32.mrf.mxu1  ;;  %2727 = vmatprep.subr.bf16.mxu1 %v7923_v60  ;;  %v7979_v60 = vld [vmem:[#allocation3 + $0x50] ss:$28 sps:$4 sm:$0xff]   ;;  %v7982_v61 = vld [vmem:[#allocation3 + $0x944] ss:$28 sps:$4 sm:$0xff]   ;;  %v7983_v63 = vld [vmem:[#allocation3 + $0x1d8] ss:$28 sps:$4 sm:$0xff]  }
 0x142   :  { %v7984_v2 = vld [vmem:[#allocation3 + $0x18] ss:$28 sps:$4 sm:$0xff]   ;;  %v7985_v6 = vld [vmem:[#allocation3 + $0x908] ss:$28 sps:$4 sm:$0xff]   ;;  %v7989_v7 = vld [vmem:[#allocation3 + $0x520] ss:$28 sps:$4 sm:$0xff]  }
 0x143   :  { %v8810_v12 = vpop.f32.mrf.mxu1  ;;  %2745 = vmatpush1.bf16.msra.mxu0 %v7924_v5  ;;  %v7988_v5 = vld [vmem:[#allocation3 + $0x6e0] ss:$28 sps:$4 sm:$0xff]  }
 0x144   :  { %2728 = vmatpush2.bf16.msra.mxu1 %v7921_v4  ;;  %2746 = vmatprep.subr.bf16.mxu0 %v7932_v11  ;;  %v7987_v4 = vld [vmem:[#allocation3 + $0x90c] ss:$28 sps:$4 sm:$0xff]  }
 0x145   :  { %v8812_v15 = vpop.f32.mrf.mxu1  ;;  %2729 = vmatprep.subr.bf16.mxu1 %v7929_v9  ;;  %v7992_v9 = vld [vmem:[#allocation3 + $0x8d4] ss:$28 sps:$4 sm:$0xff]   ;;  %v7993_v11 = vld [vmem:[#allocation3 + $0x6a8] ss:$28 sps:$4 sm:$0xff]  }
 0x147   :  { %v2491_v18 = vpop.f32.mrf.mxu1  ;;  %2747 = vmatpush1.bf16.msra.mxu0 %v7930_v14  ;;  %v7994_v14 = vld [vmem:[#allocation3 + $0x4e8] ss:$28 sps:$4 sm:$0xff]  }
 0x148   :  { %2730 = vmatpush2.bf16.msra.mxu1 %v7927_v13  ;;  %2748 = vmatprep.subr.bf16.mxu0 %v7935_v16  ;;  %v7990_v13 = vld [vmem:[#allocation3 + $0x8d0] ss:$28 sps:$4 sm:$0xff]  }
 0x149   :  { %v2492_v24 = vpop.f32.mrf.mxu1  ;;  %2793 = vmatprep.subr.bf16.mxu1 %v7938_v17  ;;  %v7995_v16 = vld [vmem:[#allocation3 + $0x670] ss:$28 sps:$4 sm:$0xff]   ;;  %v7996_v17 = vld [vmem:[#allocation3 + $0xa60] ss:$28 sps:$4 sm:$0xff]  }
 0x14a   :  { %v7997_v18 = vld [vmem:[#allocation3 + $0x4b0] ss:$28 sps:$4 sm:$0xff]   ;;  %v8000_v24 = vld [vmem:[#allocation3 + $0xa28] ss:$28 sps:$4 sm:$0xff]  }
 0x14b   :  { %2732 = vmatmul.mubr.bf16.vlgmr.msra.gmra.mxu1 %v8761_v10  ;;  %2749 = vmatpush1.bf16.msra.mxu0 %v7933_v20  ;;  %v7998_v20 = vld [vmem:[#allocation3 + $0x8a0] ss:$28 sps:$4 sm:$0xff]  }
 0x14c   :  { %2794 = vmatpush1.bf16.msra.mxu1 %v7936_v23  ;;  %2750 = vmatprep.subr.bf16.mxu0 %v7941_v25  ;;  %v7999_v23 = vld [vmem:[#allocation3 + $0x638] ss:$28 sps:$4 sm:$0xff]  }
 0x14d   :  { %2795 = vmatprep.subr.bf16.mxu1 %v7944_v26  ;;  %2813 = vmatprep.mubr.bf16.mxu1 %v8695_v19  ;;  %v8001_v25 = vld [vmem:[#allocation3 + $0x478] ss:$28 sps:$4 sm:$0xff]   ;;  %v8002_v26 = vld [vmem:[#allocation3 + $0x868] ss:$28 sps:$4 sm:$0xff]  }
 0x14f   :  { %2751 = vmatpush1.bf16.msra.mxu0 %v7939_v27 }
 0x150   :  { %2796 = vmatpush1.bf16.msra.mxu1 %v7942_v28  ;;  %2752 = vmatprep.subr.bf16.mxu0 %v7947_v29  ;;  %v8004_v28 = vld [vmem:[#allocation3 + $0x9f0] ss:$28 sps:$4 sm:$0xff]  }
 0x151   :  { %7280 = vmatprep.subr.bf16.mxu1 %v7948_v30 }
 0x153   :  { %6872 = vmatmul.mubr.msk.bf16.vlgmr.msra.gmra.mxu1 %vm2326_vm0, %v8769_v21  ;;  %2753 = vmatpush1.bf16.msra.mxu0 %v7945_v31 }
 0x154   :  { %7281 = vmatpush3.bf16.msra.mxu1 %v7949_v32  ;;  %2754 = vmatprep.subr.bf16.mxu0 %v7952_v33  ;;  %v8005_v32 = vld [vmem:[#allocation3 + $0x440] ss:$28 sps:$4 sm:$0xff]   ;;  %v8006_v33 = vld [vmem:[#allocation3 + $0x830] ss:$28 sps:$4 sm:$0xff]  }
 0x155   :  { %7282 = vmatprep.subr.bf16.mxu1 %v7953_v34  ;;  %2854 = vmatprep.mubr.bf16.mxu1 %v8744_v48  ;;  %v7973_v48 = vld [vmem:[#allocation3 + $0x248] ss:$28 sps:$4 sm:$0xff]  }
 0x157   :  { %2755 = vmatpush1.bf16.msra.mxu0 %v7950_v35  ;;  %v8007_v35 = vld [vmem:[#allocation3 + $0x5c8] ss:$28 sps:$4 sm:$0xff]  }
 0x158   :  { %7283 = vmatpush3.bf16.msra.mxu1 %v7954_v36  ;;  %2756 = vmatprep.subr.bf16.mxu0 %v7957_v37  ;;  %v8008_v36 = vld [vmem:[#allocation3 + $0x9b8] ss:$28 sps:$4 sm:$0xff]  }
 0x159   :  { %7284 = vmatprep.subr.bf16.mxu1 %v7958_v38  ;;  %v8009_v38 = vld [vmem:[#allocation3 + $0x408] ss:$28 sps:$4 sm:$0xff]  }
 0x15b   :  { %2757 = vmatpush2.bf16.msra.mxu0 %v7955_v39  ;;  %v8010_v39 = vld [vmem:[#allocation3 + $0x7f8] ss:$28 sps:$4 sm:$0xff]  }
 0x15c   :  { %7285 = vmatpush3.bf16.msra.mxu1 %v7959_v42  ;;  %2758 = vmatprep.subr.bf16.mxu0 %v7962_v43  ;;  %v8011_v42 = vld [vmem:[#allocation3 + $0x590] ss:$28 sps:$4 sm:$0xff]  }
 0x15d   :  { %7286 = vmatprep.subr.bf16.mxu1 %v7963_v45  ;;  %v8013_v43 = vld [vmem:[#allocation3 + $0x3d0] ss:$28 sps:$4 sm:$0xff]   ;;  %v8014_v45 = vld [vmem:[#allocation3 + $0x7c0] ss:$28 sps:$4 sm:$0xff]  }
 0x15f   :  { %2759 = vmatpush2.bf16.msra.mxu0 %v7960_v46  ;;  %v8015_v46 = vld [vmem:[#allocation3 + $0x558] ss:$28 sps:$4 sm:$0xff]  }
 0x160   :  { %7287 = vmatpush3.bf16.msra.mxu1 %v7964_v47  ;;  %2760 = vmatprep.subr.bf16.mxu0 %v7967_v49  ;;  %v8016_v49 = vld [vmem:[#allocation3 + $0x948] ss:$28 sps:$4 sm:$0xff]  }
 0x161   :  { %7288 = vmatprep.subr.bf16.mxu1 %v7968_v50  ;;  %v8017_v50 = vld [vmem:[#allocation3 + $0x398] ss:$28 sps:$4 sm:$0xff]  }
 0x163   :  { %2761 = vmatpush2.bf16.msra.mxu0 %v7965_v51  ;;  %v8018_v51 = vld [vmem:[#allocation3 + $0x788] ss:$28 sps:$4 sm:$0xff]  }
 0x164   :  { %7289 = vmatpush3.bf16.msra.mxu1 %v7969_v53  ;;  %2762 = vmatprep.subr.bf16.mxu0 %v7972_v54  ;;  %v8019_v53 = vld [vmem:[#allocation3 + $0x910] ss:$28 sps:$4 sm:$0xff]  }
 0x165   :  { %7290 = vmatprep.subr.bf16.mxu1 %v7973_v48  ;;  %v8020_v54 = vld [vmem:[#allocation3 + $0x750] ss:$28 sps:$4 sm:$0xff]  }
 0x166   :  { %v8021_v48 = vld [vmem:[#allocation3 + $0xad0] ss:$28 sps:$4 sm:$0xff]  }
 0x167   :  { %2763 = vmatpush2.bf16.msra.mxu0 %v7970_v55  ;;  %v8696_v55 = vmov 0.0  }
 0x168   :  { %7291 = vmatpush3.bf16.msra.mxu1 %v7974_v56  ;;  %2764 = vmatprep.subr.bf16.mxu0 %v7977_v57  ;;  %v8022_v56 = vld [vmem:[#allocation3 + $0x8d8] ss:$28 sps:$4 sm:$0xff]  }
 0x169   :  { %7292 = vmatprep.subr.bf16.mxu1 %v7978_v58  ;;  %v8023_v57 = vld [vmem:[#allocation3 + $0x718] ss:$28 sps:$4 sm:$0xff]  }
 0x16a   :  { %v8024_v58 = vld [vmem:[#allocation3 + $0xa98] ss:$28 sps:$4 sm:$0xff]  }
 0x16b   :  { %2765 = vmatpush2.bf16.msra.mxu0 %v7975_v59  ;;  %v8027_v59 = vld [vmem:[#allocation3 + $0xc7c] ss:$28 sps:$4 sm:$0xff]  }
 0x16c   :  { %7293 = vmatpush3.bf16.msra.mxu1 %v7979_v60  ;;  %2766 = vmatprep.subr.bf16.mxu0 %v7982_v61  ;;  %v8030_v60 = vld [vmem:[#allocation3 + $0xffc] ss:$28 sps:$4 sm:$0xff]  }
 0x16d   :  { %7294 = vmatprep.subr.bf16.mxu1 %v7983_v63  ;;  %v8025_v63 = vld [vmem:[#allocation3 + $0xc78] ss:$28 sps:$4 sm:$0xff]  }
 0x16f   :  { %2767 = vmatpush2.bf16.msra.mxu0 %v7980_v1  ;;  %v8028_v1 = vld [vmem:[#allocation3 + $0xff8] ss:$28 sps:$4 sm:$0xff]  }
 0x170   :  { %7295 = vmatpush3.bf16.msra.mxu1 %v7984_v2  ;;  %2768 = vmatprep.subr.bf16.mxu0 %v7987_v4  ;;  %v8033_v2 = vld [vmem:[#allocation3 + $0xc44] ss:$28 sps:$4 sm:$0xff]  }
 0x171   :  { %7302 = vmatprep.subr.bf16.mxu1 %v7988_v5  ;;  %v8036_v4 = vld [vmem:[#allocation3 + $0xfc4] ss:$28 sps:$4 sm:$0xff]  }
 0x172   :  { %v8031_v5 = vld [vmem:[#allocation3 + $0xc40] ss:$28 sps:$4 sm:$0xff]  }
 0x173   :  { %2855 = vmatmul.mubr.bf16.vlgmr.msra.gmra.mxu1 %v8759_v8  ;;  %2769 = vmatpush2.bf16.msra.mxu0 %v7985_v6  ;;  %v8003_v8 = vld [vmem:[#allocation3 + $0x600] ss:$28 sps:$4 sm:$0xff]  }
 0x174   :  { %7303 = vmatpush3.bf16.msra.mxu1 %v7989_v7  ;;  %2770 = vmatprep.subr.bf16.mxu0 %v7992_v9  ;;  %v8034_v6 = vld [vmem:[#allocation3 + $0xfc0] ss:$28 sps:$4 sm:$0xff]   ;;  %v8039_v7 = vld [vmem:[#allocation3 + $0xc0c] ss:$28 sps:$4 sm:$0xff]  }
 0x175   :  { %7304 = vmatprep.subr.bf16.mxu1 %v7993_v11  ;;  %2894 = vmatprep.mubr.bf16.mxu1 %v8749_v52  ;;  %v8042_v9 = vld [vmem:[#allocation3 + $0xf8c] ss:$28 sps:$4 sm:$0xff]  }
 0x176   :  { %v8037_v11 = vld [vmem:[#allocation3 + $0xc08] ss:$28 sps:$4 sm:$0xff]  }
 0x177   :  { %2771 = vmatpush2.bf16.msra.mxu0 %v7990_v13  ;;  %v8040_v13 = vld [vmem:[#allocation3 + $0xf88] ss:$28 sps:$4 sm:$0xff]  }
 0x178   :  { %7305 = vmatpush3.bf16.msra.mxu1 %v7994_v14  ;;  %7324 = vmatprep.subr.bf16.mxu0 %v7996_v17  ;;  %v8045_v14 = vld [vmem:[#allocation3 + $0xbd4] ss:$28 sps:$4 sm:$0xff]   ;;  %v8051_v17 = vld [vmem:[#allocation3 + $0xb9c] ss:$28 sps:$4 sm:$0xff]  }
 0x179   :  { %7306 = vmatprep.subr.bf16.mxu1 %v7995_v16  ;;  %v8048_v16 = vld [vmem:[#allocation3 + $0xf54] ss:$28 sps:$4 sm:$0xff]  }
 0x17a   :  { %v2446_v27 = vpop.f32.mrf.mxu0  ;;  %2773 = vmatmul.mubr.bf16.vlgmr.msra.gmra.mxu0 %v8783_v22 }
 0x17b   :  { %v2447_v29 = vadd.f32 %v2446_v27, %v8805_v62  ;;  %7325 = vmatpush3.bf16.msra.mxu0 %v7998_v20  ;;  %2934 = vmatprep.mubr.bf16.mxu0 %v8777_v41  ;;  %v8012_v41 = vld [vmem:[#allocation3 + $0x980] ss:$28 sps:$4 sm:$0xff]   ;;  %v8049_v20 = vld [vmem:[#allocation3 + $0xb98] ss:$28 sps:$4 sm:$0xff]  }
 0x17c   :  { %7307 = vmatpush3.bf16.msra.mxu1 %v7997_v18  ;;  %v2448_v30 = vpop.f32.mrf.mxu0  ;;  %7326 = vmatprep.subr.bf16.mxu0 %v8000_v24  ;;  %v8054_v18 = vld [vmem:[#allocation3 + $0xf1c] ss:$28 sps:$4 sm:$0xff]   ;;  %v8057_v24 = vld [vmem:[#allocation3 + $0xb64] ss:$28 sps:$4 sm:$0xff]  }
 0x17d   :  { %7308 = vmatprep.subr.bf16.mxu1 %v7999_v23  ;;  %v8824_v52 = vadd.f32 %v8810_v12, %v2447_v29  ;;  %v2449_v31 = vadd.f32 %v2448_v30, %v8808_v3  ;;  %v8052_v23 = vld [vmem:[#allocation3 + $0xf18] ss:$28 sps:$4 sm:$0xff]   ;;  %v8058_v27 = vld [vmem:[#allocation3 + $0xee0] ss:$28 sps:$4 sm:$0xff]   ;;  %v8066_v29 = vld [vmem:[#allocation3 + $0xeac] ss:$28 sps:$4 sm:$0xff]  }
 0x17e   :  { %v2450_v34 = vpop.f32.mrf.mxu0  ;;  %v8064_v30 = vld [vmem:[#allocation3 + $0xea8] ss:$28 sps:$4 sm:$0xff]  }
 0x17f   :  { %v2490_v37 = vadd.f32 %v8812_v15, %v2449_v31  ;;  %7327 = vmatpush3.bf16.msra.mxu0 %v8002_v26  ;;  %v8055_v26 = vld [vmem:[#allocation3 + $0xb60] ss:$28 sps:$4 sm:$0xff]   ;;  %v8069_v31 = vld [vmem:[#allocation3 + $0xaf4] ss:$28 sps:$4 sm:$0xff]  }
 0x180   :  { %7309 = vmatpush3.bf16.msra.mxu1 %v8001_v25  ;;  %v2451_v62 = vpop.f32.mrf.mxu0  ;;  %7328 = vmatprep.subr.bf16.mxu0 %v8004_v28  ;;  %v8060_v25 = vld [vmem:[#allocation3 + $0xee4] ss:$28 sps:$4 sm:$0xff]   ;;  %v8070_v34 = vld [vmem:[#allocation3 + $0xe70] ss:$28 sps:$4 sm:$0xff]  }
 0x181   :  { %7310 = vmatprep.subr.bf16.mxu1 %v8003_v8  ;;  %v2983_v61 = vmax.f32 %v2490_v37, 0.0  ;;  %v8063_v8 = vld [vmem:[#allocation3 + $0xb2c] ss:$28 sps:$4 sm:$0xff]   ;;  %v8078_v37 = vld [vmem:[#allocation3 + $0x11bc] ss:$28 sps:$4 sm:$0xff]  }
 0x182   :  { %v8061_v28 = vld [vmem:[#allocation3 + $0xb28] ss:$28 sps:$4 sm:$0xff]   ;;  %v8076_v62 = vld [vmem:[#allocation3 + $0x11b8] ss:$28 sps:$4 sm:$0xff]  }
 0x183   :  { %v8829_v12 = vpop.f32.mrf.mxu1  ;;  %7329 = vmatpush3.bf16.msra.mxu0 %v8006_v33  ;;  %v8072_v33 = vld [vmem:[#allocation3 + $0xe74] ss:$28 sps:$4 sm:$0xff]  }
 0x184   :  { %7311 = vmatpush3.bf16.msra.mxu1 %v8005_v32  ;;  %7330 = vmatprep.subr.bf16.mxu0 %v8008_v36  ;;  %v8067_v32 = vld [vmem:[#allocation3 + $0xaf0] ss:$28 sps:$4 sm:$0xff]   ;;  %v8073_v36 = vld [vmem:[#allocation3 + $0xe38] ss:$28 sps:$4 sm:$0xff]  }
 0x185   :  { %v8831_v3 = vpop.f32.mrf.mxu1  ;;  %7312 = vmatprep.subr.bf16.mxu1 %v8007_v35  ;;  %v8075_v35 = vld [vmem:[#allocation3 + $0xe3c] ss:$28 sps:$4 sm:$0xff]  }
 0x187   :  { %v2532_v15 = vpop.f32.mrf.mxu1  ;;  %7331 = vmatpush3.bf16.msra.mxu0 %v8010_v39  ;;  %v8079_v39 = vld [vmem:[#allocation3 + $0xe00] ss:$28 sps:$4 sm:$0xff]  }
 0x188   :  { %7313 = vmatpush3.bf16.msra.mxu1 %v8009_v38  ;;  %7332 = vmatprep.subr.bf16.mxu0 %v8012_v41  ;;  %v8081_v38 = vld [vmem:[#allocation3 + $0xe04] ss:$28 sps:$4 sm:$0xff]   ;;  %v8087_v15 = vld [vmem:[#allocation3 + $0xdcc] ss:$28 sps:$4 sm:$0xff]  }
 0x189   :  { %v2533_v47 = vpop.f32.mrf.mxu1  ;;  %7314 = vmatprep.subr.bf16.mxu1 %v8011_v42  ;;  %v8084_v42 = vld [vmem:[#allocation3 + $0x1184] ss:$28 sps:$4 sm:$0xff]  }
 0x18a   :  { %v8090_v47 = vld [vmem:[#allocation3 + $0x114c] ss:$28 sps:$4 sm:$0xff]  }
 0x18b   :  { %7333 = vmatpush3.bf16.msra.mxu0 %v8014_v45 }
 0x18c   :  { %7315 = vmatpush3.bf16.msra.mxu1 %v8013_v43  ;;  %7334 = vmatprep.subr.bf16.mxu0 %v8016_v49  ;;  %v8082_v43 = vld [vmem:[#allocation3 + $0x1180] ss:$28 sps:$4 sm:$0xff]   ;;  %v505_v49 = vsub.s32 3, %v8796_v0 }
 0x18d   :  { %7316 = vmatprep.subr.bf16.mxu1 %v8015_v46  ;;  %v8085_v46 = vld [vmem:[#allocation3 + $0xdc8] ss:$28 sps:$4 sm:$0xff]  }
 0x18f   :  { %7335 = vmatpush3.bf16.msra.mxu0 %v8018_v51  ;;  %v8088_v51 = vld [vmem:[#allocation3 + $0x1148] ss:$28 sps:$4 sm:$0xff]  }
 0x190   :  { %7317 = vmatpush3.bf16.msra.mxu1 %v8017_v50  ;;  %7336 = vmatprep.subr.bf16.mxu0 %v8019_v53 }
 0x191   :  { %7487 = vmatprep.subr.bf16.mxu1 %v8696_v55 }
 0x193   :  { %2895 = vmatmul.mubr.bf16.vlgmr.msra.gmra.mxu1 %v8761_v10  ;;  %7337 = vmatpush3.bf16.msra.mxu0 %v8020_v54  ;;  %v8838_v10 = vpack.c.bf16 %v2983_v61, %v2983_v61  ;;  %v8093_v54 = vld [vmem:[#allocation3 + $0xd94] ss:$28 sps:$4 sm:$0xff]  }
 0x194   :  { %7488 = vmatpush3.bf16.msra.mxu1 %v8021_v48  ;;  %7338 = vmatprep.subr.bf16.mxu0 %v8022_v56  ;;  %v501_v48 = vsub.s32 2, %v8796_v0  ;;  %v8091_v56 = vld [vmem:[#allocation3 + $0xd90] ss:$28 sps:$4 sm:$0xff]  }
 0x195   :  { %7489 = vmatprep.subr.bf16.mxu1 %v8696_v55  ;;  %7491 = vmatprep.mubr.msk.bf16.mxu1 %vm8697_vm1, %v8696_v55 }
 0x197   :  { %7339 = vmatpush3.bf16.msra.mxu0 %v8023_v57  ;;  %v8096_v57 = vld [vmem:[#allocation3 + $0x1114] ss:$28 sps:$4 sm:$0xff]  }
 0x198   :  { %7490 = vmatpush3.bf16.msra.mxu1 %v8024_v58  ;;  %5293 = vmatprep.subr.bf16.mxu0 %v8030_v60  ;;  %v8846_v60 = vld [vmem:[#allocation6] sm:$0x7f] }
 0x199   :  { %5252 = vmatprep.subr.bf16.mxu1 %v8027_v59  ;;  %v8094_v59 = vld [vmem:[#allocation3 + $0x1110] ss:$28 sps:$4 sm:$0xff]   ;;  %v506_v61 = vrot.slane %v8846_v60, %v505_v49 }
 0x19a   :  { %2935 = vmatmul.mubr.bf16.vlgmr.msra.gmra.mxu0 %v8783_v22  ;;  %v8043_v22 = vld [vmem:[#allocation3 + $0xbd0] ss:$28 sps:$4 sm:$0xff]  }
 0x19b   :  { %7492 = vmatmul.mubr.msk.bf16.vlgmr.msra.gmra.mxu1 %vm2326_vm0, %v8769_v21  ;;  %5294 = vmatpush1.bf16.msra.mxu0 %v8028_v1  ;;  %v8046_v21 = vld [vmem:[#allocation3 + $0xf50] ss:$28 sps:$4 sm:$0xff]   ;;  %v8099_v1 = vld [vmem:[#allocation3 + $0xd5c] ss:$28 sps:$4 sm:$0xff]  }
 0x19c   :  { %5253 = vmatpush1.bf16.msra.mxu1 %v8025_v63  ;;  %5284 = vmatprep.mubr.bf16.mxu1 %v8838_v10 }
 0x19d   :  { %5254 = vmatprep.subr.bf16.mxu1 %v8033_v2  ;;  %5295 = vmatprep.subr.bf16.mxu0 %v8036_v4  ;;  %v8097_v2 = vld [vmem:[#allocation3 + $0xd58] ss:$28 sps:$4 sm:$0xff]  }
 0x19e   :  { %v8102_v4 = vld [vmem:[#allocation3 + $0x10dc] ss:$28 sps:$4 sm:$0xff]  }
 0x19f   :  { %5296 = vmatpush1.bf16.msra.mxu0 %v8034_v6  ;;  %v8100_v6 = vld [vmem:[#allocation3 + $0x10d8] ss:$28 sps:$4 sm:$0xff]  }
 0x1a0   :  { %5255 = vmatpush1.bf16.msra.mxu1 %v8031_v5  ;;  %5297 = vmatprep.subr.bf16.mxu0 %v8042_v9  ;;  %v2531_v9 = vadd.f32 %v8831_v3, %v506_v61  ;;  %v8204_v61 = vld [vmem:[#allocation3 + $0xc84] ss:$28 sps:$4 sm:$0xff]  }
 0x1a1   :  { %5256 = vmatprep.subr.bf16.mxu1 %v8039_v7  ;;  %v502_v7 = vrot.slane %v8846_v60, %v501_v48 }
 0x1a3   :  { %5298 = vmatpush1.bf16.msra.mxu0 %v8040_v13  ;;  %v8108_v13 = vld [vmem:[#allocation3 + $0x10a4] ss:$28 sps:$4 sm:$0xff]  }
 0x1a4   :  { %5257 = vmatpush1.bf16.msra.mxu1 %v8037_v11  ;;  %5299 = vmatprep.subr.bf16.mxu0 %v8048_v16  ;;  %v8105_v11 = vld [vmem:[#allocation3 + $0xd24] ss:$28 sps:$4 sm:$0xff]  }
 0x1a5   :  { %5258 = vmatprep.subr.bf16.mxu1 %v8045_v14 }
 0x1a7   :  { %5300 = vmatpush1.bf16.msra.mxu0 %v8046_v21 }
 0x1a8   :  { %5259 = vmatpush1.bf16.msra.mxu1 %v8043_v22  ;;  %5301 = vmatprep.subr.bf16.mxu0 %v8054_v18  ;;  %v8103_v22 = vld [vmem:[#allocation3 + $0xd20] ss:$28 sps:$4 sm:$0xff]   ;;  %v2529_v18 = vadd.f32 %v8829_v12, %v502_v7  ;;  %v8120_v12 = vld [vmem:[#allocation3 + $0x1034] ss:$28 sps:$4 sm:$0xff]  }
 0x1a9   :  { %5260 = vmatprep.subr.bf16.mxu1 %v8051_v17  ;;  %v8106_v17 = vld [vmem:[#allocation3 + $0x10a0] ss:$28 sps:$4 sm:$0xff]  }
 0x1aa   :  { %v8150_v7 = vld [vmem:[#allocation3 + $0x1504] ss:$28 sps:$4 sm:$0xff]  }
 0x1ab   :  { %5302 = vmatpush1.bf16.msra.mxu0 %v8052_v23 }
 0x1ac   :  { %5261 = vmatpush1.bf16.msra.mxu1 %v8049_v20  ;;  %5303 = vmatprep.subr.bf16.mxu0 %v8060_v25 }
 0x1ad   :  { %5262 = vmatprep.subr.bf16.mxu1 %v8057_v24  ;;  %v8111_v24 = vld [vmem:[#allocation3 + $0xcec] ss:$28 sps:$4 sm:$0xff]  }
 0x1af   :  { %5304 = vmatpush1.bf16.msra.mxu0 %v8058_v27  ;;  %v8114_v27 = vld [vmem:[#allocation3 + $0x106c] ss:$28 sps:$4 sm:$0xff]  }
 0x1b0   :  { %5263 = vmatpush1.bf16.msra.mxu1 %v8055_v26  ;;  %5305 = vmatprep.subr.bf16.mxu0 %v8066_v29  ;;  %v8109_v26 = vld [vmem:[#allocation3 + $0xce8] ss:$28 sps:$4 sm:$0xff]   ;;  %v8117_v29 = vld [vmem:[#allocation3 + $0xcb4] ss:$28 sps:$4 sm:$0xff]  }
 0x1b1   :  { %5264 = vmatprep.subr.bf16.mxu1 %v8063_v8 }
 0x1b3   :  { %5306 = vmatpush1.bf16.msra.mxu0 %v8064_v30 }
 0x1b4   :  { %5265 = vmatpush1.bf16.msra.mxu1 %v8061_v28  ;;  %5307 = vmatprep.subr.bf16.mxu0 %v8072_v33  ;;  %v8112_v28 = vld [vmem:[#allocation3 + $0x1068] ss:$28 sps:$4 sm:$0xff]   ;;  %v2982_v33 = vmax.f32 %v8824_v52, 0.0 }
 0x1b5   :  { %5266 = vmatprep.subr.bf16.mxu1 %v8069_v31  ;;  %v8126_v52 = vld [vmem:[#allocation3 + $0x1344] ss:$28 sps:$4 sm:$0xff]  }
 0x1b7   :  { %5308 = vmatpush1.bf16.msra.mxu0 %v8070_v34 }
 0x1b8   :  { %5267 = vmatpush1.bf16.msra.mxu1 %v8067_v32  ;;  %5309 = vmatprep.subr.bf16.mxu0 %v8078_v37  ;;  %v8118_v37 = vld [vmem:[#allocation3 + $0x1030] ss:$28 sps:$4 sm:$0xff]  }
 0x1b9   :  { %5268 = vmatprep.subr.bf16.mxu1 %v8075_v35  ;;  %v8115_v35 = vld [vmem:[#allocation3 + $0xcb0] ss:$28 sps:$4 sm:$0xff]  }
 0x1ba   :  { %v2569_v41 = vpop.f32.mrf.mxu0 }
 0x1bb   :  { %5310 = vmatpush2.bf16.msra.mxu0 %v8076_v62  ;;  %v2570_v3 = vadd.f32 %v2569_v41, %v2529_v18  ;;  %v8123_v62 = vld [vmem:[#allocation3 + $0x137c] ss:$28 sps:$4 sm:$0xff]   ;;  %v8154_v18 = vld [vmem:[#allocation3 + $0x1490] ss:$28 sps:$4 sm:$0xff]  }
 0x1bc   :  { %5269 = vmatpush2.bf16.msra.mxu1 %v8073_v36  ;;  %v2571_v45 = vpop.f32.mrf.mxu0  ;;  %5311 = vmatprep.subr.bf16.mxu0 %v8084_v42  ;;  %v8860_v42 = vpack.c.bf16 %v2982_v33, %v2982_v33  ;;  %v8171_v33 = vld [vmem:[#allocation3 + $0x1004] ss:$28 sps:$4 sm:$0xff]  }
 0x1bd   :  { %5270 = vmatprep.subr.bf16.mxu1 %v8081_v38  ;;  %v2572_v16 = vadd.f32 %v2571_v45, %v2531_v9  ;;  %v8129_v45 = vld [vmem:[#allocation3 + $0x130c] ss:$28 sps:$4 sm:$0xff]   ;;  %v8148_v9 = vld [vmem:[#allocation3 + $0x1500] ss:$28 sps:$4 sm:$0xff]  }
 0x1be   :  { %v2573_v50 = vpop.f32.mrf.mxu0 }
 0x1bf   :  { %5312 = vmatpush2.bf16.msra.mxu0 %v8082_v43  ;;  %v8124_v43 = vld [vmem:[#allocation3 + $0x1340] ss:$28 sps:$4 sm:$0xff]  }
 0x1c0   :  { %5271 = vmatpush2.bf16.msra.mxu1 %v8079_v39  ;;  %v2574_v53 = vpop.f32.mrf.mxu0  ;;  %5313 = vmatprep.subr.bf16.mxu0 %v8090_v47  ;;  %v8121_v39 = vld [vmem:[#allocation3 + $0x1378] ss:$28 sps:$4 sm:$0xff]   ;;  %v8130_v47 = vld [vmem:[#allocation3 + $0x12d0] ss:$28 sps:$4 sm:$0xff]  }
 0x1c1   :  { %5272 = vmatprep.subr.bf16.mxu1 %v8087_v15  ;;  %v8127_v15 = vld [vmem:[#allocation3 + $0x1308] ss:$28 sps:$4 sm:$0xff]   ;;  %v8135_v50 = vld [vmem:[#allocation3 + $0x129c] ss:$28 sps:$4 sm:$0xff]  }
 0x1c2   :  { %v8192_v53 = vld [vmem:[#allocation3 + $0x15ac] ss:$28 sps:$4 sm:$0xff]  }
 0x1c3   :  { %v2610_v58 = vpop.f32.mrf.mxu1  ;;  %5314 = vmatpush2.bf16.msra.mxu0 %v8088_v51  ;;  %v8190_v51 = vld [vmem:[#allocation3 + $0x15a8] ss:$28 sps:$4 sm:$0xff]  }
 0x1c4   :  { %5273 = vmatpush2.bf16.msra.mxu1 %v8085_v46  ;;  %5315 = vmatprep.subr.bf16.mxu0 %v8096_v57  ;;  %v2611_v30 = vadd.f32 %v2610_v58, %v2570_v3  ;;  %v8132_v46 = vld [vmem:[#allocation3 + $0x12d4] ss:$28 sps:$4 sm:$0xff]   ;;  %v8138_v57 = vld [vmem:[#allocation3 + $0x1264] ss:$28 sps:$4 sm:$0xff]  }
 0x1c5   :  { %v2612_v63 = vpop.f32.mrf.mxu1  ;;  %5274 = vmatprep.subr.bf16.mxu1 %v8093_v54  ;;  %v8133_v54 = vld [vmem:[#allocation3 + $0x1298] ss:$28 sps:$4 sm:$0xff]   ;;  %v8196_v58 = vld [vmem:[#allocation3 + $0x1570] ss:$28 sps:$4 sm:$0xff]   ;;  %v8160_v3 = vld [vmem:[#allocation3 + $0x1420] ss:$28 sps:$4 sm:$0xff]  }
 0x1c6   :  { %v2613_v20 = vadd.f32 %v2612_v63, %v2572_v16  ;;  %v8141_v63 = vld [vmem:[#allocation3 + $0x122c] ss:$28 sps:$4 sm:$0xff]  }
 0x1c7   :  { %v2614_v5 = vpop.f32.mrf.mxu1  ;;  %5316 = vmatpush2.bf16.msra.mxu0 %v8094_v59  ;;  %v8136_v59 = vld [vmem:[#allocation3 + $0x1260] ss:$28 sps:$4 sm:$0xff]   ;;  %v8151_v16 = vld [vmem:[#allocation3 + $0x14c8] ss:$28 sps:$4 sm:$0xff]  }
 0x1c8   :  { %5275 = vmatpush2.bf16.msra.mxu1 %v8091_v56  ;;  %5317 = vmatprep.subr.bf16.mxu0 %v8102_v4  ;;  %v8198_v56 = vld [vmem:[#allocation3 + $0x1574] ss:$28 sps:$4 sm:$0xff]   ;;  %v8147_v5 = vld [vmem:[#allocation3 + $0x153c] ss:$28 sps:$4 sm:$0xff]  }
 0x1c9   :  { %v2615_v14 = vpop.f32.mrf.mxu1  ;;  %5276 = vmatprep.subr.bf16.mxu1 %v8099_v1  ;;  %v8139_v1 = vld [vmem:[#allocation3 + $0x1228] ss:$28 sps:$4 sm:$0xff]   ;;  %v8142_v4 = vld [vmem:[#allocation3 + $0x11f0] ss:$28 sps:$4 sm:$0xff]  }
 0x1ca   :  { %v8153_v14 = vld [vmem:[#allocation3 + $0x14cc] ss:$28 sps:$4 sm:$0xff]  }
 0x1cb   :  { %v2651_v21 = vpop.f32.mrf.mxu1  ;;  %5318 = vmatpush2.bf16.msra.mxu0 %v8100_v6  ;;  %v8145_v6 = vld [vmem:[#allocation3 + $0x1538] ss:$28 sps:$4 sm:$0xff]  }
 0x1cc   :  { %5277 = vmatpush2.bf16.msra.mxu1 %v8097_v2  ;;  %5319 = vmatprep.subr.bf16.mxu0 %v8108_v13  ;;  %v2652_v34 = vadd.f32 %v2651_v21, %v2611_v30  ;;  %v8144_v2 = vld [vmem:[#allocation3 + $0x11f4] ss:$28 sps:$4 sm:$0xff]  }
 0x1cd   :  { %v2653_v23 = vpop.f32.mrf.mxu1  ;;  %5278 = vmatprep.subr.bf16.mxu1 %v8105_v11  ;;  %v8168_v30 = vld [vmem:[#allocation3 + $0x13b4] ss:$28 sps:$4 sm:$0xff]  }
 0x1ce   :  { %v2654_v25 = vadd.f32 %v2653_v23, %v2613_v20  ;;  %v2984_v38 = vmax.f32 %v2652_v34, 0.0  ;;  %v8159_v20 = vld [vmem:[#allocation3 + $0x145c] ss:$28 sps:$4 sm:$0xff]  }
 0x1cf   :  { %v2655_v8 = vpop.f32.mrf.mxu1  ;;  %5320 = vmatpush2.bf16.msra.mxu0 %v8106_v17  ;;  %v8156_v17 = vld [vmem:[#allocation3 + $0x1494] ss:$28 sps:$4 sm:$0xff]  }
 0x1d0   :  { %v2985_v31 = vmax.f32 %v2654_v25, 0.0  ;;  %5279 = vmatpush2.bf16.msra.mxu1 %v8103_v22  ;;  %5321 = vmatprep.subr.bf16.mxu0 %v8114_v27  ;;  %v8862_v41 = vpack.c.bf16 %v2984_v38, %v2984_v38  ;;  %v8157_v23 = vld [vmem:[#allocation3 + $0x1458] ss:$28 sps:$4 sm:$0xff]   ;;  %v8165_v27 = vld [vmem:[#allocation3 + $0x13ec] ss:$28 sps:$4 sm:$0xff]  }
 0x1d1   :  { %v2656_v32 = vpop.f32.mrf.mxu1  ;;  %5280 = vmatprep.subr.bf16.mxu1 %v8111_v24  ;;  %v8162_v24 = vld [vmem:[#allocation3 + $0x1424] ss:$28 sps:$4 sm:$0xff]  }
 0x1d2   :  { %v8857_v36 = vpack.c.bf16 %v2985_v31, %v2985_v31  ;;  %v8166_v32 = vld [vmem:[#allocation3 + $0x13b0] ss:$28 sps:$4 sm:$0xff]  }
 0x1d3   :  { %5322 = vmatpush2.bf16.msra.mxu0 %v8112_v28  ;;  %v8163_v28 = vld [vmem:[#allocation3 + $0x13e8] ss:$28 sps:$4 sm:$0xff]  }
 0x1d4   :  { %5281 = vmatpush2.bf16.msra.mxu1 %v8109_v26  ;;  %5325 = vmatprep.mubr.bf16.mxu0 %v8857_v36 }
 0x1d5   :  { %5282 = vmatprep.subr.bf16.mxu1 %v8117_v29  ;;  %5323 = vmatprep.subr.bf16.mxu0 %v8120_v12 }
 0x1d7   :  { %5324 = vmatpush2.bf16.msra.mxu0 %v8118_v37  ;;  %v509_v37 = vsub.s32 4, %v8796_v0 }
 0x1d8   :  { %5283 = vmatpush2.bf16.msra.mxu1 %v8115_v35  ;;  %5387 = vmatprep.subr.bf16.mxu0 %v8192_v53 }
 0x1d9   :  { %5334 = vmatprep.subr.bf16.mxu1 %v8123_v62  ;;  %v513_v62 = vsub.s32 5, %v8796_v0 }
 0x1da   :  { %5326 = vmatmul.mubr.bf16.vlgmr.msra.gmra.mxu0 %v8862_v41 }
 0x1db   :  { %5285 = vmatmul.mubr.bf16.vlgmr.msra.gmra.mxu1 %v8860_v42  ;;  %5407 = vmatprep.mubr.bf16.mxu0 %v8695_v19 }
 0x1dc   :  { %5335 = vmatpush1.bf16.msra.mxu1 %v8121_v39  ;;  %5388 = vmatpush1.bf16.msra.mxu0 %v8190_v51  ;;  %v510_v39 = vrot.slane %v8846_v60, %v509_v37 }
 0x1dd   :  { %5336 = vmatprep.subr.bf16.mxu1 %v8126_v52  ;;  %5389 = vmatprep.subr.bf16.mxu0 %v8198_v56 }
 0x1e0   :  { %5337 = vmatpush1.bf16.msra.mxu1 %v8124_v43  ;;  %5390 = vmatpush1.bf16.msra.mxu0 %v8196_v58  ;;  %v514_v43 = vrot.slane %v8846_v60, %v513_v62 }
 0x1e1   :  { %5338 = vmatprep.subr.bf16.mxu1 %v8129_v45  ;;  %5416 = vmatprep.subr.bf16.mxu0 %v8204_v61 }
 0x1e4   :  { %5339 = vmatpush1.bf16.msra.mxu1 %v8127_v15 }
 0x1e5   :  { %5340 = vmatprep.subr.bf16.mxu1 %v8132_v46 }
 0x1e8   :  { %5341 = vmatpush1.bf16.msra.mxu1 %v8130_v47 }
 0x1e9   :  { %5342 = vmatprep.subr.bf16.mxu1 %v8135_v50 }
 0x1ec   :  { %5343 = vmatpush1.bf16.msra.mxu1 %v8133_v54 }
 0x1ed   :  { %5344 = vmatprep.subr.bf16.mxu1 %v8138_v57 }
 0x1f0   :  { %5345 = vmatpush1.bf16.msra.mxu1 %v8136_v59 }
 0x1f1   :  { %5346 = vmatprep.subr.bf16.mxu1 %v8141_v63 }
 0x1f4   :  { %5347 = vmatpush1.bf16.msra.mxu1 %v8139_v1 }
 0x1f5   :  { %5348 = vmatprep.subr.bf16.mxu1 %v8144_v2 }
 0x1f8   :  { %5349 = vmatpush1.bf16.msra.mxu1 %v8142_v4 }
 0x1f9   :  { %5350 = vmatprep.subr.bf16.mxu1 %v8147_v5  ;;  %v8169_v5 = vld [vmem:[#allocation3 + $0x1000] ss:$28 sps:$4 sm:$0xff]  }
 0x1fa   :  { %v2692_v11 = vpop.f32.mrf.mxu0 }
 0x1fb   :  { %v2693_v15 = vadd.f32 %v2692_v11, %v510_v39  ;;  %v8177_v11 = vld [vmem:[#allocation3 + $0xf94] ss:$28 sps:$4 sm:$0xff]  }
 0x1fc   :  { %5351 = vmatpush2.bf16.msra.mxu1 %v8145_v6  ;;  %v2694_v13 = vpop.f32.mrf.mxu0 }
 0x1fd   :  { %5352 = vmatprep.subr.bf16.mxu1 %v8150_v7  ;;  %v2695_v47 = vadd.f32 %v2694_v13, %v514_v43  ;;  %v8174_v7 = vld [vmem:[#allocation3 + $0xfcc] ss:$28 sps:$4 sm:$0xff]  }
 0x1fe   :  { %v2696_v22 = vpop.f32.mrf.mxu0  ;;  %v8175_v13 = vld [vmem:[#allocation3 + $0xf90] ss:$28 sps:$4 sm:$0xff]  }
 0x1ff   :  { %v8183_v22 = vld [vmem:[#allocation3 + $0xf24] ss:$28 sps:$4 sm:$0xff]  }
 0x200   :  { %5353 = vmatpush2.bf16.msra.mxu1 %v8148_v9  ;;  %v2697_v21 = vpop.f32.mrf.mxu0  ;;  %v8172_v9 = vld [vmem:[#allocation3 + $0xfc8] ss:$28 sps:$4 sm:$0xff]  }
 0x201   :  { %5354 = vmatprep.subr.bf16.mxu1 %v8153_v14  ;;  %v8180_v14 = vld [vmem:[#allocation3 + $0xf5c] ss:$28 sps:$4 sm:$0xff]  }
 0x204   :  { %5355 = vmatpush2.bf16.msra.mxu1 %v8151_v16  ;;  %v8178_v16 = vld [vmem:[#allocation3 + $0xf58] ss:$28 sps:$4 sm:$0xff]  }
 0x205   :  { %5356 = vmatprep.subr.bf16.mxu1 %v8156_v17  ;;  %v517_v17 = vsub.s32 6, %v8796_v0 }
 0x208   :  { %5357 = vmatpush2.bf16.msra.mxu1 %v8154_v18  ;;  %v8181_v18 = vld [vmem:[#allocation3 + $0xf20] ss:$28 sps:$4 sm:$0xff]  }
 0x209   :  { %5358 = vmatprep.subr.bf16.mxu1 %v8159_v20 }
 0x20b   :  { %v2733_v25 = vpop.f32.mrf.mxu1 }
 0x20c   :  { %5359 = vmatpush2.bf16.msra.mxu1 %v8157_v23  ;;  %v2734_v50 = vadd.f32 %v2733_v25, %v2693_v15  ;;  %v8186_v23 = vld [vmem:[#allocation3 + $0xeec] ss:$28 sps:$4 sm:$0xff]  }
 0x20d   :  { %v2735_v26 = vpop.f32.mrf.mxu1  ;;  %5360 = vmatprep.subr.bf16.mxu1 %v8162_v24 }
 0x20e   :  { %v2736_v53 = vadd.f32 %v2735_v26, %v2695_v47  ;;  %v8184_v26 = vld [vmem:[#allocation3 + $0xee8] ss:$28 sps:$4 sm:$0xff]  }
 0x20f   :  { %v2737_v8 = vpop.f32.mrf.mxu1 }
 0x210   :  { %5361 = vmatpush2.bf16.msra.mxu1 %v8160_v3  ;;  %v518_v3 = vrot.slane %v8846_v60, %v517_v17  ;;  %v8189_v8 = vld [vmem:[#allocation3 + $0xeb4] ss:$28 sps:$4 sm:$0xff]  }
 0x211   :  { %v2738_v29 = vpop.f32.mrf.mxu1  ;;  %5362 = vmatprep.subr.bf16.mxu1 %v8165_v27 }
 0x213   :  { %v2815_v31 = vpop.f32.mrf.mxu1 }
 0x214   :  { %5363 = vmatpush2.bf16.msra.mxu1 %v8163_v28 }
 0x215   :  { %v2817_v12 = vpop.f32.mrf.mxu1  ;;  %5364 = vmatprep.subr.bf16.mxu1 %v8168_v30 }
 0x217   :  { %v2819_v34 = vpop.f32.mrf.mxu1 }
 0x218   :  { %5365 = vmatpush2.bf16.msra.mxu1 %v8166_v32  ;;  %v8187_v32 = vld [vmem:[#allocation3 + $0xeb0] ss:$28 sps:$4 sm:$0xff]   ;;  %v8195_v34 = vld [vmem:[#allocation3 + $0xe7c] ss:$28 sps:$4 sm:$0xff]  }
 0x219   :  { %v2820_v35 = vpop.f32.mrf.mxu1  ;;  %5457 = vmatprep.subr.bf16.mxu1 %v8171_v33 }
 0x233   :  { %v7296_v38 = vpop.f32.mrf.mxu1 }
 0x235   :  { %v7297_v52 = vpop.f32.mrf.mxu1 }
 0x236   :  { %v7298_v25 = vadd.f32 %v7297_v52, %v7296_v38  ;;  %v8193_v52 = vld [vmem:[#allocation3 + $0xe78] ss:$28 sps:$4 sm:$0xff]  }
 0x237   :  { %v7299_v45 = vpop.f32.mrf.mxu1 }
 0x239   :  { %v7300_v46 = vpop.f32.mrf.mxu1 }
 0x23a   :  { %v2774_v51 = vpop.f32.mrf.mxu0  ;;  %v8201_v46 = vld [vmem:[#allocation3 + $0x11c4] ss:$28 sps:$4 sm:$0xff]  }
 0x23b   :  { %v2775_v54 = vadd.f32 %v2774_v51, %v2734_v50  ;;  %v8199_v51 = vld [vmem:[#allocation3 + $0x11c0] ss:$28 sps:$4 sm:$0xff]  }
 0x23c   :  { %v2776_v56 = vpop.f32.mrf.mxu0 }
 0x23d   :  { %v2816_v57 = vadd.f32 %v2815_v31, %v2775_v54  ;;  %v2777_v58 = vadd.f32 %v2776_v56, %v2736_v53  ;;  %v2857_v31 = vadd.f32 %v7298_v25, %v518_v3  ;;  %v8207_v53 = vld [vmem:[#allocation3 + $0x118c] ss:$28 sps:$4 sm:$0xff]   ;;  %v8213_v56 = vld [vmem:[#allocation3 + $0x1154] ss:$28 sps:$4 sm:$0xff]   ;;  %v8243_v3 = vld [vmem:[#allocation3 + $0x103c] ss:$28 sps:$4 sm:$0xff]  }
 0x23e   :  { %v2778_v59 = vpop.f32.mrf.mxu0  ;;  %v8205_v54 = vld [vmem:[#allocation3 + $0x1188] ss:$28 sps:$4 sm:$0xff]  }
 0x23f   :  { %v2818_v61 = vadd.f32 %v2817_v12, %v2777_v58  ;;  %v2986_v63 = vmax.f32 %v2816_v57, 0.0  ;;  %v8211_v57 = vld [vmem:[#allocation3 + $0x1150] ss:$28 sps:$4 sm:$0xff]   ;;  %v8202_v58 = vld [vmem:[#allocation3 + $0xc80] ss:$28 sps:$4 sm:$0xff]  }
 0x240   :  { %v2779_v1 = vpop.f32.mrf.mxu0  ;;  %v8234_v25 = vld [vmem:[#allocation3 + $0xb6c] ss:$28 sps:$4 sm:$0xff]  }
 0x241   :  { %v2987_v2 = vmax.f32 %v2818_v61, 0.0  ;;  %v8877_v6 = vpack.c.bf16 %v2986_v63, %v2986_v63  ;;  %v8210_v63 = vld [vmem:[#allocation3 + $0xc4c] ss:$28 sps:$4 sm:$0xff]   ;;  %v8219_v1 = vld [vmem:[#allocation3 + $0x111c] ss:$28 sps:$4 sm:$0xff]  }
 0x243   :  { %v8875_v4 = vpack.c.bf16 %v2987_v2, %v2987_v2  ;;  %v8217_v2 = vld [vmem:[#allocation3 + $0x1118] ss:$28 sps:$4 sm:$0xff]  }
 0x245   :  { %5366 = vmatprep.mubr.bf16.mxu1 %v8875_v4 }
 0x246   :  { %5367 = vmatmul.mubr.bf16.vlgmr.msra.gmra.mxu1 %v8877_v6 }
 0x247   :  { %5458 = vmatpush1.bf16.msra.mxu1 %v8169_v5  ;;  %5489 = vmatprep.mubr.bf16.mxu1 %v8857_v36  ;;  %v8208_v5 = vld [vmem:[#allocation3 + $0xc48] ss:$28 sps:$4 sm:$0xff]  }
 0x248   :  { %5459 = vmatprep.subr.bf16.mxu1 %v8174_v7  ;;  %v8225_v7 = vld [vmem:[#allocation3 + $0x10e4] ss:$28 sps:$4 sm:$0xff]  }
 0x24b   :  { %5460 = vmatpush1.bf16.msra.mxu1 %v8172_v9  ;;  %v8216_v9 = vld [vmem:[#allocation3 + $0xc14] ss:$28 sps:$4 sm:$0xff]  }
 0x24c   :  { %5461 = vmatprep.subr.bf16.mxu1 %v8177_v11  ;;  %v8223_v11 = vld [vmem:[#allocation3 + $0x10e0] ss:$28 sps:$4 sm:$0xff]  }
 0x24f   :  { %5462 = vmatpush1.bf16.msra.mxu1 %v8175_v13  ;;  %v8214_v13 = vld [vmem:[#allocation3 + $0xc10] ss:$28 sps:$4 sm:$0xff]  }
 0x250   :  { %5463 = vmatprep.subr.bf16.mxu1 %v8180_v14  ;;  %v8231_v14 = vld [vmem:[#allocation3 + $0x10ac] ss:$28 sps:$4 sm:$0xff]  }
 0x253   :  { %v7318_v21 = vpop.f32.mrf.mxu1  ;;  %5464 = vmatpush1.bf16.msra.mxu1 %v8178_v16  ;;  %v8222_v16 = vld [vmem:[#allocation3 + $0xbdc] ss:$28 sps:$4 sm:$0xff]  }
 0x254   :  { %5465 = vmatprep.subr.bf16.mxu1 %v8183_v22  ;;  %v8229_v22 = vld [vmem:[#allocation3 + $0x10a8] ss:$28 sps:$4 sm:$0xff]  }
 0x255   :  { %v7319_v20 = vpop.f32.mrf.mxu1 }
 0x256   :  { %v7320_v28 = vadd.f32 %v7319_v20, %v7318_v21  ;;  %v8220_v21 = vld [vmem:[#allocation3 + $0xbd8] ss:$28 sps:$4 sm:$0xff]   ;;  %v8228_v20 = vld [vmem:[#allocation3 + $0xba4] ss:$28 sps:$4 sm:$0xff]  }
 0x257   :  { %v7321_v24 = vpop.f32.mrf.mxu1  ;;  %5466 = vmatpush1.bf16.msra.mxu1 %v8181_v18  ;;  %v8237_v18 = vld [vmem:[#allocation3 + $0x1074] ss:$28 sps:$4 sm:$0xff]  }
 0x258   :  { %5467 = vmatprep.subr.bf16.mxu1 %v8186_v23  ;;  %v2897_v35 = vadd.f32 %v7320_v28, %v2857_v31  ;;  %v8235_v23 = vld [vmem:[#allocation3 + $0x1070] ss:$28 sps:$4 sm:$0xff]   ;;  %v8226_v24 = vld [vmem:[#allocation3 + $0xba0] ss:$28 sps:$4 sm:$0xff]  }
 0x259   :  { %v7322_v27 = vpop.f32.mrf.mxu1  ;;  %v8240_v28 = vld [vmem:[#allocation3 + $0xb34] ss:$28 sps:$4 sm:$0xff]   ;;  %v8255_v31 = vld [vmem:[#allocation3 + $0x157c] ss:$28 sps:$4 sm:$0xff]  }
 0x25a   :  { %v7340_v29 = vpop.f32.mrf.mxu0  ;;  %v8232_v27 = vld [vmem:[#allocation3 + $0xb68] ss:$28 sps:$4 sm:$0xff]  }
 0x25b   :  { %v2976_v30 = vpop.f32.mrf.mxu1  ;;  %5468 = vmatpush1.bf16.msra.mxu1 %v8184_v26  ;;  %v8241_v26 = vld [vmem:[#allocation3 + $0x1038] ss:$28 sps:$4 sm:$0xff]  }
 0x25c   :  { %v7341_v12 = vpop.f32.mrf.mxu0  ;;  %5469 = vmatprep.subr.bf16.mxu1 %v8189_v8  ;;  %v8249_v8 = vld [vmem:[#allocation3 + $0x15b4] ss:$28 sps:$4 sm:$0xff]  }
 0x25d   :  { %v7493_v33 = vpop.f32.mrf.mxu1  ;;  %v7342_v39 = vadd.f32 %v7341_v12, %v7340_v29  ;;  %v8247_v29 = vld [vmem:[#allocation3 + $0x15b0] ss:$28 sps:$4 sm:$0xff]   ;;  %v8253_v12 = vld [vmem:[#allocation3 + $0x1578] ss:$28 sps:$4 sm:$0xff]  }
 0x25e   :  { %v7343_v43 = vpop.f32.mrf.mxu0  ;;  %v8244_v33 = vld [vmem:[#allocation3 + $0xaf8] ss:$28 sps:$4 sm:$0xff]  }
 0x25f   :  { %v2979_v60 = vpop.f32.mrf.mxu1  ;;  %v2937_v38 = vadd.f32 %v7342_v39, %v2897_v35  ;;  %5470 = vmatpush1.bf16.msra.mxu1 %v8187_v32  ;;  %v8246_v32 = vld [vmem:[#allocation3 + $0xafc] ss:$28 sps:$4 sm:$0xff]   ;;  %v8252_v35 = vld [vmem:[#allocation3 + $0xe44] ss:$28 sps:$4 sm:$0xff]  }
 0x260   :  { %v7344_v45 = vpop.f32.mrf.mxu0  ;;  %5471 = vmatprep.subr.bf16.mxu1 %v8195_v34  ;;  %v8261_v34 = vld [vmem:[#allocation3 + $0xc8c] ss:$28 sps:$4 sm:$0xff]   ;;  %v8250_v43 = vld [vmem:[#allocation3 + $0xe40] ss:$28 sps:$4 sm:$0xff]   ;;  %v8267_v60 = vld [vmem:[#allocation3 + $0xc54] ss:$28 sps:$4 sm:$0xff]  }
 0x261   :  { %v7494_v15 = vpop.f32.mrf.mxu1  ;;  %v2977_v47 = vadd.f32 %v2976_v30, %v2937_v38  ;;  %v8238_v30 = vld [vmem:[#allocation3 + $0xb30] ss:$28 sps:$4 sm:$0xff]   ;;  %v8259_v39 = vld [vmem:[#allocation3 + $0xc88] ss:$28 sps:$4 sm:$0xff]  }
 0x262   :  { %v8258_v38 = vld [vmem:[#allocation3 + $0xe0c] ss:$28 sps:$4 sm:$0xff]   ;;  %v8273_v15 = vld [vmem:[#allocation3 + $0xc1c] ss:$28 sps:$4 sm:$0xff]  }
 0x263   :  { %v2988_v50 = vmax.f32 %v2977_v47, 0.0  ;;  %5472 = vmatpush1.bf16.msra.mxu1 %v8193_v52  ;;  %v8265_v52 = vld [vmem:[#allocation3 + $0xc50] ss:$28 sps:$4 sm:$0xff]   ;;  %v8256_v45 = vld [vmem:[#allocation3 + $0xe08] ss:$28 sps:$4 sm:$0xff]  }
 0x264   :  { %5473 = vmatprep.subr.bf16.mxu1 %v8201_v46  ;;  %v8264_v46 = vld [vmem:[#allocation3 + $0xdd4] ss:$28 sps:$4 sm:$0xff]  }
 0x265   :  { %2995 = vst.msk [vmem:[#allocation2 + $0x30] sm:$0xff] %vm2326_vm0, %v2988_v50  ;;  %v8271_v47 = vld [vmem:[#allocation3 + $0xc18] ss:$28 sps:$4 sm:$0xff]   ;;  %v8262_v50 = vld [vmem:[#allocation3 + $0xdd0] ss:$28 sps:$4 sm:$0xff]  }
 0x267   :  { %5474 = vmatpush2.bf16.msra.mxu1 %v8199_v51  ;;  %v3412_v51 = vld [vmem:[#allocation6 + $0x7] sm:$0x7f] }
 0x268   :  { %5475 = vmatprep.subr.bf16.mxu1 %v8207_v53  ;;  %v8279_v53 = vld [vmem:[#allocation3 + $0xbe4] ss:$28 sps:$4 sm:$0xff]  }
 0x26b   :  { %5476 = vmatpush2.bf16.msra.mxu1 %v8205_v54  ;;  %v8270_v54 = vld [vmem:[#allocation3 + $0xd9c] ss:$28 sps:$4 sm:$0xff]  }
 0x26c   :  { %v3002_v59 = vld [vmem:[#allocation2 + $0x30] sm:$0xff]  ;;  %5477 = vmatprep.subr.bf16.mxu1 %v8213_v56  ;;  %v3417_v56 = vrot.slane %v3412_v51, %v493_v40  ;;  %v8291_v40 = vld [vmem:[#allocation3 + $0xb74] ss:$28 sps:$4 sm:$0xff]  }
 0x26d   :  { %v8887_v61 = vpack.c.bf16 %v3002_v59, %v3002_v59  ;;  %v8285_v59 = vld [vmem:[#allocation3 + $0xbac] ss:$28 sps:$4 sm:$0xff]  }
 0x26f   :  { %7224 = vmatmul.mubr.msk.bf16.vlgmr.msra.gmra.mxu0 %vm2326_vm0, %v8887_v61  ;;  %5478 = vmatpush2.bf16.msra.mxu1 %v8211_v57  ;;  %v8277_v57 = vld [vmem:[#allocation3 + $0xbe0] ss:$28 sps:$4 sm:$0xff]  }
 0x270   :  { %5417 = vmatpush1.bf16.msra.mxu0 %v8202_v58  ;;  %5448 = vmatprep.mubr.bf16.mxu0 %v8838_v10  ;;  %v8268_v58 = vld [vmem:[#allocation3 + $0xd98] ss:$28 sps:$4 sm:$0xff]  }
 0x271   :  { %5418 = vmatprep.subr.bf16.mxu0 %v8210_v63  ;;  %5479 = vmatprep.subr.bf16.mxu1 %v8219_v1  ;;  %v3421_v63 = vrot.slane %v3412_v51, %v497_v44  ;;  %v8276_v1 = vld [vmem:[#allocation3 + $0xd64] ss:$28 sps:$4 sm:$0xff]  }
 0x272   :  { %v8325_v51 = vld [vmem:[#allocation3 + $0xda0] ss:$28 sps:$4 sm:$0xff]  }
 0x273   :  { %5480 = vmatpush2.bf16.msra.mxu1 %v8217_v2 }
 0x274   :  { %5419 = vmatpush1.bf16.msra.mxu0 %v8208_v5  ;;  %5481 = vmatprep.subr.bf16.mxu1 %v8225_v7 }
 0x275   :  { %5420 = vmatprep.subr.bf16.mxu0 %v8216_v9  ;;  %v8283_v9 = vld [vmem:[#allocation3 + $0xba8] ss:$28 sps:$4 sm:$0xff]  }
 0x277   :  { %5482 = vmatpush2.bf16.msra.mxu1 %v8223_v11 }
 0x278   :  { %5421 = vmatpush1.bf16.msra.mxu0 %v8214_v13  ;;  %5483 = vmatprep.subr.bf16.mxu1 %v8231_v14  ;;  %v8274_v13 = vld [vmem:[#allocation3 + $0xd60] ss:$28 sps:$4 sm:$0xff]  }
 0x279   :  { %5422 = vmatprep.subr.bf16.mxu0 %v8222_v16 }
 0x27b   :  { %5484 = vmatpush2.bf16.msra.mxu1 %v8229_v22 }
 0x27c   :  { %5423 = vmatpush1.bf16.msra.mxu0 %v8220_v21  ;;  %5485 = vmatprep.subr.bf16.mxu1 %v8237_v18  ;;  %v8282_v21 = vld [vmem:[#allocation3 + $0xd2c] ss:$28 sps:$4 sm:$0xff]  }
 0x27d   :  { %5424 = vmatprep.subr.bf16.mxu0 %v8228_v20 }
 0x27f   :  { %5486 = vmatpush2.bf16.msra.mxu1 %v8235_v23  ;;  %v8289_v23 = vld [vmem:[#allocation3 + $0xb70] ss:$28 sps:$4 sm:$0xff]  }
 0x280   :  { %5425 = vmatpush1.bf16.msra.mxu0 %v8226_v24  ;;  %5487 = vmatprep.subr.bf16.mxu1 %v8243_v3  ;;  %v8280_v3 = vld [vmem:[#allocation3 + $0xd28] ss:$28 sps:$4 sm:$0xff]  }
 0x281   :  { %5426 = vmatprep.subr.bf16.mxu0 %v8234_v25  ;;  %v8297_v25 = vld [vmem:[#allocation3 + $0xb3c] ss:$28 sps:$4 sm:$0xff]  }
 0x283   :  { %5488 = vmatpush2.bf16.msra.mxu1 %v8241_v26 }
 0x284   :  { %5427 = vmatpush1.bf16.msra.mxu0 %v8232_v27  ;;  %5551 = vmatprep.subr.bf16.mxu1 %v8249_v8  ;;  %v8288_v27 = vld [vmem:[#allocation3 + $0xcf4] ss:$28 sps:$4 sm:$0xff]  }
 0x285   :  { %5428 = vmatprep.subr.bf16.mxu0 %v8240_v28  ;;  %v8295_v8 = vld [vmem:[#allocation3 + $0xb38] ss:$28 sps:$4 sm:$0xff]   ;;  %v8286_v28 = vld [vmem:[#allocation3 + $0xcf0] ss:$28 sps:$4 sm:$0xff]  }
 0x286   :  { %5490 = vmatmul.mubr.bf16.vlgmr.msra.gmra.mxu1 %v8862_v41 }
 0x287   :  { %5552 = vmatpush1.bf16.msra.mxu1 %v8247_v29  ;;  %5571 = vmatprep.mubr.bf16.mxu1 %v8695_v19  ;;  %v8303_v29 = vld [vmem:[#allocation3 + $0xb04] ss:$28 sps:$4 sm:$0xff]  }
 0x288   :  { %5429 = vmatpush1.bf16.msra.mxu0 %v8238_v30  ;;  %5553 = vmatprep.subr.bf16.mxu1 %v8255_v31  ;;  %v8294_v30 = vld [vmem:[#allocation3 + $0xcbc] ss:$28 sps:$4 sm:$0xff]  }
 0x289   :  { %5430 = vmatprep.subr.bf16.mxu0 %v8246_v32  ;;  %v8301_v31 = vld [vmem:[#allocation3 + $0xb00] ss:$28 sps:$4 sm:$0xff]   ;;  %v8292_v32 = vld [vmem:[#allocation3 + $0xcb8] ss:$28 sps:$4 sm:$0xff]  }
 0x28b   :  { %5554 = vmatpush1.bf16.msra.mxu1 %v8253_v12  ;;  %v8309_v12 = vld [vmem:[#allocation3 + $0xe4c] ss:$28 sps:$4 sm:$0xff]  }
 0x28c   :  { %5431 = vmatpush1.bf16.msra.mxu0 %v8244_v33  ;;  %5580 = vmatprep.subr.bf16.mxu1 %v8261_v34  ;;  %v8300_v33 = vld [vmem:[#allocation3 + $0x1384] ss:$28 sps:$4 sm:$0xff]  }
 0x28d   :  { %5432 = vmatprep.subr.bf16.mxu0 %v8252_v35  ;;  %v8307_v34 = vld [vmem:[#allocation3 + $0xe48] ss:$28 sps:$4 sm:$0xff]   ;;  %v8298_v35 = vld [vmem:[#allocation3 + $0x1380] ss:$28 sps:$4 sm:$0xff]  }
 0x28e   :  { %7225 = vmatmul.mubr.msk.bf16.vlgmr.msra.gmra.mxu1 %vm2326_vm0, %v8887_v61 }
 0x28f   :  { %5581 = vmatpush1.bf16.msra.mxu1 %v8259_v39  ;;  %5612 = vmatprep.mubr.bf16.mxu1 %v8838_v10  ;;  %v8306_v39 = vld [vmem:[#allocation3 + $0x134c] ss:$28 sps:$4 sm:$0xff]  }
 0x290   :  { %5433 = vmatpush2.bf16.msra.mxu0 %v8250_v43  ;;  %5582 = vmatprep.subr.bf16.mxu1 %v8267_v60  ;;  %v8315_v43 = vld [vmem:[#allocation3 + $0xe14] ss:$28 sps:$4 sm:$0xff]  }
 0x291   :  { %5434 = vmatprep.subr.bf16.mxu0 %v8258_v38  ;;  %v8313_v60 = vld [vmem:[#allocation3 + $0xe10] ss:$28 sps:$4 sm:$0xff]   ;;  %v8304_v38 = vld [vmem:[#allocation3 + $0x1348] ss:$28 sps:$4 sm:$0xff]  }
 0x293   :  { %5583 = vmatpush1.bf16.msra.mxu1 %v8265_v52  ;;  %v8321_v52 = vld [vmem:[#allocation3 + $0xddc] ss:$28 sps:$4 sm:$0xff]  }
 0x294   :  { %5435 = vmatpush2.bf16.msra.mxu0 %v8256_v45  ;;  %5584 = vmatprep.subr.bf16.mxu1 %v8273_v15  ;;  %v8312_v45 = vld [vmem:[#allocation3 + $0x1314] ss:$28 sps:$4 sm:$0xff]  }
 0x295   :  { %5436 = vmatprep.subr.bf16.mxu0 %v8264_v46  ;;  %v8319_v15 = vld [vmem:[#allocation3 + $0xdd8] ss:$28 sps:$4 sm:$0xff]   ;;  %v8310_v46 = vld [vmem:[#allocation3 + $0x1310] ss:$28 sps:$4 sm:$0xff]  }
 0x297   :  { %5585 = vmatpush1.bf16.msra.mxu1 %v8271_v47  ;;  %v8327_v47 = vld [vmem:[#allocation3 + $0xda4] ss:$28 sps:$4 sm:$0xff]  }
 0x298   :  { %5437 = vmatpush2.bf16.msra.mxu0 %v8262_v50  ;;  %5586 = vmatprep.subr.bf16.mxu1 %v8279_v53  ;;  %v8318_v50 = vld [vmem:[#allocation3 + $0x12dc] ss:$28 sps:$4 sm:$0xff]  }
 0x299   :  { %5438 = vmatprep.subr.bf16.mxu0 %v8270_v54  ;;  %v8316_v53 = vld [vmem:[#allocation3 + $0x12d8] ss:$28 sps:$4 sm:$0xff]   ;;  %v8333_v54 = vld [vmem:[#allocation3 + $0xd6c] ss:$28 sps:$4 sm:$0xff]  }
 0x29a   :  { %v5327_v7 = vpop.f32.mrf.mxu0 }
 0x29b   :  { %v5286_v2 = vpop.f32.mrf.mxu1  ;;  %5587 = vmatpush1.bf16.msra.mxu1 %v8277_v57  ;;  %v8331_v57 = vld [vmem:[#allocation3 + $0xd68] ss:$28 sps:$4 sm:$0xff]  }
 0x29c   :  { %v5287_v5 = vadd.f32 %v5286_v2, %v3417_v56  ;;  %5439 = vmatpush2.bf16.msra.mxu0 %v8268_v58  ;;  %5588 = vmatprep.subr.bf16.mxu1 %v8285_v59  ;;  %v5329_v22 = vpop.f32.mrf.mxu0  ;;  %v8324_v56 = vld [vmem:[#allocation3 + $0x12a4] ss:$28 sps:$4 sm:$0xff]   ;;  %v8339_v59 = vld [vmem:[#allocation3 + $0xd34] ss:$28 sps:$4 sm:$0xff]  }
 0x29d   :  { %v5288_v11 = vpop.f32.mrf.mxu1  ;;  %5440 = vmatprep.subr.bf16.mxu0 %v8276_v1  ;;  %v8322_v58 = vld [vmem:[#allocation3 + $0x12a0] ss:$28 sps:$4 sm:$0xff]   ;;  %v8337_v1 = vld [vmem:[#allocation3 + $0xd30] ss:$28 sps:$4 sm:$0xff]   ;;  %v8328_v2 = vld [vmem:[#allocation3 + $0x1268] ss:$28 sps:$4 sm:$0xff]  }
 0x29e   :  { %v5289_v14 = vadd.f32 %v5288_v11, %v3421_v63  ;;  %v8901_v16 = vadd.f32 %v5327_v7, %v5287_v5  ;;  %v5331_v44 = vpop.f32.mrf.mxu0  ;;  %v8330_v63 = vld [vmem:[#allocation3 + $0x126c] ss:$28 sps:$4 sm:$0xff]   ;;  %v8345_v5 = vld [vmem:[#allocation3 + $0xcfc] ss:$28 sps:$4 sm:$0xff]   ;;  %v8336_v7 = vld [vmem:[#allocation3 + $0x1234] ss:$28 sps:$4 sm:$0xff]  }
 0x29f   :  { %v5290_v18 = vpop.f32.mrf.mxu1  ;;  %5589 = vmatpush1.bf16.msra.mxu1 %v8283_v9  ;;  %v8343_v9 = vld [vmem:[#allocation3 + $0xcf8] ss:$28 sps:$4 sm:$0xff]   ;;  %v8334_v11 = vld [vmem:[#allocation3 + $0x1230] ss:$28 sps:$4 sm:$0xff]   ;;  %v8355_v44 = vld [vmem:[#allocation3 + $0x1388] ss:$28 sps:$4 sm:$0xff]  }
 0x2a0   :  { %v8903_v20 = vadd.f32 %v5329_v22, %v5289_v14  ;;  %5441 = vmatpush2.bf16.msra.mxu0 %v8274_v13  ;;  %5590 = vmatprep.subr.bf16.mxu1 %v8291_v40  ;;  %v5332_v26 = vpop.f32.mrf.mxu0  ;;  %v8351_v13 = vld [vmem:[#allocation3 + $0xcc4] ss:$28 sps:$4 sm:$0xff]   ;;  %v8342_v40 = vld [vmem:[#allocation3 + $0x11fc] ss:$28 sps:$4 sm:$0xff]  }
 0x2a1   :  { %v5291_v24 = vpop.f32.mrf.mxu1  ;;  %5442 = vmatprep.subr.bf16.mxu0 %v8282_v21  ;;  %v8349_v14 = vld [vmem:[#allocation3 + $0xcc0] ss:$28 sps:$4 sm:$0xff]   ;;  %v8340_v22 = vld [vmem:[#allocation3 + $0x11f8] ss:$28 sps:$4 sm:$0xff]   ;;  %v8357_v21 = vld [vmem:[#allocation3 + $0x138c] ss:$28 sps:$4 sm:$0xff]  }
 0x2a2   :  { %v8348_v18 = vld [vmem:[#allocation3 + $0x1544] ss:$28 sps:$4 sm:$0xff]   ;;  %v8363_v24 = vld [vmem:[#allocation3 + $0x1354] ss:$28 sps:$4 sm:$0xff]  }
 0x2a3   :  { %5591 = vmatpush1.bf16.msra.mxu1 %v8289_v23  ;;  %v8346_v23 = vld [vmem:[#allocation3 + $0x1540] ss:$28 sps:$4 sm:$0xff]   ;;  %v8352_v26 = vld [vmem:[#allocation3 + $0x1508] ss:$28 sps:$4 sm:$0xff]  }
 0x2a4   :  { %5443 = vmatpush2.bf16.msra.mxu0 %v8280_v3  ;;  %5592 = vmatprep.subr.bf16.mxu1 %v8297_v25  ;;  %v8354_v3 = vld [vmem:[#allocation3 + $0x150c] ss:$28 sps:$4 sm:$0xff]  }
 0x2a5   :  { %5444 = vmatprep.subr.bf16.mxu0 %v8288_v27  ;;  %v8361_v25 = vld [vmem:[#allocation3 + $0x1350] ss:$28 sps:$4 sm:$0xff]   ;;  %v8369_v27 = vld [vmem:[#allocation3 + $0x131c] ss:$28 sps:$4 sm:$0xff]  }
 0x2a7   :  { %5593 = vmatpush1.bf16.msra.mxu1 %v8295_v8  ;;  %v8360_v8 = vld [vmem:[#allocation3 + $0x14d4] ss:$28 sps:$4 sm:$0xff]  }
 0x2a8   :  { %5445 = vmatpush2.bf16.msra.mxu0 %v8286_v28  ;;  %5594 = vmatprep.subr.bf16.mxu1 %v8303_v29  ;;  %v8367_v28 = vld [vmem:[#allocation3 + $0x1318] ss:$28 sps:$4 sm:$0xff]   ;;  %v8358_v29 = vld [vmem:[#allocation3 + $0x14d0] ss:$28 sps:$4 sm:$0xff]  }
 0x2a9   :  { %5446 = vmatprep.subr.bf16.mxu0 %v8294_v30  ;;  %v8375_v30 = vld [vmem:[#allocation3 + $0x12e4] ss:$28 sps:$4 sm:$0xff]  }
 0x2ab   :  { %5595 = vmatpush1.bf16.msra.mxu1 %v8301_v31  ;;  %v8366_v31 = vld [vmem:[#allocation3 + $0x149c] ss:$28 sps:$4 sm:$0xff]  }
 0x2ac   :  { %5447 = vmatpush2.bf16.msra.mxu0 %v8292_v32  ;;  %5596 = vmatprep.subr.bf16.mxu1 %v8309_v12  ;;  %v8373_v32 = vld [vmem:[#allocation3 + $0x12e0] ss:$28 sps:$4 sm:$0xff]   ;;  %v8364_v12 = vld [vmem:[#allocation3 + $0x1498] ss:$28 sps:$4 sm:$0xff]  }
 0x2ad   :  { %5498 = vmatprep.subr.bf16.mxu0 %v8300_v33  ;;  %v8381_v33 = vld [vmem:[#allocation3 + $0x12ac] ss:$28 sps:$4 sm:$0xff]  }
 0x2af   :  { %5449 = vmatmul.mubr.bf16.vlgmr.msra.gmra.mxu0 %v8860_v42  ;;  %5597 = vmatpush2.bf16.msra.mxu1 %v8307_v34  ;;  %v8372_v34 = vld [vmem:[#allocation3 + $0x1464] ss:$28 sps:$4 sm:$0xff]  }
 0x2b0   :  { %5499 = vmatpush1.bf16.msra.mxu0 %v8298_v35  ;;  %5530 = vmatprep.mubr.bf16.mxu0 %v8875_v4  ;;  %v8379_v35 = vld [vmem:[#allocation3 + $0x12a8] ss:$28 sps:$4 sm:$0xff]  }
 0x2b1   :  { %5500 = vmatprep.subr.bf16.mxu0 %v8306_v39  ;;  %5598 = vmatprep.subr.bf16.mxu1 %v8315_v43  ;;  %v8370_v39 = vld [vmem:[#allocation3 + $0x1460] ss:$28 sps:$4 sm:$0xff]   ;;  %v8387_v43 = vld [vmem:[#allocation3 + $0x1274] ss:$28 sps:$4 sm:$0xff]  }
 0x2b3   :  { %5599 = vmatpush2.bf16.msra.mxu1 %v8313_v60  ;;  %v8378_v60 = vld [vmem:[#allocation3 + $0x142c] ss:$28 sps:$4 sm:$0xff]  }
 0x2b4   :  { %5501 = vmatpush1.bf16.msra.mxu0 %v8304_v38  ;;  %5600 = vmatprep.subr.bf16.mxu1 %v8321_v52  ;;  %v8385_v38 = vld [vmem:[#allocation3 + $0x1270] ss:$28 sps:$4 sm:$0xff]   ;;  %v8376_v52 = vld [vmem:[#allocation3 + $0x1428] ss:$28 sps:$4 sm:$0xff]  }
 0x2b5   :  { %5502 = vmatprep.subr.bf16.mxu0 %v8312_v45  ;;  %v8393_v45 = vld [vmem:[#allocation3 + $0x123c] ss:$28 sps:$4 sm:$0xff]  }
 0x2b7   :  { %5601 = vmatpush2.bf16.msra.mxu1 %v8319_v15  ;;  %v8384_v15 = vld [vmem:[#allocation3 + $0x13f4] ss:$28 sps:$4 sm:$0xff]  }
 0x2b8   :  { %5503 = vmatpush1.bf16.msra.mxu0 %v8310_v46  ;;  %5602 = vmatprep.subr.bf16.mxu1 %v8327_v47  ;;  %v8391_v46 = vld [vmem:[#allocation3 + $0x1238] ss:$28 sps:$4 sm:$0xff]   ;;  %v8382_v47 = vld [vmem:[#allocation3 + $0x13f0] ss:$28 sps:$4 sm:$0xff]  }
 0x2b9   :  { %5504 = vmatprep.subr.bf16.mxu0 %v8318_v50  ;;  %v8399_v50 = vld [vmem:[#allocation3 + $0x1204] ss:$28 sps:$4 sm:$0xff]  }
 0x2bb   :  { %5603 = vmatpush2.bf16.msra.mxu1 %v8325_v51  ;;  %v8390_v51 = vld [vmem:[#allocation3 + $0x13bc] ss:$28 sps:$4 sm:$0xff]  }
 0x2bc   :  { %5505 = vmatpush1.bf16.msra.mxu0 %v8316_v53  ;;  %5604 = vmatprep.subr.bf16.mxu1 %v8333_v54  ;;  %v8397_v53 = vld [vmem:[#allocation3 + $0x1200] ss:$28 sps:$4 sm:$0xff]   ;;  %v8388_v54 = vld [vmem:[#allocation3 + $0x13b8] ss:$28 sps:$4 sm:$0xff]  }
 0x2bd   :  { %5506 = vmatprep.subr.bf16.mxu0 %v8324_v56  ;;  %v8405_v56 = vld [vmem:[#allocation3 + $0x154c] ss:$28 sps:$4 sm:$0xff]  }
 0x2bf   :  { %5605 = vmatpush2.bf16.msra.mxu1 %v8331_v57  ;;  %v8396_v57 = vld [vmem:[#allocation3 + $0x100c] ss:$28 sps:$4 sm:$0xff]  }
 0x2c0   :  { %5507 = vmatpush1.bf16.msra.mxu0 %v8322_v58  ;;  %5606 = vmatprep.subr.bf16.mxu1 %v8339_v59  ;;  %v8403_v58 = vld [vmem:[#allocation3 + $0x1548] ss:$28 sps:$4 sm:$0xff]  }
 0x2c1   :  { %5508 = vmatprep.subr.bf16.mxu0 %v8330_v63  ;;  %v8394_v59 = vld [vmem:[#allocation3 + $0x1008] ss:$28 sps:$4 sm:$0xff]   ;;  %v8402_v63 = vld [vmem:[#allocation3 + $0xfd4] ss:$28 sps:$4 sm:$0xff]  }
 0x2c3   :  { %5607 = vmatpush2.bf16.msra.mxu1 %v8337_v1  ;;  %v8411_v1 = vld [vmem:[#allocation3 + $0x1514] ss:$28 sps:$4 sm:$0xff]  }
 0x2c4   :  { %5509 = vmatpush1.bf16.msra.mxu0 %v8328_v2  ;;  %5608 = vmatprep.subr.bf16.mxu1 %v8345_v5  ;;  %v8409_v2 = vld [vmem:[#allocation3 + $0x1510] ss:$28 sps:$4 sm:$0xff]  }
 0x2c5   :  { %5510 = vmatprep.subr.bf16.mxu0 %v8336_v7  ;;  %v8400_v5 = vld [vmem:[#allocation3 + $0xfd0] ss:$28 sps:$4 sm:$0xff]   ;;  %v8417_v7 = vld [vmem:[#allocation3 + $0x14dc] ss:$28 sps:$4 sm:$0xff]  }
 0x2c7   :  { %5609 = vmatpush2.bf16.msra.mxu1 %v8343_v9  ;;  %v8408_v9 = vld [vmem:[#allocation3 + $0xf9c] ss:$28 sps:$4 sm:$0xff]  }
 0x2c8   :  { %5511 = vmatpush1.bf16.msra.mxu0 %v8334_v11  ;;  %5610 = vmatprep.subr.bf16.mxu1 %v8351_v13  ;;  %v8415_v11 = vld [vmem:[#allocation3 + $0x14d8] ss:$28 sps:$4 sm:$0xff]  }
 0x2c9   :  { %5512 = vmatprep.subr.bf16.mxu0 %v8342_v40  ;;  %v8406_v13 = vld [vmem:[#allocation3 + $0xf98] ss:$28 sps:$4 sm:$0xff]   ;;  %v8423_v40 = vld [vmem:[#allocation3 + $0x14a4] ss:$28 sps:$4 sm:$0xff]  }
 0x2cb   :  { %5611 = vmatpush2.bf16.msra.mxu1 %v8349_v14  ;;  %v8414_v14 = vld [vmem:[#allocation3 + $0xf64] ss:$28 sps:$4 sm:$0xff]  }
 0x2cc   :  { %5513 = vmatpush1.bf16.msra.mxu0 %v8340_v22  ;;  %5662 = vmatprep.subr.bf16.mxu1 %v8357_v21  ;;  %v8421_v22 = vld [vmem:[#allocation3 + $0x14a0] ss:$28 sps:$4 sm:$0xff]  }
 0x2cd   :  { %5514 = vmatprep.subr.bf16.mxu0 %v8348_v18  ;;  %v8412_v21 = vld [vmem:[#allocation3 + $0xf60] ss:$28 sps:$4 sm:$0xff]   ;;  %v8429_v18 = vld [vmem:[#allocation3 + $0x146c] ss:$28 sps:$4 sm:$0xff]  }
 0x2ce   :  { %5613 = vmatmul.mubr.bf16.vlgmr.msra.gmra.mxu1 %v8860_v42 }
 0x2cf   :  { %5663 = vmatpush1.bf16.msra.mxu1 %v8355_v44  ;;  %5694 = vmatprep.mubr.bf16.mxu1 %v8875_v4  ;;  %v8420_v44 = vld [vmem:[#allocation3 + $0xf2c] ss:$28 sps:$4 sm:$0xff]  }
 0x2d0   :  { %5515 = vmatpush2.bf16.msra.mxu0 %v8346_v23  ;;  %5664 = vmatprep.subr.bf16.mxu1 %v8363_v24  ;;  %v8427_v23 = vld [vmem:[#allocation3 + $0x1468] ss:$28 sps:$4 sm:$0xff]  }
 0x2d1   :  { %5516 = vmatprep.subr.bf16.mxu0 %v8354_v3  ;;  %v8418_v24 = vld [vmem:[#allocation3 + $0xf28] ss:$28 sps:$4 sm:$0xff]   ;;  %v8435_v3 = vld [vmem:[#allocation3 + $0x1434] ss:$28 sps:$4 sm:$0xff]  }
 0x2d3   :  { %5665 = vmatpush1.bf16.msra.mxu1 %v8361_v25  ;;  %v8426_v25 = vld [vmem:[#allocation3 + $0xef4] ss:$28 sps:$4 sm:$0xff]  }
 0x2d4   :  { %5517 = vmatpush2.bf16.msra.mxu0 %v8352_v26  ;;  %5666 = vmatprep.subr.bf16.mxu1 %v8369_v27  ;;  %v8433_v26 = vld [vmem:[#allocation3 + $0x1430] ss:$28 sps:$4 sm:$0xff]  }
 0x2d5   :  { %5518 = vmatprep.subr.bf16.mxu0 %v8360_v8  ;;  %v8424_v27 = vld [vmem:[#allocation3 + $0xef0] ss:$28 sps:$4 sm:$0xff]   ;;  %v8441_v8 = vld [vmem:[#allocation3 + $0x13fc] ss:$28 sps:$4 sm:$0xff]  }
 0x2d7   :  { %5667 = vmatpush1.bf16.msra.mxu1 %v8367_v28  ;;  %v8432_v28 = vld [vmem:[#allocation3 + $0xebc] ss:$28 sps:$4 sm:$0xff]  }
 0x2d8   :  { %5519 = vmatpush2.bf16.msra.mxu0 %v8358_v29  ;;  %5668 = vmatprep.subr.bf16.mxu1 %v8375_v30  ;;  %v8439_v29 = vld [vmem:[#allocation3 + $0x13f8] ss:$28 sps:$4 sm:$0xff]  }
 0x2d9   :  { %5520 = vmatprep.subr.bf16.mxu0 %v8366_v31  ;;  %v8430_v30 = vld [vmem:[#allocation3 + $0xeb8] ss:$28 sps:$4 sm:$0xff]   ;;  %v8447_v31 = vld [vmem:[#allocation3 + $0x13c4] ss:$28 sps:$4 sm:$0xff]  }
 0x2db   :  { %5669 = vmatpush1.bf16.msra.mxu1 %v8373_v32  ;;  %v8438_v32 = vld [vmem:[#allocation3 + $0xe84] ss:$28 sps:$4 sm:$0xff]  }
 0x2dc   :  { %5521 = vmatpush2.bf16.msra.mxu0 %v8364_v12  ;;  %5670 = vmatprep.subr.bf16.mxu1 %v8381_v33  ;;  %v8445_v33 = vld [vmem:[#allocation3 + $0x13c0] ss:$28 sps:$4 sm:$0xff]  }
 0x2dd   :  { %5522 = vmatprep.subr.bf16.mxu0 %v8372_v34  ;;  %v8436_v34 = vld [vmem:[#allocation3 + $0xe80] ss:$28 sps:$4 sm:$0xff]  }
 0x2df   :  { %5671 = vmatpush1.bf16.msra.mxu1 %v8379_v35 }
 0x2e0   :  { %5523 = vmatpush2.bf16.msra.mxu0 %v8370_v39  ;;  %5672 = vmatprep.subr.bf16.mxu1 %v8387_v43  ;;  %v8451_v39 = vld [vmem:[#allocation3 + $0x1550] ss:$28 sps:$4 sm:$0xff]  }
 0x2e1   :  { %5524 = vmatprep.subr.bf16.mxu0 %v8378_v60  ;;  %v8444_v43 = vld [vmem:[#allocation3 + $0x11cc] ss:$28 sps:$4 sm:$0xff]  }
 0x2e3   :  { %5673 = vmatpush1.bf16.msra.mxu1 %v8385_v38  ;;  %v8455_v38 = vld [vmem:[#allocation3 + $0x1390] ss:$28 sps:$4 sm:$0xff]  }
 0x2e4   :  { %5525 = vmatpush2.bf16.msra.mxu0 %v8376_v52  ;;  %5674 = vmatprep.subr.bf16.mxu1 %v8393_v45  ;;  %v8442_v52 = vld [vmem:[#allocation3 + $0x11c8] ss:$28 sps:$4 sm:$0xff]  }
 0x2e5   :  { %5526 = vmatprep.subr.bf16.mxu0 %v8384_v15  ;;  %v8456_v15 = vld [vmem:[#allocation3 + $0x1518] ss:$28 sps:$4 sm:$0xff]  }
 0x2e7   :  { %5675 = vmatpush1.bf16.msra.mxu1 %v8391_v46  ;;  %v8450_v46 = vld [vmem:[#allocation3 + $0x1194] ss:$28 sps:$4 sm:$0xff]  }
 0x2e8   :  { %5527 = vmatpush2.bf16.msra.mxu0 %v8382_v47  ;;  %5676 = vmatprep.subr.bf16.mxu1 %v8399_v50  ;;  %v8460_v47 = vld [vmem:[#allocation3 + $0x1358] ss:$28 sps:$4 sm:$0xff]   ;;  %v8448_v50 = vld [vmem:[#allocation3 + $0x1190] ss:$28 sps:$4 sm:$0xff]  }
 0x2e9   :  { %5528 = vmatprep.subr.bf16.mxu0 %v8390_v51  ;;  %v8461_v51 = vld [vmem:[#allocation3 + $0x14e0] ss:$28 sps:$4 sm:$0xff]  }
 0x2eb   :  { %5677 = vmatpush1.bf16.msra.mxu1 %v8397_v53  ;;  %v8454_v53 = vld [vmem:[#allocation3 + $0x115c] ss:$28 sps:$4 sm:$0xff]  }
 0x2ec   :  { %5529 = vmatpush2.bf16.msra.mxu0 %v8388_v54  ;;  %5678 = vmatprep.subr.bf16.mxu1 %v8405_v56  ;;  %v8465_v54 = vld [vmem:[#allocation3 + $0x1320] ss:$28 sps:$4 sm:$0xff]   ;;  %v8452_v56 = vld [vmem:[#allocation3 + $0x1158] ss:$28 sps:$4 sm:$0xff]  }
 0x2ed   :  { %5621 = vmatprep.subr.bf16.mxu0 %v8396_v57  ;;  %v8466_v57 = vld [vmem:[#allocation3 + $0x14a8] ss:$28 sps:$4 sm:$0xff]  }
 0x2ef   :  { %5531 = vmatmul.mubr.bf16.vlgmr.msra.gmra.mxu0 %v8877_v6  ;;  %5679 = vmatpush2.bf16.msra.mxu1 %v8403_v58  ;;  %v8459_v58 = vld [vmem:[#allocation3 + $0x1124] ss:$28 sps:$4 sm:$0xff]  }
 0x2f0   :  { %5622 = vmatpush1.bf16.msra.mxu0 %v8394_v59  ;;  %5653 = vmatprep.mubr.bf16.mxu0 %v8857_v36  ;;  %v8470_v59 = vld [vmem:[#allocation3 + $0x12e8] ss:$28 sps:$4 sm:$0xff]  }
 0x2f1   :  { %5623 = vmatprep.subr.bf16.mxu0 %v8402_v63  ;;  %5680 = vmatprep.subr.bf16.mxu1 %v8411_v1  ;;  %v8457_v63 = vld [vmem:[#allocation3 + $0x1120] ss:$28 sps:$4 sm:$0xff]   ;;  %v8464_v1 = vld [vmem:[#allocation3 + $0x10ec] ss:$28 sps:$4 sm:$0xff]  }
 0x2f3   :  { %5681 = vmatpush2.bf16.msra.mxu1 %v8409_v2  ;;  %v8475_v2 = vld [vmem:[#allocation3 + $0x12b0] ss:$28 sps:$4 sm:$0xff]  }
 0x2f4   :  { %5624 = vmatpush1.bf16.msra.mxu0 %v8400_v5  ;;  %5682 = vmatprep.subr.bf16.mxu1 %v8417_v7  ;;  %v8462_v5 = vld [vmem:[#allocation3 + $0x10e8] ss:$28 sps:$4 sm:$0xff]   ;;  %v8476_v7 = vld [vmem:[#allocation3 + $0x1438] ss:$28 sps:$4 sm:$0xff]  }
 0x2f5   :  { %5625 = vmatprep.subr.bf16.mxu0 %v8408_v9  ;;  %v8469_v9 = vld [vmem:[#allocation3 + $0x10b4] ss:$28 sps:$4 sm:$0xff]  }
 0x2f7   :  { %5683 = vmatpush2.bf16.msra.mxu1 %v8415_v11  ;;  %v8480_v11 = vld [vmem:[#allocation3 + $0x1278] ss:$28 sps:$4 sm:$0xff]  }
 0x2f8   :  { %5626 = vmatpush1.bf16.msra.mxu0 %v8406_v13  ;;  %5684 = vmatprep.subr.bf16.mxu1 %v8423_v40  ;;  %v8467_v13 = vld [vmem:[#allocation3 + $0x10b0] ss:$28 sps:$4 sm:$0xff]   ;;  %v8481_v40 = vld [vmem:[#allocation3 + $0x1400] ss:$28 sps:$4 sm:$0xff]  }
 0x2f9   :  { %5627 = vmatprep.subr.bf16.mxu0 %v8414_v14  ;;  %v8474_v14 = vld [vmem:[#allocation3 + $0x107c] ss:$28 sps:$4 sm:$0xff]  }
 0x2fb   :  { %5685 = vmatpush2.bf16.msra.mxu1 %v8421_v22  ;;  %v8485_v22 = vld [vmem:[#allocation3 + $0x1240] ss:$28 sps:$4 sm:$0xff]  }
 0x2fc   :  { %5628 = vmatpush1.bf16.msra.mxu0 %v8412_v21  ;;  %5686 = vmatprep.subr.bf16.mxu1 %v8429_v18  ;;  %v8472_v21 = vld [vmem:[#allocation3 + $0x1078] ss:$28 sps:$4 sm:$0xff]   ;;  %v8486_v18 = vld [vmem:[#allocation3 + $0x13c8] ss:$28 sps:$4 sm:$0xff]  }
 0x2fd   :  { %5629 = vmatprep.subr.bf16.mxu0 %v8420_v44  ;;  %v8479_v44 = vld [vmem:[#allocation3 + $0x1044] ss:$28 sps:$4 sm:$0xff]  }
 0x2ff   :  { %5687 = vmatpush2.bf16.msra.mxu1 %v8427_v23  ;;  %v8490_v23 = vld [vmem:[#allocation3 + $0x1208] ss:$28 sps:$4 sm:$0xff]  }
 0x300   :  { %5630 = vmatpush1.bf16.msra.mxu0 %v8418_v24  ;;  %5688 = vmatprep.subr.bf16.mxu1 %v8435_v3  ;;  %v8477_v24 = vld [vmem:[#allocation3 + $0x1040] ss:$28 sps:$4 sm:$0xff]   ;;  %v8541_v3 = vld [vmem:[#allocation8 + $0xf8] sm:$0xff]  }
 0x301   :  { %5631 = vmatprep.subr.bf16.mxu0 %v8426_v25  ;;  %v8484_v25 = vld [vmem:[#allocation3 + $0x15bc] ss:$28 sps:$4 sm:$0xff]  }
 0x303   :  { %5689 = vmatpush2.bf16.msra.mxu1 %v8433_v26  ;;  %v8542_v26 = vld [vmem:[#allocation8 + $0xb8] sm:$0xff]  }
 0x304   :  { %5632 = vmatpush1.bf16.msra.mxu0 %v8424_v27  ;;  %5690 = vmatprep.subr.bf16.mxu1 %v8441_v8  ;;  %v8482_v27 = vld [vmem:[#allocation3 + $0x15b8] ss:$28 sps:$4 sm:$0xff]   ;;  %v8489_v8 = vld [vmem:[#allocation3 + $0x1584] ss:$28 sps:$4 sm:$0xff]  }
 0x305   :  { %5633 = vmatprep.subr.bf16.mxu0 %v8432_v28  ;;  %v8543_v28 = vld [vmem:[#allocation8 + $0xf0] sm:$0xff]  }
 0x306   :  { %v8911_v12 = vpop.f32.mrf.mxu1 }
 0x307   :  { %5691 = vmatpush2.bf16.msra.mxu1 %v8439_v29  ;;  %v5369_v29 = vadd.f32 %v8911_v12, %v8901_v16  ;;  %v8491_v16 = vld [vmem:[#allocation3 + $0xe50] ss:$28 sps:$4 sm:$0xff]  }
 0x308   :  { %5634 = vmatpush1.bf16.msra.mxu0 %v8430_v30  ;;  %v8913_v35 = vpop.f32.mrf.mxu1  ;;  %5692 = vmatprep.subr.bf16.mxu1 %v8447_v31  ;;  %v8544_v31 = vld [vmem:[#allocation8 + $0xb0] sm:$0xff]  }
 0x309   :  { %5635 = vmatprep.subr.bf16.mxu0 %v8438_v32  ;;  %v5371_v32 = vadd.f32 %v8913_v35, %v8903_v20  ;;  %v8492_v35 = vld [vmem:[#allocation3 + $0xc90] ss:$28 sps:$4 sm:$0xff]  }
 0x30a   :  { %v5372_v60 = vpop.f32.mrf.mxu1 }
 0x30b   :  { %5693 = vmatpush2.bf16.msra.mxu1 %v8445_v33 }
 0x30c   :  { %5636 = vmatpush1.bf16.msra.mxu0 %v8436_v34  ;;  %v5373_v45 = vpop.f32.mrf.mxu1  ;;  %7393 = vmatprep.subr.bf16.mxu1 %v8451_v39  ;;  %v8487_v34 = vld [vmem:[#allocation3 + $0x1580] ss:$28 sps:$4 sm:$0xff]  }
 0x30d   :  { %5637 = vmatprep.subr.bf16.mxu0 %v8444_v43  ;;  %v8545_v39 = vld [vmem:[#allocation8 + $0xe8] sm:$0xff]   ;;  %v8547_v45 = vld [vmem:[#allocation8 + $0xe0] sm:$0xff]  }
 0x30e   :  { %5695 = vmatmul.mubr.bf16.vlgmr.msra.gmra.mxu1 %v8877_v6 }
 0x30f   :  { %7394 = vmatpush3.bf16.msra.mxu1 %v8455_v38  ;;  %5856 = vmatprep.mubr.bf16.mxu1 %v8875_v4  ;;  %v8471_v4 = vld [vmem:[#allocation3 + $0x1470] ss:$28 sps:$4 sm:$0xff]   ;;  %v8546_v38 = vld [vmem:[#allocation8 + $0xa8] sm:$0xff]  }
 0x310   :  { %5638 = vmatpush2.bf16.msra.mxu0 %v8442_v52  ;;  %7395 = vmatprep.subr.bf16.mxu1 %v8456_v15  ;;  %v8548_v15 = vld [vmem:[#allocation8 + $0xa0] sm:$0xff]  }
 0x311   :  { %5639 = vmatprep.subr.bf16.mxu0 %v8450_v46  ;;  %v8494_v46 = vld [vmem:[#allocation3 + $0xc58] ss:$28 sps:$4 sm:$0xff]  }
 0x313   :  { %7396 = vmatpush3.bf16.msra.mxu1 %v8460_v47  ;;  %v8549_v47 = vld [vmem:[#allocation8 + $0xd8] sm:$0xff]  }
 0x314   :  { %5640 = vmatpush2.bf16.msra.mxu0 %v8448_v50  ;;  %7397 = vmatprep.subr.bf16.mxu1 %v8461_v51  ;;  %v8495_v50 = vld [vmem:[#allocation3 + $0xde0] ss:$28 sps:$4 sm:$0xff]   ;;  %v8550_v51 = vld [vmem:[#allocation8 + $0x98] sm:$0xff]  }
 0x315   :  { %5641 = vmatprep.subr.bf16.mxu0 %v8454_v53  ;;  %v8496_v53 = vld [vmem:[#allocation3 + $0xc20] ss:$28 sps:$4 sm:$0xff]  }
 0x317   :  { %7398 = vmatpush3.bf16.msra.mxu1 %v8465_v54  ;;  %v8551_v54 = vld [vmem:[#allocation8 + $0xd0] sm:$0xff]  }
 0x318   :  { %5642 = vmatpush2.bf16.msra.mxu0 %v8452_v56  ;;  %7399 = vmatprep.subr.bf16.mxu1 %v8466_v57  ;;  %v8497_v56 = vld [vmem:[#allocation3 + $0xda8] ss:$28 sps:$4 sm:$0xff]  }
 0x319   :  { %5643 = vmatprep.subr.bf16.mxu0 %v8459_v58  ;;  %v8552_v57 = vld [vmem:[#allocation8 + $0x90] sm:$0xff]  }
 0x31a   :  { %v8498_v58 = vld [vmem:[#allocation3 + $0xbe8] ss:$28 sps:$4 sm:$0xff]  }
 0x31b   :  { %7400 = vmatpush3.bf16.msra.mxu1 %v8470_v59  ;;  %v8553_v59 = vld [vmem:[#allocation8 + $0xc8] sm:$0xff]  }
 0x31c   :  { %5644 = vmatpush2.bf16.msra.mxu0 %v8457_v63  ;;  %7401 = vmatprep.subr.bf16.mxu1 %v8471_v4  ;;  %v8554_v63 = vld [vmem:[#allocation8 + $0x88] sm:$0xff]   ;;  %v8500_v4 = vld [vmem:[#allocation3 + $0xbb0] ss:$28 sps:$4 sm:$0xff]  }
 0x31d   :  { %5645 = vmatprep.subr.bf16.mxu0 %v8464_v1  ;;  %v8555_v1 = vld [vmem:[#allocation8 + $0xc0] sm:$0xff]  }
 0x31f   :  { %7402 = vmatpush3.bf16.msra.mxu1 %v8475_v2  ;;  %v8501_v2 = vld [vmem:[#allocation3 + $0xd38] ss:$28 sps:$4 sm:$0xff]  }
 0x320   :  { %5646 = vmatpush2.bf16.msra.mxu0 %v8462_v5  ;;  %7403 = vmatprep.subr.bf16.mxu1 %v8476_v7  ;;  %v8556_v7 = vld [vmem:[#allocation8 + $0x80] sm:$0xff]  }
 0x321   :  { %5647 = vmatprep.subr.bf16.mxu0 %v8469_v9  ;;  %v8502_v9 = vld [vmem:[#allocation3 + $0xb78] ss:$28 sps:$4 sm:$0xff]  }
 0x323   :  { %7404 = vmatpush3.bf16.msra.mxu1 %v8480_v11 }
 0x324   :  { %5648 = vmatpush2.bf16.msra.mxu0 %v8467_v13  ;;  %7405 = vmatprep.subr.bf16.mxu1 %v8481_v40  ;;  %v8503_v13 = vld [vmem:[#allocation3 + $0xd00] ss:$28 sps:$4 sm:$0xff]  }
 0x325   :  { %5649 = vmatprep.subr.bf16.mxu0 %v8474_v14  ;;  %v8504_v14 = vld [vmem:[#allocation3 + $0xb40] ss:$28 sps:$4 sm:$0xff]  }
 0x327   :  { %7406 = vmatpush3.bf16.msra.mxu1 %v8485_v22 }
 0x328   :  { %5650 = vmatpush2.bf16.msra.mxu0 %v8472_v21  ;;  %7407 = vmatprep.subr.bf16.mxu1 %v8486_v18  ;;  %v8505_v21 = vld [vmem:[#allocation3 + $0xcc8] ss:$28 sps:$4 sm:$0xff]  }
 0x329   :  { %5651 = vmatprep.subr.bf16.mxu0 %v8479_v44  ;;  %v8506_v44 = vld [vmem:[#allocation3 + $0xb08] ss:$28 sps:$4 sm:$0xff]  }
 0x32b   :  { %7408 = vmatpush3.bf16.msra.mxu1 %v8490_v23 }
 0x32c   :  { %5652 = vmatpush2.bf16.msra.mxu0 %v8477_v24  ;;  %7440 = vmatprep.subr.bf16.mxu1 %v8541_v3  ;;  %v8507_v24 = vld [vmem:[#allocation3 + $0x11d0] ss:$28 sps:$4 sm:$0xff]  }
 0x32d   :  { %5715 = vmatprep.subr.bf16.mxu0 %v8484_v25  ;;  %v8508_v25 = vld [vmem:[#allocation3 + $0x1010] ss:$28 sps:$4 sm:$0xff]  }
 0x32e   :  { %5857 = vmatmul.mubr.bf16.vlgmr.msra.gmra.mxu1 %v8877_v6 }
 0x32f   :  { %5654 = vmatmul.mubr.bf16.vlgmr.msra.gmra.mxu0 %v8862_v41  ;;  %v5409_v30 = vpop.f32.mrf.mxu0  ;;  %7441 = vmatpush3.bf16.msra.mxu1 %v8542_v26 }
 0x330   :  { %v8923_v33 = vadd.f32 %v5409_v30, %v5369_v29  ;;  %5716 = vmatpush1.bf16.msra.mxu0 %v8482_v27  ;;  %5735 = vmatprep.mubr.bf16.mxu0 %v8695_v19  ;;  %v8493_v19 = vld [vmem:[#allocation3 + $0xe18] ss:$28 sps:$4 sm:$0xff]   ;;  %v8512_v29 = vld [vmem:[#allocation3 + $0xfa0] ss:$28 sps:$4 sm:$0xff]   ;;  %v8513_v30 = vld [vmem:[#allocation3 + $0x1128] ss:$28 sps:$4 sm:$0xff]  }
 0x331   :  { %v5411_v43 = vpop.f32.mrf.mxu0  ;;  %5717 = vmatprep.subr.bf16.mxu0 %v8489_v8  ;;  %7442 = vmatprep.subr.bf16.mxu1 %v8543_v28  ;;  %v8509_v27 = vld [vmem:[#allocation3 + $0x1198] ss:$28 sps:$4 sm:$0xff]   ;;  %v8511_v28 = vld [vmem:[#allocation3 + $0x1160] ss:$28 sps:$4 sm:$0xff]  }
 0x332   :  { %v5904_v6 = vmax.f32 %v8923_v33, 0.0  ;;  %v8927_v12 = vadd.f32 %v5411_v43, %v5371_v32  ;;  %v8510_v8 = vld [vmem:[#allocation3 + $0xfd8] ss:$28 sps:$4 sm:$0xff]   ;;  %v8515_v32 = vld [vmem:[#allocation3 + $0x10f0] ss:$28 sps:$4 sm:$0xff]  }
 0x333   :  { %v5413_v60 = vpop.f32.mrf.mxu0  ;;  %7443 = vmatpush3.bf16.msra.mxu1 %v8544_v31  ;;  %v8514_v31 = vld [vmem:[#allocation3 + $0xf68] ss:$28 sps:$4 sm:$0xff]   ;;  %v8519_v43 = vld [vmem:[#allocation3 + $0x1080] ss:$28 sps:$4 sm:$0xff]  }
 0x334   :  { %v5905_v20 = vmax.f32 %v8927_v12, 0.0  ;;  %5718 = vmatpush1.bf16.msra.mxu0 %v8487_v34  ;;  %7444 = vmatprep.subr.bf16.mxu1 %v8545_v39  ;;  %v8516_v34 = vld [vmem:[#allocation3 + $0xf30] ss:$28 sps:$4 sm:$0xff]   ;;  %v8517_v39 = vld [vmem:[#allocation3 + $0x10b8] ss:$28 sps:$4 sm:$0xff]  }
 0x335   :  { %v5414_v52 = vpop.f32.mrf.mxu0  ;;  %7349 = vmatprep.subr.bf16.mxu0 %v8491_v16  ;;  %v8521_v16 = vld [vmem:[#allocation3 + $0x1048] ss:$28 sps:$4 sm:$0xff]  }
 0x336   :  { %v8534_v12 = vld [vmem:[#allocation8 + $0x18] sm:$0xff]  }
 0x337   :  { %7226 = vmatmul.mubr.msk.bf16.vlgmr.msra.gmra.mxu0 %vm2326_vm0, %v8887_v61  ;;  %7445 = vmatpush3.bf16.msra.mxu1 %v8546_v38  ;;  %v8522_v38 = vld [vmem:[#allocation3 + $0xe88] ss:$28 sps:$4 sm:$0xff]  }
 0x338   :  { %7350 = vmatpush3.bf16.msra.mxu0 %v8492_v35  ;;  %5776 = vmatprep.mubr.bf16.mxu0 %v8838_v10  ;;  %v8499_v10 = vld [vmem:[#allocation3 + $0xd70] ss:$28 sps:$4 sm:$0xff]  }
 0x339   :  { %7351 = vmatprep.subr.bf16.mxu0 %v8493_v19  ;;  %7446 = vmatprep.subr.bf16.mxu1 %v8547_v45  ;;  %v8523_v19 = vld [vmem:[#allocation3 + $0x15c0] ss:$28 sps:$4 sm:$0xff]  }
 0x33b   :  { %7447 = vmatpush3.bf16.msra.mxu1 %v8548_v15  ;;  %v8524_v15 = vld [vmem:[#allocation3 + $0x1588] ss:$28 sps:$4 sm:$0xff]  }
 0x33c   :  { %7352 = vmatpush3.bf16.msra.mxu0 %v8494_v46  ;;  %7448 = vmatprep.subr.bf16.mxu1 %v8549_v47  ;;  %v8525_v46 = vld [vmem:[#allocation8 + $0x78] sm:$0xff]  }
 0x33d   :  { %7353 = vmatprep.subr.bf16.mxu0 %v8495_v50  ;;  %v8526_v47 = vld [vmem:[#allocation8 + $0x38] sm:$0xff]   ;;  %v8527_v50 = vld [vmem:[#allocation8 + $0x70] sm:$0xff]  }
 0x33f   :  { %7449 = vmatpush3.bf16.msra.mxu1 %v8550_v51  ;;  %v5926_v51 = vpack.c.bf16 %v5905_v20, %v5905_v20  ;;  %v8535_v20 = vld [vmem:[#allocation8 + $0x50] sm:$0xff]  }
 0x340   :  { %7354 = vmatpush3.bf16.msra.mxu0 %v8496_v53  ;;  %7450 = vmatprep.subr.bf16.mxu1 %v8551_v54  ;;  %v8529_v53 = vld [vmem:[#allocation8 + $0x68] sm:$0xff]  }
 0x341   :  { %7355 = vmatprep.subr.bf16.mxu0 %v8497_v56  ;;  %v8530_v54 = vld [vmem:[#allocation8 + $0x28] sm:$0xff]   ;;  %v8531_v56 = vld [vmem:[#allocation8 + $0x60] sm:$0xff]  }
 0x343   :  { %7451 = vmatpush3.bf16.msra.mxu1 %v8552_v57  ;;  %v8532_v57 = vld [vmem:[#allocation8 + $0x20] sm:$0xff]  }
 0x344   :  { %7356 = vmatpush3.bf16.msra.mxu0 %v8498_v58  ;;  %7452 = vmatprep.subr.bf16.mxu1 %v8553_v59  ;;  %v8533_v58 = vld [vmem:[#allocation8 + $0x58] sm:$0xff]  }
 0x345   :  { %7357 = vmatprep.subr.bf16.mxu0 %v8499_v10 }
 0x346   :  { %v8933_v5 = vpop.f32.mrf.mxu1 }
 0x347   :  { %7453 = vmatpush3.bf16.msra.mxu1 %v8554_v63  ;;  %v8537_v63 = vld [vmem:[#allocation8 + $0x48] sm:$0xff]  }
 0x348   :  { %7358 = vmatpush3.bf16.msra.mxu0 %v8500_v4  ;;  %v8935_v11 = vpop.f32.mrf.mxu1  ;;  %7454 = vmatprep.subr.bf16.mxu1 %v8555_v1  ;;  %v8538_v1 = vld [vmem:[#allocation8 + $0x8] sm:$0xff]  }
 0x349   :  { %7359 = vmatprep.subr.bf16.mxu0 %v8501_v2 }
 0x34a   :  { %v5495_v40 = vpop.f32.mrf.mxu1 }
 0x34b   :  { %7455 = vmatpush3.bf16.msra.mxu1 %v8556_v7  ;;  %v8539_v7 = vld [vmem:[#allocation8 + $0x40] sm:$0xff]   ;;  %v8558_v40 = vld [vmem:[#allocation8 + $0x138] sm:$0xff]  }
 0x34c   :  { %7360 = vmatpush3.bf16.msra.mxu0 %v8502_v9  ;;  %v5496_v22 = vpop.f32.mrf.mxu1  ;;  %7503 = vmatprep.subr.bf16.mxu1 %v8696_v55  ;;  %v8540_v9 = vld [vmem:[#allocation8] sm:$0xff]  }
 0x34d   :  { %7361 = vmatprep.subr.bf16.mxu0 %v8503_v13  ;;  %v8557_v13 = vld [vmem:[#allocation8 + $0x178] sm:$0xff]   ;;  %v8559_v22 = vld [vmem:[#allocation8 + $0x170] sm:$0xff]  }
 0x34e   :  { %v8938_v18 = vpop.f32.mrf.mxu1 }
 0x350   :  { %7362 = vmatpush3.bf16.msra.mxu0 %v8504_v14  ;;  %v8940_v23 = vpop.f32.mrf.mxu1  ;;  %v5925_v14 = vpack.c.bf16 %v5904_v6, %v5904_v6  ;;  %v8564_v6 = vld [vmem:[#allocation8 + $0x120] sm:$0xff]  }
 0x351   :  { %7363 = vmatprep.subr.bf16.mxu0 %v8505_v21  ;;  %v8560_v21 = vld [vmem:[#allocation8 + $0x130] sm:$0xff]  }
 0x352   :  { %v5577_v3 = vpop.f32.mrf.mxu1 }
 0x353   :  { %v8563_v3 = vld [vmem:[#allocation8 + $0x160] sm:$0xff]  }
 0x354   :  { %7364 = vmatpush3.bf16.msra.mxu0 %v8506_v44  ;;  %v5578_v26 = vpop.f32.mrf.mxu1  ;;  %v8561_v44 = vld [vmem:[#allocation8 + $0x168] sm:$0xff]  }
 0x355   :  { %7371 = vmatprep.subr.bf16.mxu0 %v8507_v24  ;;  %v8562_v24 = vld [vmem:[#allocation8 + $0x128] sm:$0xff]  }
 0x357   :  { %5777 = vmatmul.mubr.bf16.vlgmr.msra.gmra.mxu0 %v8860_v42  ;;  %v8518_v42 = vld [vmem:[#allocation3 + $0xef8] ss:$28 sps:$4 sm:$0xff]  }
 0x358   :  { %7372 = vmatpush3.bf16.msra.mxu0 %v8508_v25  ;;  %5816 = vmatprep.mubr.bf16.mxu0 %v8857_v36  ;;  %v8520_v36 = vld [vmem:[#allocation3 + $0xec0] ss:$28 sps:$4 sm:$0xff]   ;;  %v8965_v25 = vld [vmem:[#allocation6 + $0x7] sm:$0x7f] }
 0x359   :  { %7373 = vmatprep.subr.bf16.mxu0 %v8509_v27  ;;  %v3425_v26 = vrot.slane %v8965_v25, %v501_v48  ;;  %v3429_v33 = vrot.slane %v8965_v25, %v505_v49  ;;  %v8565_v27 = vld [vmem:[#allocation8 + $0x158] sm:$0xff]   ;;  %v8568_v49 = vld [vmem:[#allocation8 + $0x110] sm:$0xff]  }
 0x35c   :  { %7374 = vmatpush3.bf16.msra.mxu0 %v8510_v8 }
 0x35d   :  { %7375 = vmatprep.subr.bf16.mxu0 %v8511_v28 }
 0x360   :  { %7376 = vmatpush3.bf16.msra.mxu0 %v8512_v29  ;;  %v8566_v29 = vld [vmem:[#allocation8 + $0x118] sm:$0xff]  }
 0x361   :  { %7377 = vmatprep.subr.bf16.mxu0 %v8513_v30  ;;  %v8567_v30 = vld [vmem:[#allocation8 + $0x150] sm:$0xff]  }
 0x364   :  { %7378 = vmatpush3.bf16.msra.mxu0 %v8514_v31 }
 0x365   :  { %7379 = vmatprep.subr.bf16.mxu0 %v8515_v32 }
 0x368   :  { %7380 = vmatpush3.bf16.msra.mxu0 %v8516_v34 }
 0x369   :  { %7381 = vmatprep.subr.bf16.mxu0 %v8517_v39 }
 0x36c   :  { %7382 = vmatpush3.bf16.msra.mxu0 %v8518_v42  ;;  %v8569_v42 = vld [vmem:[#allocation8 + $0x148] sm:$0xff]  }
 0x36d   :  { %7383 = vmatprep.subr.bf16.mxu0 %v8519_v43 }
 0x36f   :  { %v8944_v60 = vpop.f32.mrf.mxu0 }
 0x370   :  { %7384 = vmatpush3.bf16.msra.mxu0 %v8520_v36  ;;  %v5451_v8 = vadd.f32 %v8944_v60, %v3425_v26 }
 0x371   :  { %v8946_v35 = vpop.f32.mrf.mxu0  ;;  %7385 = vmatprep.subr.bf16.mxu0 %v8521_v16 }
 0x372   :  { %v5453_v28 = vadd.f32 %v8946_v35, %v3429_v33  ;;  %v5492_v31 = vadd.f32 %v8933_v5, %v5451_v8  ;;  %v8570_v35 = vld [vmem:[#allocation8 + $0x108] sm:$0xff]   ;;  %v8571_v5 = vld [vmem:[#allocation8 + $0x140] sm:$0xff]  }
 0x373   :  { %v5454_v52 = vpop.f32.mrf.mxu0 }
 0x374   :  { %7386 = vmatpush3.bf16.msra.mxu0 %v8522_v38  ;;  %v5494_v34 = vadd.f32 %v8935_v11, %v5453_v28  ;;  %v8572_v11 = vld [vmem:[#allocation8 + $0x100] sm:$0xff]  }
 0x375   :  { %v5455_v45 = vpop.f32.mrf.mxu0  ;;  %7495 = vmatprep.subr.bf16.mxu0 %v8696_v55 }
 0x377   :  { %5817 = vmatmul.mubr.bf16.vlgmr.msra.gmra.mxu0 %v8862_v41  ;;  %v8528_v41 = vld [vmem:[#allocation8 + $0x30] sm:$0xff]  }
 0x378   :  { %7496 = vmatpush3.bf16.msra.mxu0 %v8523_v19  ;;  %7499 = vmatprep.mubr.msk.bf16.mxu0 %vm8697_vm1, %v8696_v55 }
 0x379   :  { %7497 = vmatprep.subr.bf16.mxu0 %v8696_v55 }
 0x37c   :  { %7498 = vmatpush3.bf16.msra.mxu0 %v8524_v15 }
 0x37d   :  { %7418 = vmatprep.subr.bf16.mxu0 %v8525_v46 }
 0x37f   :  { %7500 = vmatmul.mubr.msk.bf16.vlgmr.msra.gmra.mxu0 %vm2326_vm0, %v8887_v61  ;;  %v8536_v61 = vld [vmem:[#allocation8 + $0x10] sm:$0xff]  }
 0x380   :  { %7419 = vmatpush3.bf16.msra.mxu0 %v8526_v47  ;;  %6374 = vmatprep.mubr.bf16.mxu0 %v5926_v51 }
 0x381   :  { %7420 = vmatprep.subr.bf16.mxu0 %v8527_v50 }
 0x384   :  { %7421 = vmatpush3.bf16.msra.mxu0 %v8528_v41  ;;  %v3433_v41 = vrot.slane %v8965_v25, %v509_v37 }
 0x385   :  { %7422 = vmatprep.subr.bf16.mxu0 %v8529_v53  ;;  %v3437_v53 = vrot.slane %v8965_v25, %v513_v62 }
 0x388   :  { %7423 = vmatpush3.bf16.msra.mxu0 %v8530_v54 }
 0x389   :  { %7424 = vmatprep.subr.bf16.mxu0 %v8531_v56 }
 0x38c   :  { %7425 = vmatpush3.bf16.msra.mxu0 %v8532_v57 }
 0x38d   :  { %7426 = vmatprep.subr.bf16.mxu0 %v8533_v58 }
 0x38e   :  { %v8958_v59 = vpop.f32.mrf.mxu1 }
 0x38f   :  { %v5615_v57 = vadd.f32 %v8958_v59, %v3433_v41 }
 0x390   :  { %7427 = vmatpush3.bf16.msra.mxu0 %v8534_v12  ;;  %v8960_v10 = vpop.f32.mrf.mxu1 }
 0x391   :  { %7428 = vmatprep.subr.bf16.mxu0 %v8535_v20  ;;  %v5617_v20 = vadd.f32 %v8960_v10, %v3437_v53 }
 0x392   :  { %v5618_v4 = vpop.f32.mrf.mxu1 }
 0x394   :  { %7429 = vmatpush3.bf16.msra.mxu0 %v8536_v61  ;;  %v5619_v2 = vpop.f32.mrf.mxu1 }
 0x395   :  { %7430 = vmatprep.subr.bf16.mxu0 %v8537_v63 }
 0x398   :  { %7431 = vmatpush3.bf16.msra.mxu0 %v8538_v1 }
 0x399   :  { %7432 = vmatprep.subr.bf16.mxu0 %v8539_v7 }
 0x39c   :  { %7433 = vmatpush3.bf16.msra.mxu0 %v8540_v9 }
 0x39d   :  { %7462 = vmatprep.subr.bf16.mxu0 %v8557_v13 }
 0x39f   :  { %6375 = vmatmul.mubr.bf16.vlgmr.msra.gmra.mxu0 %v5925_v14 }
 0x3a0   :  { %7463 = vmatpush3.bf16.msra.mxu0 %v8558_v40 }
 0x3a1   :  { %7464 = vmatprep.subr.bf16.mxu0 %v8559_v22 }
 0x3a4   :  { %7465 = vmatpush3.bf16.msra.mxu0 %v8560_v21 }
 0x3a5   :  { %7466 = vmatprep.subr.bf16.mxu0 %v8561_v44 }
 0x3a8   :  { %7467 = vmatpush3.bf16.msra.mxu0 %v8562_v24 }
 0x3a9   :  { %7468 = vmatprep.subr.bf16.mxu0 %v8563_v3 }
 0x3ac   :  { %7469 = vmatpush3.bf16.msra.mxu0 %v8564_v6 }
 0x3ad   :  { %7470 = vmatprep.subr.bf16.mxu0 %v8565_v27  ;;  %v3441_v27 = vrot.slane %v8965_v25, %v517_v17 }
 0x3af   :  { %v5532_v32 = vpop.f32.mrf.mxu0 }
 0x3b0   :  { %v5533_v48 = vadd.f32 %v5532_v32, %v5492_v31  ;;  %7471 = vmatpush3.bf16.msra.mxu0 %v8566_v29 }
 0x3b1   :  { %v5534_v39 = vpop.f32.mrf.mxu0  ;;  %7472 = vmatprep.subr.bf16.mxu0 %v8567_v30 }
 0x3b2   :  { %v5574_v43 = vadd.f32 %v8938_v18, %v5533_v48  ;;  %v5535_v36 = vadd.f32 %v5534_v39, %v5494_v34  ;;  %v8573_v18 = vld [vmem:[#allocation8 + $0x188] sm:$0xff]  }
 0x3b3   :  { %v5536_v16 = vpop.f32.mrf.mxu0 }
 0x3b4   :  { %v5906_v60 = vmax.f32 %v5574_v43, 0.0  ;;  %v5576_v38 = vadd.f32 %v8940_v23, %v5535_v36  ;;  %7473 = vmatpush3.bf16.msra.mxu0 %v8568_v49  ;;  %v8574_v23 = vld [vmem:[#allocation8 + $0x180] sm:$0xff]  }
 0x3b5   :  { %v5537_v52 = vpop.f32.mrf.mxu0  ;;  %7474 = vmatprep.subr.bf16.mxu0 %v8569_v42 }
 0x3b6   :  { %v5907_v19 = vmax.f32 %v5576_v38, 0.0  ;;  %v5927_v15 = vpack.c.bf16 %v5906_v60, %v5906_v60 }
 0x3b8   :  { %v5928_v45 = vpack.c.bf16 %v5907_v19, %v5907_v19  ;;  %7475 = vmatpush3.bf16.msra.mxu0 %v8570_v35  ;;  %v7228_v19 = vld [vmem:[#allocation9] ss:$0 sm:$0xff] }
 0x3b9   :  { %7476 = vmatprep.subr.bf16.mxu0 %v8571_v5 }
 0x3ba   :  { %6414 = vmatprep.mubr.bf16.mxu1 %v5928_v45 }
 0x3bb   :  { %6415 = vmatmul.mubr.bf16.vlgmr.msra.gmra.mxu1 %v5927_v15 }
 0x3bc   :  { %7477 = vmatpush3.bf16.msra.mxu0 %v8572_v11  ;;  %7507 = vmatprep.mubr.msk.bf16.mxu1 %vm8697_vm1, %v8696_v55 }
 0x3bd   :  { %7504 = vmatpush3.bf16.msra.mxu1 %v8573_v18 }
 0x3be   :  { %7505 = vmatprep.subr.bf16.mxu1 %v8696_v55 }
 0x3c1   :  { %7506 = vmatpush3.bf16.msra.mxu1 %v8574_v23 }
 0x3ce   :  { %v5696_v46 = vpop.f32.mrf.mxu1 }
 0x3d0   :  { %v5698_v47 = vpop.f32.mrf.mxu1 }
 0x3d2   :  { %v5700_v50 = vpop.f32.mrf.mxu1 }
 0x3d4   :  { %v5701_v51 = vpop.f32.mrf.mxu1 }
 0x3ee   :  { %v7409_v54 = vpop.f32.mrf.mxu1 }
 0x3ef   :  { %v5655_v56 = vpop.f32.mrf.mxu0 }
 0x3f0   :  { %v7410_v58 = vpop.f32.mrf.mxu1  ;;  %v5656_v61 = vadd.f32 %v5655_v56, %v5615_v57 }
 0x3f1   :  { %v5657_v12 = vpop.f32.mrf.mxu0  ;;  %v7411_v55 = vadd.f32 %v7410_v58, %v7409_v54 }
 0x3f2   :  { %v7412_v63 = vpop.f32.mrf.mxu1  ;;  %v5658_v1 = vadd.f32 %v5657_v12, %v5617_v20  ;;  %v5697_v37 = vadd.f32 %v5696_v46, %v5656_v61 }
 0x3f3   :  { %v5659_v4 = vpop.f32.mrf.mxu0 }
 0x3f4   :  { %v7413_v2 = vpop.f32.mrf.mxu1  ;;  %v5699_v40 = vadd.f32 %v5698_v47, %v5658_v1 }
 0x3f5   :  { %v5660_v7 = vpop.f32.mrf.mxu0 }
 0x3f7   :  { %v5737_v9 = vpop.f32.mrf.mxu0 }
 0x3f8   :  { %v5738_v13 = vadd.f32 %v5737_v9, %v5697_v37 }
 0x3f9   :  { %v5739_v62 = vpop.f32.mrf.mxu0 }
 0x3fa   :  { %v5908_v14 = vmax.f32 %v5738_v13, 0.0  ;;  %v5740_v22 = vadd.f32 %v5739_v62, %v5699_v40 }
 0x3fb   :  { %v5741_v21 = vpop.f32.mrf.mxu0 }
 0x3fc   :  { %v5909_v59 = vmax.f32 %v5740_v22, 0.0  ;;  %v5929_v3 = vpack.c.bf16 %v5908_v14, %v5908_v14 }
 0x3fd   :  { %v5742_v44 = vpop.f32.mrf.mxu0 }
 0x3fe   :  { %v5930_v24 = vpack.c.bf16 %v5909_v59, %v5909_v59 }
 0x400   :  { %6454 = vmatprep.mubr.bf16.mxu0 %v5930_v24 }
 0x401   :  { %6455 = vmatmul.mubr.bf16.vlgmr.msra.gmra.mxu0 %v5929_v3 }
 0x417   :  { %v7365_v10 = vpop.f32.mrf.mxu0 }
 0x419   :  { %v7366_v26 = vpop.f32.mrf.mxu0 }
 0x41a   :  { %v7367_v8 = vadd.f32 %v7366_v26, %v7365_v10 }
 0x41b   :  { %v7368_v33 = vpop.f32.mrf.mxu0 }
 0x41c   :  { %v5779_v30 = vadd.f32 %v7367_v8, %v3441_v27 }
 0x41d   :  { %v7369_v6 = vpop.f32.mrf.mxu0 }
 0x437   :  { %v7387_v28 = vpop.f32.mrf.mxu0 }
 0x439   :  { %v7388_v29 = vpop.f32.mrf.mxu0 }
 0x43a   :  { %v7389_v31 = vadd.f32 %v7388_v29, %v7387_v28 }
 0x43b   :  { %v7390_v32 = vpop.f32.mrf.mxu0 }
 0x43c   :  { %v5819_v48 = vadd.f32 %v7389_v31, %v5779_v30 }
 0x43d   :  { %v7391_v34 = vpop.f32.mrf.mxu0 }
 0x43e   :  { %v5859_v49 = vadd.f32 %v7411_v55, %v5819_v48 }
 0x43f   :  { %v5898_v39 = vpop.f32.mrf.mxu0 }
 0x440   :  { %v5899_v42 = vadd.f32 %v5898_v39, %v5859_v49 }
 0x441   :  { %v7501_v43 = vpop.f32.mrf.mxu0 }
 0x442   :  { %v5910_v36 = vmax.f32 %v5899_v42, 0.0 }
 0x443   :  { %v5901_v16 = vpop.f32.mrf.mxu0 }
 0x444   :  { %5917 = vst.msk [vmem:[#allocation2 + $0x30] sm:$0xff] %vm2326_vm0, %v5910_v36 }
 0x445   :  { %v7502_v60 = vpop.f32.mrf.mxu0 }
 0x44b   :  { %v5924_v0 = vld [vmem:[#allocation2 + $0x30] sm:$0xff] }
 0x44c   :  { %v5931_v38 = vpack.c.bf16 %v5924_v0, %v5924_v0 }
 0x44e   :  { %7508 = vmatmul.mubr.msk.bf16.vlgmr.msra.gmra.mxu1 %vm2326_vm0, %v5931_v38 }
 0x45f   :  { %v7434_v17 = vpop.f32.mrf.mxu0 }
 0x461   :  { %v7435_v25 = vpop.f32.mrf.mxu0 }
 0x462   :  { %v7436_v35 = vadd.f32 %v7435_v25, %v7434_v17 }
 0x463   :  { %v7437_v52 = vpop.f32.mrf.mxu0 }
 0x464   :  { %v6377_v15 = vadd.f32 %v7436_v35, %v7228_v19 }
 0x465   :  { %v7438_v5 = vpop.f32.mrf.mxu0 }
 0x47b   :  { %v7456_v45 = vpop.f32.mrf.mxu1 }
 0x47d   :  { %v7457_v11 = vpop.f32.mrf.mxu1 }
 0x47e   :  { %v7458_v18 = vadd.f32 %v7457_v11, %v7456_v45 }
 0x47f   :  { %v7459_v23 = vpop.f32.mrf.mxu1 }
 0x480   :  { %v6417_v46 = vadd.f32 %v7458_v18, %v6377_v15 }
 0x481   :  { %v7460_v47 = vpop.f32.mrf.mxu1 }
 0x4c1   :  { %v7478_v50 = vpop.f32.mrf.mxu0 }
 0x4c3   :  { %v7479_v51 = vpop.f32.mrf.mxu0 }
 0x4c4   :  { %v7480_v41 = vadd.f32 %v7479_v51, %v7478_v50 }
 0x4c5   :  { %v7481_v53 = vpop.f32.mrf.mxu0 }
 0x4c6   :  { %v6457_v54 = vadd.f32 %v7480_v41, %v6417_v46 }
 0x4c7   :  { %v7482_v56 = vpop.f32.mrf.mxu0 }
 0x50e   :  { %v6496_v57 = vpop.f32.mrf.mxu1 }
 0x50f   :  { %v6497_v58 = vadd.f32 %v6496_v57, %v6457_v54 }
 0x510   :  { %v7509_v12 = vpop.f32.mrf.mxu1 }
 0x511   :  { %6502 = vst [vmem:[#allocation11] sm:$0xff] %v6497_v58 }
 0x512   :  { %v6499_v55 = vpop.f32.mrf.mxu1 }
 0x513   :  { %8668 = shalt.err (!%p8665_p10)
}
 0x514   :  { %6512 = dma.vmem_to_hbm [thread:$0]  %s6510_s30, 128, %s9003_s5, [#allocation5]   ;;  %v7510_v20 = vpop.f32.mrf.mxu1 }
 0x515   :  { %8683 = dma.done.wait [#allocation5], 128  }
 0x516   :  { %8684 = vsyncadd [#allocation5], 4294967168 }
 0x517   :  { %6516 = vsyncpa [#allocation4], 1 }
 0x518   :  { %6517 = vsyncpa [#allocation7], 1 }
 0x519   :  { %6518 = vsyncpa [#allocation10], 1 }
 0x51a   :  { %6519 = vsyncpa [#allocation5], 1 }

</bundles_post_ra>
